<compile_context>
chip_gen: v5e
topology: v5e:2x2
jax: 0.10.0
libtpu: 0.0.40
codegen_flags: <defaults>
</compile_context>

<pallas_src>
import functools

import jax
import jax.numpy as jnp
import numpy as np
from jax.experimental import pallas as pl
from jax.experimental.pallas import tpu as pltpu

_EPS = 1e-5


def _netlocalg_kernel(x_ref,
                      w1_ref, w25_ref, w3_ref, w4a_ref, w4b_ref, w5b_ref,
                      bias_ref,
                      out_ref,
                      acc_ref,
                      *, inv_n, n_valid, block_n, oc, needs_mask):
    n_idx = pl.program_id(1)

    @pl.when(n_idx == 0)
    def _init():
        acc_ref[...] = jnp.zeros_like(acc_ref)

    x = x_ref[0]                                     # (C_in, tile_n), bf16

    # Packed, BN-folded biases (f32), sliced statically.
    b1 = bias_ref[0:256, :]
    b2 = bias_ref[256:384, :]
    b3 = bias_ref[384:448, :]
    b4 = bias_ref[448:704, :]
    b5 = bias_ref[704:704 + oc, :]

    def mm(w_ref, h):                                # bf16 x bf16 -> f32 accumulation
        return jnp.dot(w_ref[...], h, preferred_element_type=jnp.float32)

    bf16 = lambda v: v.astype(jnp.bfloat16)

    # fc1 + folded-BN + ReLU.
    a1 = jnp.maximum(mm(w1_ref, x) + b1, 0.0)                              # (256, tn) f32
    a1b = bf16(a1)

    # fc2 and fc5[:, :256] both consume a1 -> one stacked M=(128+oc) matmul so the full
    # 256-row MXU is used on v6e/v7x.
    h25 = mm(w25_ref, a1b)                                                 # (128+oc, tn) f32
    a2 = jnp.maximum(h25[:128] + b2, 0.0)                                  # (128, tn)
    p5a = h25[128:]                                                        # (oc, tn) pre-bias partial
    a2b = bf16(a2)

    a3 = jnp.maximum(mm(w3_ref, a2b) + b3, 0.0)                            # (64, tn)
    # cat(x_128, x_64) @ W4  ==  W4a @ a2 + W4b @ a3   (no concat copy; fused so v7x MRB
    # can accumulate the two pushes in place).
    a4 = jnp.maximum(mm(w4a_ref, a2b) + mm(w4b_ref, bf16(a3)) + b4, 0.0)   # (256, tn)
    # cat(x_256_1, x_256_4) @ W5  ==  W5a @ a1 (= p5a, from the stacked matmul) + W5b @ a4.
    a5 = jnp.maximum(p5a + mm(w5b_ref, bf16(a4)) + b5, 0.0)                # (oc, tn)

    if needs_mask:
        # Zero out columns that only exist because of host-side N padding; without this
        # they would contribute relu(bias)-derived values to the AvgPool mean.
        col = n_idx * block_n + jax.lax.broadcasted_iota(jnp.int32, a5.shape, 1)
        a5 = jnp.where(col < n_valid, a5, 0.0)

    # AvgPool1d(num_points): elementwise VPU accumulation per tile; the cross-lane reduce
    # and the single (oc, 1) store happen only once, in the finalize step.
    acc_ref[...] += a5

    @pl.when(n_idx == pl.num_programs(1) - 1)
    def _finalize():
        out_ref[0, :, :] = jnp.sum(acc_ref[...], axis=1, keepdims=True) * inv_n


def _fold_bn(idx, params, eps=_EPS):
    """Fold eval-mode BatchNorm1d into the preceding Linear (torch layout W: (out, in))."""
    w = params[f'fc{idx}_w']
    b = params[f'fc{idx}_b']
    gamma = params[f'bn{idx}_gamma']
    beta = params[f'bn{idx}_beta']
    mean = params[f'bn{idx}_mean']
    var = params[f'bn{idx}_var']
    scale = gamma / jnp.sqrt(var + eps)              # (out,)
    w_f = (w * scale[:, None]).astype(jnp.float32)   # (out, in) for y = W_f @ x_cf + b_f
    b_f = ((b - mean) * scale + beta).astype(jnp.float32)
    return w_f, b_f


def netlocal_g_forward(x, params, *, block_n=None):
    """x: (B, in_channel, num_points) channel-first (as in PyTorch). Returns (B, out_channel, 1)."""
    B, c_in, N = x.shape
    oc = params['fc5_w'].shape[0]

    # Host-side BN folding, concat-splitting, W2/W5a stacking, bias packing.
    w1, b1 = _fold_bn(1, params)
    w2, b2 = _fold_bn(2, params)
    w3, b3 = _fold_bn(3, params)
    w4, b4 = _fold_bn(4, params)
    w5, b5 = _fold_bn(5, params)
    w4a, w4b = w4[:, :128], w4[:, 128:]              # acts on x_128 / x_64
    w5a, w5b = w5[:, :256], w5[:, 256:]              # acts on x_256_1 / x_256_4
    w25 = jnp.concatenate([w2, w5a], axis=0)         # (128 + oc, 256), shared input a1
    biases = jnp.concatenate([b1, b2, b3, b4, b5], axis=0)[:, None].astype(jnp.float32)

    # bf16 weights / activations, f32 MXU accumulation.
    to_bf16 = lambda a: a.astype(jnp.bfloat16)
    w1, w25, w3, w4a, w4b, w5b = map(to_bf16, (w1, w25, w3, w4a, w4b, w5b))

    # Pad N to a lane multiple so every tile is lane-dense; padded columns are masked in-kernel.
    n_pad = ((N + 127) // 128) * 128
    if n_pad != N:
        x = jnp.pad(x, ((0, 0), (0, 0), (0, n_pad - N)))
    x = to_bf16(x)

    if block_n is None:
        if n_pad <= 2048:
            block_n = n_pad                           # small N: single tile per batch element
        else:
            block_n = next(t for t in (2048, 1024, 512, 256, 128) if n_pad % t == 0)
    assert n_pad % block_n == 0, (N, n_pad, block_n)
    n_tiles = n_pad // block_n

    kernel = functools.partial(
        _netlocalg_kernel,
        inv_n=1.0 / N, n_valid=N, block_n=block_n, oc=oc, needs_mask=(n_pad != N))

    weights = (w1, w25, w3, w4a, w4b, w5b, biases)

    def wmap(b, n):   # weights/biases: constant index map -> fetched once, resident in VMEM
        return (0, 0)

    flops = 2 * B * N * (c_in * 256 + 256 * 128 + 128 * 64 + 192 * 256 + 512 * oc)
    bytes_accessed = int(2 * B * c_in * n_pad + 4 * B * oc
                         + sum(int(w.size) * w.dtype.itemsize for w in weights))
    cost = pl.CostEstimate(flops=flops, transcendentals=0, bytes_accessed=bytes_accessed)

    out = pl.pallas_call(
        kernel,
        out_shape=jax.ShapeDtypeStruct((B, oc, 1), jnp.float32),
        grid=(B, n_tiles),
        in_specs=[pl.BlockSpec((1, c_in, block_n), lambda b, n: (b, 0, n))]
                 + [pl.BlockSpec(w.shape, wmap) for w in weights],
        out_specs=pl.BlockSpec((1, oc, 1), lambda b, n: (b, 0, 0)),
        scratch_shapes=[pltpu.VMEM((oc, block_n), jnp.float32)],
        compiler_params=pltpu.CompilerParams(
            dimension_semantics=("parallel", "arbitrary"),
            vmem_limit_bytes=64 * 1024 * 1024),
        cost_estimate=cost,
    )(x, *weights)
    return out


def reference(x, params, eps=_EPS):
    """Pure-JAX (f32) re-implementation of the dimension-consistent PyTorch forward, eval mode."""
    h = jnp.transpose(x, (0, 2, 1))                  # (B, N, C_in)

    def lin_bn_relu(h, idx):
        w, b = params[f'fc{idx}_w'], params[f'fc{idx}_b']
        g, beta = params[f'bn{idx}_gamma'], params[f'bn{idx}_beta']
        mean, var = params[f'bn{idx}_mean'], params[f'bn{idx}_var']
        y = h @ w.T + b
        y = (y - mean) / jnp.sqrt(var + eps) * g + beta
        return jax.nn.relu(y)

    x_256_1 = lin_bn_relu(h, 1)                                     # (B, N, 256)
    x_128 = lin_bn_relu(x_256_1, 2)                                 # (B, N, 128)
    x_64 = lin_bn_relu(x_128, 3)                                    # (B, N, 64)
    x_192 = jnp.concatenate([x_128, x_64], axis=-1)                 # (B, N, 192)
    x_256_4 = lin_bn_relu(x_192, 4)                                 # (B, N, 256)
    x_512 = jnp.concatenate([x_256_1, x_256_4], axis=-1)            # (B, N, 512)
    x_out = lin_bn_relu(x_512, 5)                                   # (B, N, oc)
    return jnp.mean(jnp.transpose(x_out, (0, 2, 1)), axis=-1, keepdims=True)  # (B, oc, 1)


if __name__ == "__main__":
    B, in_channel, out_channel = 2, 16, 128

    key = jax.random.PRNGKey(0)
    keys = iter(jax.random.split(key, 64))

    layer_dims = [(in_channel, 256), (256, 128), (128, 64), (192, 256), (512, out_channel)]
    params = {}
    for i, (cin, cout) in enumerate(layer_dims, start=1):
        params[f'fc{i}_w'] = 0.1 * jax.random.normal(next(keys), (cout, cin), dtype=jnp.float32)
        params[f'fc{i}_b'] = 0.1 * jax.random.normal(next(keys), (cout,), dtype=jnp.float32)
        params[f'bn{i}_gamma'] = 1.0 + 0.1 * jax.random.normal(next(keys), (cout,), dtype=jnp.float32)
        params[f'bn{i}_beta'] = 0.1 * jax.random.normal(next(keys), (cout,), dtype=jnp.float32)
        params[f'bn{i}_mean'] = 0.1 * jax.random.normal(next(keys), (cout,), dtype=jnp.float32)
        params[f'bn{i}_var'] = jax.random.uniform(next(keys), (cout,), dtype=jnp.float32,
                                                  minval=0.5, maxval=1.5)

    # Primary run: N a lane multiple -> heuristic picks a single lane-dense tile per batch.
    num_points = 256
    x = jax.random.normal(next(keys), (B, in_channel, num_points), dtype=jnp.float32)
    out = jax.block_until_ready(netlocal_g_forward(x, params))
    ref = jax.block_until_ready(reference(x, params))
    assert out.shape == (B, out_channel, 1), out.shape
    np.testing.assert_allclose(np.asarray(out), np.asarray(ref), rtol=2e-2, atol=2e-2)

    # Secondary run: ragged N (pad + mask) and the multi-tile accumulation path.
    num_points2 = 200
    x2 = jax.random.normal(next(keys), (B, in_channel, num_points2), dtype=jnp.float32)
    out2 = jax.block_until_ready(netlocal_g_forward(x2, params, block_n=128))
    ref2 = jax.block_until_ready(reference(x2, params))
    np.testing.assert_allclose(np.asarray(out2), np.asarray(ref2), rtol=2e-2, atol=2e-2)

    print("KERNEL_OK")
</pallas_src>

<mosaic_0001>
module attributes {stable_mosaic.version = 11 : i64} {
  func.func @_netlocalg_kernel(%arg0: i32, %arg1: i32, %arg2: memref<1x16x256xbf16, #tpu.memory_space<vmem>>, %arg3: memref<256x16xbf16, #tpu.memory_space<vmem>>, %arg4: memref<256x256xbf16, #tpu.memory_space<vmem>>, %arg5: memref<64x128xbf16, #tpu.memory_space<vmem>>, %arg6: memref<256x128xbf16, #tpu.memory_space<vmem>>, %arg7: memref<256x64xbf16, #tpu.memory_space<vmem>>, %arg8: memref<128x256xbf16, #tpu.memory_space<vmem>>, %arg9: memref<832x1xf32, #tpu.memory_space<vmem>>, %arg10: memref<1x128x1xf32, #tpu.memory_space<vmem>>, %arg11: memref<128x256xf32, #tpu.memory_space<vmem>>) attributes {dimension_semantics = [#tpu.dimension_semantics<parallel>, #tpu.dimension_semantics<arbitrary>], iteration_bounds = array<i64: 2, 1>, scalar_prefetch = 0 : i64, scratch_operands = 1 : i64, tpu.core_type = #tpu.core_type<tc>, window_params = [{transform_indices = @transform_0, window_bounds = array<i64: 1, 16, 256>}, {pipeline_mode = #tpu.pipeline_mode<synchronous>, transform_indices = @transform_1, window_bounds = array<i64: 256, 16>}, {pipeline_mode = #tpu.pipeline_mode<synchronous>, transform_indices = @transform_2, window_bounds = array<i64: 256, 256>}, {pipeline_mode = #tpu.pipeline_mode<synchronous>, transform_indices = @transform_3, window_bounds = array<i64: 64, 128>}, {pipeline_mode = #tpu.pipeline_mode<synchronous>, transform_indices = @transform_4, window_bounds = array<i64: 256, 128>}, {pipeline_mode = #tpu.pipeline_mode<synchronous>, transform_indices = @transform_5, window_bounds = array<i64: 256, 64>}, {pipeline_mode = #tpu.pipeline_mode<synchronous>, transform_indices = @transform_6, window_bounds = array<i64: 128, 256>}, {pipeline_mode = #tpu.pipeline_mode<synchronous>, transform_indices = @transform_7, window_bounds = array<i64: 832, 1>}, {transform_indices = @transform_8, window_bounds = array<i64: 1, 128, 1>}]} {
    %c0_i32 = arith.constant 0 : i32
    %0 = arith.cmpi eq, %arg1, %c0_i32 : i32
    %1 = arith.extui %0 : i1 to i32
    %c0_i32_0 = arith.constant 0 : i32
    %2 = arith.cmpi ne, %1, %c0_i32_0 : i32
    scf.if %2 {
      %cst_37 = arith.constant 0.000000e+00 : f32
      %56 = vector.broadcast %cst_37 : f32 to vector<128x256xf32>
      %c0_38 = arith.constant 0 : index
      %c0_39 = arith.constant 0 : index
      %57 = vector.load %arg11[%c0_38, %c0_39] : memref<128x256xf32, #tpu.memory_space<vmem>>, vector<128x256xf32>
      tpu.vector_store %arg11[%c0_38, %c0_39], %56 {strides = array<i32>} : memref<128x256xf32, #tpu.memory_space<vmem>>, vector<128x256xf32>,
    } else {
    }
    %c0 = arith.constant 0 : index
    %c0_1 = arith.constant 0 : index
    %c0_2 = arith.constant 0 : index
    %3 = vector.load %arg2[%c0, %c0_1, %c0_2] : memref<1x16x256xbf16, #tpu.memory_space<vmem>>, vector<1x16x256xbf16>
    %4 = vector.shape_cast %3 : vector<1x16x256xbf16> to vector<16x256xbf16>
    %c0_3 = arith.constant 0 : index
    %c0_4 = arith.constant 0 : index
    %5 = vector.load %arg9[%c0_3, %c0_4] : memref<832x1xf32, #tpu.memory_space<vmem>>, vector<256x1xf32>
    %c256 = arith.constant 256 : index
    %c0_5 = arith.constant 0 : index
    %6 = vector.load %arg9[%c256, %c0_5] : memref<832x1xf32, #tpu.memory_space<vmem>>, vector<128x1xf32>
    %c384 = arith.constant 384 : index
    %c0_6 = arith.constant 0 : index
    %7 = vector.load %arg9[%c384, %c0_6] : memref<832x1xf32, #tpu.memory_space<vmem>>, vector<64x1xf32>
    %c448 = arith.constant 448 : index
    %c0_7 = arith.constant 0 : index
    %8 = vector.load %arg9[%c448, %c0_7] : memref<832x1xf32, #tpu.memory_space<vmem>>, vector<256x1xf32>
    %c704 = arith.constant 704 : index
    %c0_8 = arith.constant 0 : index
    %9 = vector.load %arg9[%c704, %c0_8] : memref<832x1xf32, #tpu.memory_space<vmem>>, vector<128x1xf32>
    %c0_9 = arith.constant 0 : index
    %c0_10 = arith.constant 0 : index
    %10 = vector.load %arg3[%c0_9, %c0_10] : memref<256x16xbf16, #tpu.memory_space<vmem>>, vector<256x16xbf16>
    %cst = arith.constant dense<0.000000e+00> : vector<256x256xf32>
    %11 = tpu.matmul %10, %4, %cst {dimension_numbers = #tpu.dot_dimension_numbers<[1], [0], [0], [1], [0, 0, 1, 1], [], []>} : vector<256x16xbf16>, vector<16x256xbf16>, vector<256x256xf32> -> vector<256x256xf32>
    %12 = vector.broadcast %5 : vector<256x1xf32> to vector<256x256xf32>
    %13 = arith.addf %11, %12 : vector<256x256xf32>
    %cst_11 = arith.constant 0.000000e+00 : f32
    %14 = vector.broadcast %cst_11 : f32 to vector<256x256xf32>
    %15 = arith.maximumf %13, %14 : vector<256x256xf32>
    %16 = arith.truncf %15 : vector<256x256xf32> to vector<256x256xbf16>
    %c0_12 = arith.constant 0 : index
    %c0_13 = arith.constant 0 : index
    %17 = vector.load %arg4[%c0_12, %c0_13] : memref<256x256xbf16, #tpu.memory_space<vmem>>, vector<256x256xbf16>
    %cst_14 = arith.constant dense<0.000000e+00> : vector<256x256xf32>
    %18 = tpu.matmul %17, %16, %cst_14 {dimension_numbers = #tpu.dot_dimension_numbers<[1], [0], [0], [1], [0, 0, 1, 1], [], []>} : vector<256x256xbf16>, vector<256x256xbf16>, vector<256x256xf32> -> vector<256x256xf32>
    %19 = vector.extract_strided_slice %18 {offsets = [0, 0], sizes = [128, 256], strides = [1, 1]} : vector<256x256xf32> to vector<128x256xf32>
    %20 = vector.broadcast %6 : vector<128x1xf32> to vector<128x256xf32>
    %21 = arith.addf %19, %20 : vector<128x256xf32>
    %cst_15 = arith.constant 0.000000e+00 : f32
    %22 = vector.broadcast %cst_15 : f32 to vector<128x256xf32>
    %23 = arith.maximumf %21, %22 : vector<128x256xf32>
    %24 = vector.extract_strided_slice %18 {offsets = [128, 0], sizes = [128, 256], strides = [1, 1]} : vector<256x256xf32> to vector<128x256xf32>
    %25 = arith.truncf %23 : vector<128x256xf32> to vector<128x256xbf16>
    %c0_16 = arith.constant 0 : index
    %c0_17 = arith.constant 0 : index
    %26 = vector.load %arg5[%c0_16, %c0_17] : memref<64x128xbf16, #tpu.memory_space<vmem>>, vector<64x128xbf16>
    %cst_18 = arith.constant dense<0.000000e+00> : vector<64x256xf32>
    %27 = tpu.matmul %26, %25, %cst_18 {dimension_numbers = #tpu.dot_dimension_numbers<[1], [0], [0], [1], [0, 0, 1, 1], [], []>} : vector<64x128xbf16>, vector<128x256xbf16>, vector<64x256xf32> -> vector<64x256xf32>
    %28 = vector.broadcast %7 : vector<64x1xf32> to vector<64x256xf32>
    %29 = arith.addf %27, %28 : vector<64x256xf32>
    %cst_19 = arith.constant 0.000000e+00 : f32
    %30 = vector.broadcast %cst_19 : f32 to vector<64x256xf32>
    %31 = arith.maximumf %29, %30 : vector<64x256xf32>
    %c0_20 = arith.constant 0 : index
    %c0_21 = arith.constant 0 : index
    %32 = vector.load %arg6[%c0_20, %c0_21] : memref<256x128xbf16, #tpu.memory_space<vmem>>, vector<256x128xbf16>
    %cst_22 = arith.constant dense<0.000000e+00> : vector<256x256xf32>
    %33 = tpu.matmul %32, %25, %cst_22 {dimension_numbers = #tpu.dot_dimension_numbers<[1], [0], [0], [1], [0, 0, 1, 1], [], []>} : vector<256x128xbf16>, vector<128x256xbf16>, vector<256x256xf32> -> vector<256x256xf32>
    %34 = arith.truncf %31 : vector<64x256xf32> to vector<64x256xbf16>
    %c0_23 = arith.constant 0 : index
    %c0_24 = arith.constant 0 : index
    %35 = vector.load %arg7[%c0_23, %c0_24] : memref<256x64xbf16, #tpu.memory_space<vmem>>, vector<256x64xbf16>
    %cst_25 = arith.constant dense<0.000000e+00> : vector<256x256xf32>
    %36 = tpu.matmul %35, %34, %cst_25 {dimension_numbers = #tpu.dot_dimension_numbers<[1], [0], [0], [1], [0, 0, 1, 1], [], []>} : vector<256x64xbf16>, vector<64x256xbf16>, vector<256x256xf32> -> vector<256x256xf32>
    %37 = arith.addf %33, %36 : vector<256x256xf32>
    %38 = vector.broadcast %8 : vector<256x1xf32> to vector<256x256xf32>
    %39 = arith.addf %37, %38 : vector<256x256xf32>
    %cst_26 = arith.constant 0.000000e+00 : f32
    %40 = vector.broadcast %cst_26 : f32 to vector<256x256xf32>
    %41 = arith.maximumf %39, %40 : vector<256x256xf32>
    %42 = arith.truncf %41 : vector<256x256xf32> to vector<256x256xbf16>
    %c0_27 = arith.constant 0 : index
    %c0_28 = arith.constant 0 : index
    %43 = vector.load %arg8[%c0_27, %c0_28] : memref<128x256xbf16, #tpu.memory_space<vmem>>, vector<128x256xbf16>
    %cst_29 = arith.constant dense<0.000000e+00> : vector<128x256xf32>
    %44 = tpu.matmul %43, %42, %cst_29 {dimension_numbers = #tpu.dot_dimension_numbers<[1], [0], [0], [1], [0, 0, 1, 1], [], []>} : vector<128x256xbf16>, vector<256x256xbf16>, vector<128x256xf32> -> vector<128x256xf32>
    %45 = arith.addf %24, %44 : vector<128x256xf32>
    %46 = vector.broadcast %9 : vector<128x1xf32> to vector<128x256xf32>
    %47 = arith.addf %45, %46 : vector<128x256xf32>
    %cst_30 = arith.constant 0.000000e+00 : f32
    %48 = vector.broadcast %cst_30 : f32 to vector<128x256xf32>
    %49 = arith.maximumf %47, %48 : vector<128x256xf32>
    %c0_31 = arith.constant 0 : index
    %c0_32 = arith.constant 0 : index
    %50 = vector.load %arg11[%c0_31, %c0_32] : memref<128x256xf32, #tpu.memory_space<vmem>>, vector<128x256xf32>
    %51 = arith.addf %50, %49 : vector<128x256xf32>
    %c0_33 = arith.constant 0 : index
    %c0_34 = arith.constant 0 : index
    %52 = vector.load %arg11[%c0_33, %c0_34] : memref<128x256xf32, #tpu.memory_space<vmem>>, vector<128x256xf32>
    tpu.vector_store %arg11[%c0_33, %c0_34], %51 {strides = array<i32>} : memref<128x256xf32, #tpu.memory_space<vmem>>, vector<128x256xf32>,
    %c0_i32_35 = arith.constant 0 : i32
    %53 = arith.cmpi eq, %arg1, %c0_i32_35 : i32
    %54 = arith.extui %53 : i1 to i32
    %c0_i32_36 = arith.constant 0 : i32
    %55 = arith.cmpi ne, %54, %c0_i32_36 : i32
    scf.if %55 {
      %c0_37 = arith.constant 0 : index
      %c0_38 = arith.constant 0 : index
      %56 = vector.load %arg11[%c0_37, %c0_38] : memref<128x256xf32, #tpu.memory_space<vmem>>, vector<128x256xf32>
      %cst_39 = arith.constant dense<0.000000e+00> : vector<128xf32>
      %57 = vector.multi_reduction <add>, %56, %cst_39 [1] : vector<128x256xf32> to vector<128xf32>
      %58 = vector.shape_cast %57 : vector<128xf32> to vector<128x1xf32>
      %cst_40 = arith.constant 3.906250e-03 : f32
      %59 = vector.broadcast %cst_40 : f32 to vector<128x1xf32>
      %60 = arith.mulf %58, %59 : vector<128x1xf32>
      %c0_41 = arith.constant 0 : index
      %c0_42 = arith.constant 0 : index
      %c0_43 = arith.constant 0 : index
      %61 = vector.load %arg10[%c0_41, %c0_42, %c0_43] : memref<1x128x1xf32, #tpu.memory_space<vmem>>, vector<1x128x1xf32>
      %62 = vector.shape_cast %61 : vector<1x128x1xf32> to vector<128x1xf32>
      %63 = vector.shape_cast %60 : vector<128x1xf32> to vector<1x128x1xf32>
      tpu.vector_store %arg10[%c0_41, %c0_42, %c0_43], %63 {strides = array<i32>} : memref<1x128x1xf32, #tpu.memory_space<vmem>>, vector<1x128x1xf32>,
    } else {
    }
    return
  }
  func.func @transform_0(%arg0: i32, %arg1: i32) -> (i32, i32, i32) {
    %c0_i32 = arith.constant 0 : i32
    %c0_i32_0 = arith.constant 0 : i32
    return %arg0, %c0_i32, %arg1 : i32, i32, i32
  }
  func.func @transform_1(%arg0: i32, %arg1: i32) -> (i32, i32) {
    %c0_i32 = arith.constant 0 : i32
    %c0_i32_0 = arith.constant 0 : i32
    %c0_i32_1 = arith.constant 0 : i32
    return %c0_i32, %c0_i32_0 : i32, i32
  }
  func.func @transform_2(%arg0: i32, %arg1: i32) -> (i32, i32) {
    %c0_i32 = arith.constant 0 : i32
    %c0_i32_0 = arith.constant 0 : i32
    %c0_i32_1 = arith.constant 0 : i32
    return %c0_i32, %c0_i32_0 : i32, i32
  }
  func.func @transform_3(%arg0: i32, %arg1: i32) -> (i32, i32) {
    %c0_i32 = arith.constant 0 : i32
    %c0_i32_0 = arith.constant 0 : i32
    %c0_i32_1 = arith.constant 0 : i32
    return %c0_i32, %c0_i32_0 : i32, i32
  }
  func.func @transform_4(%arg0: i32, %arg1: i32) -> (i32, i32) {
    %c0_i32 = arith.constant 0 : i32
    %c0_i32_0 = arith.constant 0 : i32
    %c0_i32_1 = arith.constant 0 : i32
    return %c0_i32, %c0_i32_0 : i32, i32
  }
  func.func @transform_5(%arg0: i32, %arg1: i32) -> (i32, i32) {
    %c0_i32 = arith.constant 0 : i32
    %c0_i32_0 = arith.constant 0 : i32
    %c0_i32_1 = arith.constant 0 : i32
    return %c0_i32, %c0_i32_0 : i32, i32
  }
  func.func @transform_6(%arg0: i32, %arg1: i32) -> (i32, i32) {
    %c0_i32 = arith.constant 0 : i32
    %c0_i32_0 = arith.constant 0 : i32
    %c0_i32_1 = arith.constant 0 : i32
    return %c0_i32, %c0_i32_0 : i32, i32
  }
  func.func @transform_7(%arg0: i32, %arg1: i32) -> (i32, i32) {
    %c0_i32 = arith.constant 0 : i32
    %c0_i32_0 = arith.constant 0 : i32
    %c0_i32_1 = arith.constant 0 : i32
    return %c0_i32, %c0_i32_0 : i32, i32
  }
  func.func @transform_8(%arg0: i32, %arg1: i32) -> (i32, i32, i32) {
    %c0_i32 = arith.constant 0 : i32
    %c0_i32_0 = arith.constant 0 : i32
    %c0_i32_1 = arith.constant 0 : i32
    return %arg0, %c0_i32, %c0_i32_0 : i32, i32, i32
  }
}

</mosaic_0001>

<bundles_post_ra>
// kernel: tpu_custom_call.1
= control target key start
LH: loop header
LB: loop body
LE: loop exit
PB: predicated region body
PF: predicated region fallthrough
CT: control target
= control target key end

     0   :  { %s4359_s27 = smov 0   ;;  %s4361_s28 = smov 0   ;;  %s6084_s0 = inlined_call_operand.vmem [shape: bf16[2,16,256], index: 0, kind: input, shape index: {}]   ;;  %s6085_s1 = inlined_call_operand.vmem [shape: bf16[256,16], index: 1, kind: input, shape index: {}]   ;;  %s6086_s2 = inlined_call_operand.vmem [shape: bf16[256,256], index: 2, kind: input, shape index: {}]   ;;  %s6087_s3 = inlined_call_operand.vmem [shape: bf16[64,128], index: 3, kind: input, shape index: {}]   ;;  %s6088_s4 = inlined_call_operand.vmem [shape: bf16[256,128], index: 4, kind: input, shape index: {}]   ;;  %s6089_s5 = inlined_call_operand.vmem [shape: bf16[256,64], index: 5, kind: input, shape index: {}]   ;;  %s6090_s6 = inlined_call_operand.vmem [shape: bf16[128,256], index: 6, kind: input, shape index: {}]   ;;  %s6091_s7 = inlined_call_operand.vmem [shape: f32[832,1], index: 7, kind: input, shape index: {}]   ;;  %s6092_s8 = inlined_call_operand.vmem [shape: f32[2,128,1], index: 8, kind: output, shape index: {}]  }
   0x1   :  { %s4363_s29 = smov 0  }
   0x2 LB: > { %s30_s30 = sadd.s32 1, %s4307_s28  ;;  %p3662_p0 = scmp.ge.s32.totalorder %s4311_s29, 1  ;;  %s4311_s29 = sphi %s4363_s29, %s18_s29   ;;  %s4307_s28 = sphi %s4361_s28, %s6216_s28   ;;  %s4303_s27 = sphi %s4359_s27, %s6215_s27  }
   0x3   : > { %p32_p1 = scmp.ge.s32.totalorder %s30_s30, 2  ;;  %p281_p2 = scmp.lt.s32.totalorder %s4311_s29, 3 }
   0x5   : > { %s6218_s30 = smov (%p32_p1, %s30_s30), 0  ;;  %p282_p3 = pnand %p3662_p0, %p281_p2 }
   0x7   : > { %285 = sbr.rel (%p282_p3) target bundleno = 1837 (0x72d), region = 52 }
   0xc   : > { %v403_v0 = vld [vmem:[%s6091_s7 + $0xf0] sm:$0xff]  ;;  %v385_v2 = vld [vmem:[%s6091_s7 + $0x60] sm:$0xff]  ;;  %p320_p4 = scmp.lt.s32.totalorder %s4303_s27, 1  ;;  %v4313_v3 = vmov 0   ;;  %v404_v9 = vld [vmem:[%s6091_s7 + $0xf8] sm:$0xff]  ;;  %vm759_vm0 = vcmask 130048  }
   0xd   : > { %v387_v1 = vld [vmem:[%s6091_s7 + $0x70] sm:$0xff]  ;;  %4288 = vset.pattern.permute.xlu2 %v4313_v3  ;;  %4287 = vset.pattern.permute.xlu1 %v4313_v3  ;;  %v388_v11 = vld [vmem:[%s6091_s7 + $0x78] sm:$0xff]  ;;  %v386_v12 = vld [vmem:[%s6091_s7 + $0x68] sm:$0xff]  ;;  %vm2088_vm1 = vcmask 523264   ;;  %vm3572_vm2 = vcmask 7168  }
   0xe   : > { %4286 = vset.pattern.permute.xlu0 %v4313_v3  ;;  %661 = vperm.xlu1 %4287, %v403_v0   ;;  %s6220_s27 = smov (!%p320_p4, %s4303_s27), 1  ;;  %v4145_v13 = vld [vmem:[%s6085_s1] sm:$0xff]  ;;  %v402_v14 = vld [vmem:[%s6091_s7 + $0xe8] sm:$0xff]  ;;  %v383_v16 = vld [vmem:[%s6091_s7 + $0x50] sm:$0xff] }
   0xf   : > { %581 = vperm.xlu0 %4286, %v387_v1   ;;  %571 = vperm.xlu2 %4288, %v385_v2   ;;  %s4141_s15 = sshll.u32 %s6220_s27, 4  ;;  %v401_v15 = vld [vmem:[%s6091_s7 + $0xe0] sm:$0xff]  ;;  %v399_v17 = vld [vmem:[%s6091_s7 + $0xd0] sm:$0xff]  ;;  %v384_v18 = vld [vmem:[%s6091_s7 + $0x58] sm:$0xff]  ;;  %s4142_s13 = sshll.u32 %s6220_s27, 7 }
  0x10   : > { %s327_s18 = scalar_lea.vmem %s6084_s0, %s4141_s15  ;;  %v400_v19 = vld [vmem:[%s6091_s7 + $0xd8] sm:$0xff]  ;;  %v4146_v20 = vld [vmem:[%s6085_s1 + $0x8] sm:$0xff]  ;;  %v397_v22 = vld [vmem:[%s6091_s7 + $0xc0] sm:$0xff]  ;;  %s6041_s16 = scalar_lea.vmem %s6092_s8, %s4142_s13 }
  0x11   : > { %v3733_v4 = vld [vmem:[%s327_s18] sm:$0xf]  ;;  %v4144_v5 = vld [vmem:[%s327_s18 + $0x4] sm:$0xf0]  ;;  %v4143_v6 = vld [vmem:[%s327_s18 + $0x4] sm:$0xf] }
  0x12   : > { %v3734_v7 = vor.u32 %v4144_v5, %v3733_v4  ;;  %v3735_v8 = vld [vmem:[%s327_s18 + $0x8] sm:$0xf0]  ;;  %v381_v23 = vld [vmem:[%s6091_s7 + $0x40] sm:$0xff]  ;;  %v379_v24 = vld [vmem:[%s6091_s7 + $0x30] sm:$0xff] }
  0x13   : > { %v3738_v10 = vor.u32 %v4143_v6, %v3735_v8  ;;  %v382_v21 = vld [vmem:[%s6091_s7 + $0x48] sm:$0xff]  ;;  %v380_v26 = vld [vmem:[%s6091_s7 + $0x38] sm:$0xff]  ;;  %v4147_v27 = vld [vmem:[%s6085_s1 + $0x10] sm:$0xff] }
  0x14   : > { %815 = vmatpush.bf16.msra.mxu0 %v3734_v7  ;;  %v398_v25 = vld [vmem:[%s6091_s7 + $0xc8] sm:$0xff]  ;;  %v396_v28 = vld [vmem:[%s6091_s7 + $0xb8] sm:$0xff]  ;;  %v395_v29 = vld [vmem:[%s6091_s7 + $0xb0] sm:$0xff] }
  0x15   : > { %904 = vmatpush.bf16.msra.mxu1 %v3738_v10  ;;  %v377_v30 = vld [vmem:[%s6091_s7 + $0x20] sm:$0xff]  ;;  %v378_v32 = vld [vmem:[%s6091_s7 + $0x28] sm:$0xff]  ;;  %v4148_v34 = vld [vmem:[%s6085_s1 + $0x18] sm:$0xff] }
  0x16   : > { %666 = vperm.xlu1 %4287, %v404_v9   ;;  %v393_v31 = vld [vmem:[%s6091_s7 + $0xa0] sm:$0xff]  ;;  %v394_v33 = vld [vmem:[%s6091_s7 + $0xa8] sm:$0xff]  ;;  %v376_v35 = vld [vmem:[%s6091_s7 + $0x18] sm:$0xff] }
  0x17   : > { %586 = vperm.xlu0 %4286, %v388_v11   ;;  %576 = vperm.xlu2 %4288, %v386_v12   ;;  %v391_v36 = vld [vmem:[%s6091_s7 + $0x90] sm:$0xff]  ;;  %v373_v38 = vld [vmem:[%s6091_s7] sm:$0xff]  ;;  %v392_v39 = vld [vmem:[%s6091_s7 + $0x98] sm:$0xff] }
  0x18   : > { %3739 = vmatmul.msk.bf16.vlgmr.msra.gmra.mxu0 %vm759_vm0, %v4145_v13  ;;  %3755 = vmatmul.msk.bf16.vlgmr.msra.gmra.mxu1 %vm759_vm0, %v4145_v13  ;;  %v375_v37 = vld [vmem:[%s6091_s7 + $0x10] sm:$0xff]  ;;  %v374_v40 = vld [vmem:[%s6091_s7 + $0x8] sm:$0xff]  ;;  %v4149_v41 = vld [vmem:[%s6085_s1 + $0x20] sm:$0xff] }
  0x19   : > { %v390_v42 = vld [vmem:[%s6091_s7 + $0x88] sm:$0xff]  ;;  %v389_v43 = vld [vmem:[%s6091_s7 + $0x80] sm:$0xff]  ;;  %v419_v44 = vld [vmem:[%s6091_s7 + $0x170] sm:$0xff] }
  0x1a   : > { %v417_v45 = vld [vmem:[%s6091_s7 + $0x160] sm:$0xff]  ;;  %v420_v46 = vld [vmem:[%s6091_s7 + $0x178] sm:$0xff]  ;;  %v418_v47 = vld [vmem:[%s6091_s7 + $0x168] sm:$0xff] }
  0x1b   : > { %v4150_v48 = vld [vmem:[%s6085_s1 + $0x28] sm:$0xff]  ;;  %v416_v50 = vld [vmem:[%s6091_s7 + $0x158] sm:$0xff]  ;;  %v415_v51 = vld [vmem:[%s6091_s7 + $0x150] sm:$0xff] }
  0x1c   : > { %v413_v52 = vld [vmem:[%s6091_s7 + $0x140] sm:$0xff]  ;;  %v411_v53 = vld [vmem:[%s6091_s7 + $0x130] sm:$0xff]  ;;  %v414_v55 = vld [vmem:[%s6091_s7 + $0x148] sm:$0xff] }
  0x1d   : > { %v412_v56 = vld [vmem:[%s6091_s7 + $0x138] sm:$0xff]  ;;  %v4151_v57 = vld [vmem:[%s6085_s1 + $0x30] sm:$0xff]  ;;  %v410_v58 = vld [vmem:[%s6091_s7 + $0x128] sm:$0xff] }
  0x1e   : > { %656 = vperm.xlu1 %4287, %v402_v14   ;;  %v409_v59 = vld [vmem:[%s6091_s7 + $0x120] sm:$0xff]  ;;  %v407_v60 = vld [vmem:[%s6091_s7 + $0x110] sm:$0xff]  ;;  %v408_v1 = vld [vmem:[%s6091_s7 + $0x118] sm:$0xff] }
  0x1f   : > { %651 = vperm.xlu0 %4286, %v401_v15   ;;  %561 = vperm.xlu2 %4288, %v383_v16   ;;  %v405_v0 = vld [vmem:[%s6091_s7 + $0x100] sm:$0xff]  ;;  %v406_v2 = vld [vmem:[%s6091_s7 + $0x108] sm:$0xff]  ;;  %v4152_v3 = vld [vmem:[%s6085_s1 + $0x38] sm:$0xff] }
  0x20   : > { %v428_v7 = vld [vmem:[%s6091_s7 + $0x1b8] sm:$0xff]  ;;  %v427_v8 = vld [vmem:[%s6091_s7 + $0x1b0] sm:$0xff]  ;;  %v425_v9 = vld [vmem:[%s6091_s7 + $0x1a0] sm:$0xff] }
  0x21   : > { %v423_v13 = vld [vmem:[%s6091_s7 + $0x190] sm:$0xff]  ;;  %v426_v14 = vld [vmem:[%s6091_s7 + $0x1a8] sm:$0xff]  ;;  %v424_v15 = vld [vmem:[%s6091_s7 + $0x198] sm:$0xff] }
  0x22   : > { %v4153_v16 = vld [vmem:[%s6085_s1 + $0x40] sm:$0xff] }
  0x26   : > { %641 = vperm.xlu1 %4287, %v399_v17  }
  0x27   : > { %566 = vperm.xlu0 %4286, %v384_v18   ;;  %646 = vperm.xlu2 %4288, %v400_v19  }
  0x28   : > { %3740 = vmatmul.msk.bf16.gmra.mxu0 %vm759_vm0, %v4146_v20  ;;  %3756 = vmatmul.msk.bf16.gmra.mxu1 %vm759_vm0, %v4146_v20 }
  0x2e   : > { %556 = vperm.xlu1 %4287, %v382_v21   ;;  %v422_v21 = vld [vmem:[%s6091_s7 + $0x188] sm:$0xff] }
  0x2f   : > { %631 = vperm.xlu2 %4288, %v397_v22   ;;  %551 = vperm.xlu0 %4286, %v381_v23   ;;  %v421_v23 = vld [vmem:[%s6091_s7 + $0x180] sm:$0xff] }
  0x36   : > { %541 = vperm.xlu1 %4287, %v379_v24   ;;  %v443_v24 = vld [vmem:[%s6091_s7 + $0x230] sm:$0xff] }
  0x37   : > { %636 = vperm.xlu0 %4286, %v398_v25   ;;  %546 = vperm.xlu2 %4288, %v380_v26  }
  0x38   : > { %3741 = vmatmul.msk.bf16.gmra.mxu0 %vm759_vm0, %v4147_v27  ;;  %3757 = vmatmul.msk.bf16.gmra.mxu1 %vm759_vm0, %v4147_v27 }
  0x3e   : > { %626 = vperm.xlu1 %4287, %v396_v28  }
  0x3f   : > { %621 = vperm.xlu0 %4286, %v395_v29   ;;  %531 = vperm.xlu2 %4288, %v377_v30   ;;  %v459_v29 = vld [vmem:[%s6091_s7 + $0x2b0] sm:$0xff]  ;;  %v444_v30 = vld [vmem:[%s6091_s7 + $0x238] sm:$0xff] }
  0x46   : > { %611 = vperm.xlu1 %4287, %v393_v31   ;;  %v460_v31 = vld [vmem:[%s6091_s7 + $0x2b8] sm:$0xff] }
  0x47   : > { %536 = vperm.xlu0 %4286, %v378_v32   ;;  %616 = vperm.xlu2 %4288, %v394_v33   ;;  %v4154_v32 = vld [vmem:[%s6085_s1 + $0x48] sm:$0xff] }
  0x48   : > { %3742 = vmatmul.msk.bf16.gmra.mxu0 %vm759_vm0, %v4148_v34  ;;  %3758 = vmatmul.msk.bf16.gmra.mxu1 %vm759_vm0, %v4148_v34 }
  0x4e   : > { %526 = vperm.xlu1 %4287, %v376_v35  }
  0x4f   : > { %601 = vperm.xlu2 %4288, %v391_v36   ;;  %521 = vperm.xlu0 %4286, %v375_v37  }
  0x56   : > { %511 = vperm.xlu1 %4287, %v373_v38   ;;  %v442_v38 = vld [vmem:[%s6091_s7 + $0x228] sm:$0xff] }
  0x57   : > { %606 = vperm.xlu0 %4286, %v392_v39   ;;  %516 = vperm.xlu2 %4288, %v374_v40   ;;  %v441_v39 = vld [vmem:[%s6091_s7 + $0x220] sm:$0xff] }
  0x58   : > { %3743 = vmatmul.msk.bf16.gmra.mxu0 %vm759_vm0, %v4149_v41  ;;  %3759 = vmatmul.msk.bf16.gmra.mxu1 %vm759_vm0, %v4149_v41  ;;  %v457_v40 = vld [vmem:[%s6091_s7 + $0x2a0] sm:$0xff] }
  0x5e   : > { %596 = vperm.xlu1 %4287, %v390_v42  }
  0x5f   : > { %591 = vperm.xlu0 %4286, %v389_v43   ;;  %1702 = vperm.xlu2 %4288, %v419_v44  }
  0x66   : > { %1692 = vperm.xlu1 %4287, %v417_v45  }
  0x67   : > { %1707 = vperm.xlu0 %4286, %v420_v46   ;;  %1697 = vperm.xlu2 %4288, %v418_v47   ;;  %v439_v46 = vld [vmem:[%s6091_s7 + $0x210] sm:$0xff]  ;;  %v458_v47 = vld [vmem:[%s6091_s7 + $0x2a8] sm:$0xff] }
  0x68   : > { %3744 = vmatmul.msk.bf16.gmra.mxu0 %vm759_vm0, %v4150_v48  ;;  %3760 = vmatmul.msk.bf16.gmra.mxu1 %vm759_vm0, %v4150_v48  ;;  %v440_v48 = vld [vmem:[%s6091_s7 + $0x218] sm:$0xff] }
  0x69   : > { %v4521_v49 = vpop.permute.xlu2 %571 }
  0x6e   : > { %1687 = vperm.xlu1 %4287, %v416_v50   ;;  %v4155_v50 = vld [vmem:[%s6085_s1 + $0x50] sm:$0xff] }
  0x6f   : > { %1682 = vperm.xlu0 %4286, %v415_v51   ;;  %1672 = vperm.xlu2 %4288, %v413_v52  }
  0x71   : > { %v4535_v54 = vpop.permute.xlu2 %576 }
  0x76   : > { %1662 = vperm.xlu1 %4287, %v411_v53  }
  0x77   : > { %1677 = vperm.xlu0 %4286, %v414_v55   ;;  %1667 = vperm.xlu2 %4288, %v412_v56  }
  0x78   : > { %3745 = vmatmul.msk.bf16.gmra.mxu0 %vm759_vm0, %v4151_v57  ;;  %3761 = vmatmul.msk.bf16.gmra.mxu1 %vm759_vm0, %v4151_v57  ;;  %v456_v57 = vld [vmem:[%s6091_s7 + $0x298] sm:$0xff] }
  0x79   : > { %v4557_v61 = vpop.permute.xlu2 %561 }
  0x7e   : > { %1657 = vperm.xlu1 %4287, %v410_v58  }
  0x7f   : > { %1652 = vperm.xlu0 %4286, %v409_v59   ;;  %1642 = vperm.xlu2 %4288, %v407_v60   ;;  %v455_v59 = vld [vmem:[%s6091_s7 + $0x290] sm:$0xff]  ;;  %v437_v60 = vld [vmem:[%s6091_s7 + $0x200] sm:$0xff] }
  0x80   : > { %v4559_v62 = vpop.permute.xlu1 %661 }
  0x81   : > { %v4561_v63 = vpop.permute.xlu0 %581  ;;  %v4575_v4 = vpop.permute.xlu2 %646 }
  0x86   : > { %1632 = vperm.xlu1 %4287, %v405_v0  }
  0x87   : > { %1647 = vperm.xlu0 %4286, %v408_v1   ;;  %1637 = vperm.xlu2 %4288, %v406_v2  }
  0x88   : > { %v4577_v5 = vpop.permute.xlu1 %666  ;;  %3746 = vmatmul.msk.bf16.gmra.mxu0 %vm759_vm0, %v4152_v3  ;;  %3762 = vmatmul.msk.bf16.gmra.mxu1 %vm759_vm0, %v4152_v3 }
  0x89   : > { %v4580_v6 = vpop.permute.xlu0 %586  ;;  %v4596_v12 = vpop.permute.xlu2 %631 }
  0x8e   : > { %1835 = vperm.xlu1 %4287, %v428_v7  }
  0x8f   : > { %1830 = vperm.xlu0 %4286, %v427_v8   ;;  %1820 = vperm.xlu2 %4288, %v425_v9  }
  0x90   : > { %v4592_v10 = vpop.permute.xlu1 %656 }
  0x91   : > { %v4594_v11 = vpop.permute.xlu0 %651  ;;  %v4623_v22 = vpop.permute.xlu2 %546 }
  0x95   : > { %v4610_v17 = vpop.f32.mrf.mxu0  ;;  %v4612_v18 = vpop.f32.mrf.mxu1 }
  0x96   : > { %1810 = vperm.xlu1 %4287, %v423_v13  }
  0x97   : > { %1825 = vperm.xlu0 %4286, %v426_v14   ;;  %1815 = vperm.xlu2 %4288, %v424_v15  }
  0x98   : > { %v4614_v19 = vpop.permute.xlu1 %641  ;;  %3747 = vmatmul.msk.bf16.gmra.mxu0 %vm759_vm0, %v4153_v16  ;;  %3763 = vmatmul.msk.bf16.gmra.mxu1 %vm759_vm0, %v4153_v16 }
  0x99   : > { %v4617_v20 = vpop.permute.xlu0 %566  ;;  %v4651_v34 = vpop.permute.xlu2 %531 }
  0x9d   : > { %v4631_v25 = vpop.f32.mrf.mxu0  ;;  %v4633_v26 = vpop.f32.mrf.mxu1 }
  0x9e   : > { %1805 = vperm.xlu1 %4287, %v422_v21   ;;  %v453_v21 = vld [vmem:[%s6091_s7 + $0x280] sm:$0xff] }
  0x9f   : > { %1800 = vperm.xlu0 %4286, %v421_v23   ;;  %2661 = vperm.xlu2 %4288, %v443_v24  }
  0xa0   : > { %v4635_v27 = vpop.permute.xlu1 %556 }
  0xa1   : > { %v4637_v28 = vpop.permute.xlu0 %551  ;;  %v4672_v43 = vpop.permute.xlu2 %616 }
  0xa5   : > { %v822_v33 = vpop.f32.mrf.mxu0  ;;  %v4653_v35 = vpop.f32.mrf.mxu1 }
  0xa6   : > { %2741 = vperm.xlu1 %4287, %v459_v29   ;;  %v438_v29 = vld [vmem:[%s6091_s7 + $0x208] sm:$0xff] }
  0xa7   : > { %2666 = vperm.xlu0 %4286, %v444_v30   ;;  %2746 = vperm.xlu2 %4288, %v460_v31   ;;  %v454_v30 = vld [vmem:[%s6091_s7 + $0x288] sm:$0xff]  ;;  %v4156_v31 = vld [vmem:[%s6085_s1 + $0x58] sm:$0xff] }
  0xa8   : > { %v4655_v36 = vpop.permute.xlu1 %541  ;;  %3748 = vmatmul.msk.bf16.gmra.mxu0 %vm759_vm0, %v4154_v32  ;;  %3764 = vmatmul.msk.bf16.gmra.mxu1 %vm759_vm0, %v4154_v32 }
  0xa9   : > { %v4658_v37 = vpop.permute.xlu0 %636  ;;  %v4698_v56 = vpop.permute.xlu2 %601 }
  0xad   : > { %v824_v41 = vpop.f32.mrf.mxu0  ;;  %v4670_v42 = vpop.f32.mrf.mxu1 }
  0xae   : > { %2656 = vperm.xlu1 %4287, %v442_v38  }
  0xaf   : > { %2651 = vperm.xlu0 %4286, %v441_v39   ;;  %2731 = vperm.xlu2 %4288, %v457_v40  }
  0xb0   : > { %v4674_v44 = vpop.permute.xlu1 %626 }
  0xb1   : > { %v4676_v45 = vpop.permute.xlu0 %621  ;;  %v4724_v23 = vpop.permute.xlu2 %516 }
  0xb2   : > { %v820_v39 = vadd.f32 %v4631_v25, %v4724_v23  ;;  %v435_v25 = vld [vmem:[%s6091_s7 + $0x1f0] sm:$0xff] }
  0xb5   : > { %v827_v51 = vpop.f32.mrf.mxu0  ;;  %v4690_v52 = vpop.f32.mrf.mxu1 }
  0xb6   : > { %2641 = vperm.xlu1 %4287, %v439_v46   ;;  %v828_v58 = vadd.f32 %v827_v51, %v4651_v34  ;;  %v988_v46 = vmax.f32 %v820_v39, 0.0  ;;  %v451_v51 = vld [vmem:[%s6091_s7 + $0x270] sm:$0xff] }
  0xb7   : > { %2736 = vperm.xlu0 %4286, %v458_v47   ;;  %2646 = vperm.xlu2 %4288, %v440_v48   ;;  %v436_v48 = vld [vmem:[%s6091_s7 + $0x1f8] sm:$0xff]  ;;  %v447_v39 = vld [vmem:[%s6091_s7 + $0x250] sm:$0xff] }
  0xb8   : > { %v4692_v53 = vpop.permute.xlu1 %611  ;;  %3749 = vmatmul.msk.bf16.gmra.mxu0 %vm759_vm0, %v4155_v50  ;;  %3765 = vmatmul.msk.bf16.gmra.mxu1 %vm759_vm0, %v4155_v50  ;;  %v994_v3 = vmax.f32 %v828_v58, 0.0 }
  0xb9   : > { %v4695_v55 = vpop.permute.xlu0 %536 }
  0xbd   : > { %v829_v0 = vpop.f32.mrf.mxu0  ;;  %v4711_v2 = vpop.f32.mrf.mxu1 }
  0xbe   : > { %v830_v1 = vadd.f32 %v829_v0, %v4695_v55  ;;  %2726 = vperm.xlu1 %4287, %v456_v57  }
  0xbf   : > { %2721 = vperm.xlu0 %4286, %v455_v59   ;;  %2631 = vperm.xlu2 %4288, %v437_v60  }
  0xc0   : > { %v996_v7 = vmax.f32 %v830_v1, 0.0  ;;  %v4713_v8 = vpop.permute.xlu1 %526 }
  0xc1   : > { %v825_v9 = vadd.f32 %v824_v41, %v4713_v8  ;;  %v4716_v13 = vpop.permute.xlu0 %521 }
  0xc2   : > { %v823_v14 = vadd.f32 %v822_v33, %v4716_v13  ;;  %v4719_v15 = vpack.c.bf16 %v996_v7, %v994_v3  ;;  %v433_v3 = vld [vmem:[%s6091_s7 + $0x1e0] sm:$0xff]  ;;  %v452_v7 = vld [vmem:[%s6091_s7 + $0x278] sm:$0xff] }
  0xc3   : > { %v992_v16 = vmax.f32 %v825_v9, 0.0  ;;  %v434_v9 = vld [vmem:[%s6091_s7 + $0x1e8] sm:$0xff] }
  0xc4   : > { %v990_v24 = vmax.f32 %v823_v14, 0.0  ;;  %v4157_v14 = vld [vmem:[%s6085_s1 + $0x60] sm:$0xff] }
  0xc5   : > { %v832_v32 = vpop.f32.mrf.mxu0  ;;  %v4735_v33 = vpop.f32.mrf.mxu1 }
  0xc6   : > { %2711 = vperm.xlu1 %4287, %v453_v21   ;;  %v4737_v38 = vpack.c.bf16 %v992_v16, %v990_v24  ;;  %v833_v50 = vadd.f32 %v832_v32, %v4655_v36  ;;  %v450_v24 = vld [vmem:[%s6091_s7 + $0x268] sm:$0xff] }
  0xc7   : > { %2636 = vperm.xlu0 %4286, %v438_v29   ;;  %2716 = vperm.xlu2 %4288, %v454_v30   ;;  %v449_v29 = vld [vmem:[%s6091_s7 + $0x260] sm:$0xff]  ;;  %v431_v30 = vld [vmem:[%s6091_s7 + $0x1d0] sm:$0xff] }
  0xc8   : > { %v4741_v40 = vpop.permute.xlu1 %511  ;;  %3750 = vmatmul.msk.bf16.gmra.mxu0 %vm759_vm0, %v4156_v31  ;;  %3766 = vmatmul.msk.bf16.gmra.mxu1 %vm759_vm0, %v4156_v31  ;;  %v998_v60 = vmax.f32 %v833_v50, 0.0 }
  0xc9   : > { %v818_v41 = vadd.f32 %v4610_v17, %v4741_v40 }
  0xcb   : > { %v986_v47 = vmax.f32 %v818_v41, 0.0  ;;  %v432_v41 = vld [vmem:[%s6091_s7 + $0x1d8] sm:$0xff] }
  0xcd   : > { %v834_v57 = vpop.f32.mrf.mxu0  ;;  %v4757_v17 = vpack.c.bf16 %v988_v46, %v986_v47  ;;  %v923_v59 = vpop.f32.mrf.mxu1  ;;  %v448_v46 = vld [vmem:[%s6091_s7 + $0x258] sm:$0xff]  ;;  %v4158_v47 = vld [vmem:[%s6085_s1 + $0x68] sm:$0xff] }
  0xce   : > { %v835_v58 = vadd.f32 %v834_v57, %v4623_v22  ;;  %2626 = vperm.xlu1 %4287, %v436_v48   ;;  %v445_v57 = vld [vmem:[%s6091_s7 + $0x240] sm:$0xff] }
  0xcf   : > { %2621 = vperm.xlu0 %4286, %v435_v25   ;;  %2701 = vperm.xlu2 %4288, %v451_v51   ;;  %v430_v25 = vld [vmem:[%s6091_s7 + $0x1c8] sm:$0xff]  ;;  %v429_v51 = vld [vmem:[%s6091_s7 + $0x1c0] sm:$0xff] }
  0xd0   : > { %v1000_v0 = vmax.f32 %v835_v58, 0.0 }
  0xd2   : > { %v4760_v1 = vpack.c.bf16 %v1000_v0, %v998_v60  ;;  %v461_v0 = vld [vmem:[%s6091_s7 + $0x2c0] sm:$0xff] }
  0xd5   : > { %v4774_v16 = vpop.f32.mrf.mxu0  ;;  %v4776_v21 = vpop.f32.mrf.mxu1 }
  0xd6   : > { %2611 = vperm.xlu1 %4287, %v433_v3   ;;  %v446_v3 = vld [vmem:[%s6091_s7 + $0x248] sm:$0xff] }
  0xd7   : > { %2706 = vperm.xlu0 %4286, %v452_v7   ;;  %2616 = vperm.xlu2 %4288, %v434_v9   ;;  %v462_v7 = vld [vmem:[%s6091_s7 + $0x2c8] sm:$0xff]  ;;  %v4159_v9 = vld [vmem:[%s6085_s1 + $0x70] sm:$0xff] }
  0xd8   : > { %3751 = vmatmul.msk.bf16.gmra.mxu0 %vm759_vm0, %v4157_v14  ;;  %3767 = vmatmul.msk.bf16.gmra.mxu1 %vm759_vm0, %v4157_v14 }
  0xdd   : > { %v4789_v31 = vpop.f32.mrf.mxu0  ;;  %v4791_v32 = vpop.f32.mrf.mxu1 }
  0xde   : > { %2696 = vperm.xlu1 %4287, %v450_v24  }
  0xdf   : > { %2691 = vperm.xlu0 %4286, %v449_v29   ;;  %2601 = vperm.xlu2 %4288, %v431_v30   ;;  %v909_v29 = vadd.f32 %v4633_v26, %v4724_v23  ;;  %v907_v30 = vadd.f32 %v4612_v18, %v4741_v40  ;;  %v465_v26 = vld [vmem:[%s6091_s7 + $0x2e0] sm:$0xff] }
  0xe1   : > { %v989_v18 = vmax.f32 %v909_v29, 0.0  ;;  %v987_v23 = vmax.f32 %v907_v30, 0.0 }
  0xe5   : > { %v4805_v48 = vpop.f32.mrf.mxu0  ;;  %v4807_v50 = vpop.f32.mrf.mxu1 }
  0xe6   : > { %2681 = vperm.xlu1 %4287, %v447_v39   ;;  %v922_v39 = vadd.f32 %v4735_v33, %v4655_v36  ;;  %v917_v36 = vadd.f32 %v4690_v52, %v4651_v34  ;;  %v467_v34 = vld [vmem:[%s6091_s7 + $0x2f0] sm:$0xff] }
  0xe7   : > { %2606 = vperm.xlu0 %4286, %v432_v41   ;;  %2686 = vperm.xlu2 %4288, %v448_v46   ;;  %v924_v41 = vadd.f32 %v923_v59, %v4623_v22  ;;  %v464_v46 = vld [vmem:[%s6091_s7 + $0x2d8] sm:$0xff]  ;;  %v919_v22 = vadd.f32 %v4711_v2, %v4695_v55  ;;  %v466_v55 = vld [vmem:[%s6091_s7 + $0x2e8] sm:$0xff] }
  0xe8   : > { %3752 = vmatmul.msk.bf16.gmra.mxu0 %vm759_vm0, %v4158_v47  ;;  %3768 = vmatmul.msk.bf16.gmra.mxu1 %vm759_vm0, %v4158_v47  ;;  %v463_v47 = vld [vmem:[%s6091_s7 + $0x2d0] sm:$0xff]  ;;  %v999_v59 = vmax.f32 %v922_v39, 0.0  ;;  %v468_v2 = vld [vmem:[%s6091_s7 + $0x2f8] sm:$0xff]  ;;  %v470_v39 = vld [vmem:[%s6091_s7 + $0x308] sm:$0xff] }
  0xed   : > { %v4820_v58 = vpop.f32.mrf.mxu0  ;;  %v4822_v60 = vpop.f32.mrf.mxu1 }
  0xee   : > { %2596 = vperm.xlu1 %4287, %v430_v25   ;;  %v1001_v25 = vmax.f32 %v924_v41, 0.0 }
  0xef   : > { %2591 = vperm.xlu0 %4286, %v429_v51   ;;  %2671 = vperm.xlu2 %4288, %v445_v57   ;;  %v4860_v51 = vpack.c.bf16 %v989_v18, %v987_v23  ;;  %v995_v57 = vmax.f32 %v917_v36, 0.0 }
  0xf0   : > { %v4869_v52 = vpack.c.bf16 %v1001_v25, %v999_v59 }
  0xf5   : > { %v4836_v14 = vpop.f32.mrf.mxu0  ;;  %v936_v24 = vpop.f32.mrf.mxu1 }
  0xf6   : > { %3235 = vperm.xlu1 %4287, %v461_v0   ;;  %v997_v0 = vmax.f32 %v919_v22, 0.0  ;;  %v937_v18 = vadd.f32 %v936_v24, %v4521_v49  ;;  %v848_v24 = vadd.f32 %v4836_v14, %v4521_v49  ;;  %v927_v49 = vadd.f32 %v4776_v21, %v4637_v28 }
  0xf7   : > { %2676 = vperm.xlu0 %4286, %v446_v3   ;;  %3240 = vperm.xlu2 %4288, %v462_v7   ;;  %v914_v3 = vadd.f32 %v4670_v42, %v4713_v8  ;;  %v912_v7 = vadd.f32 %v4653_v35, %v4716_v13  ;;  %v4160_v42 = vld [vmem:[%s6085_s1 + $0x78] sm:$0xff]  ;;  %v843_v14 = vadd.f32 %v4805_v48, %v4557_v61 }
  0xf8   : > { %3753 = vmatmul.msk.bf16.gmra.mxu0 %vm759_vm0, %v4159_v9  ;;  %3769 = vmatmul.msk.bf16.gmra.mxu1 %vm759_vm0, %v4159_v9  ;;  %v4880_v29 = vpack.c.bf16 %v997_v0, %v995_v57  ;;  %v932_v0 = vadd.f32 %v4807_v50, %v4557_v61  ;;  %v473_v50 = vld [vmem:[%s6091_s7 + $0x320] sm:$0xff]  ;;  %v840_v61 = vadd.f32 %v4789_v31, %v4635_v27 }
  0xf9   : > { %v993_v13 = vmax.f32 %v914_v3, 0.0  ;;  %v991_v9 = vmax.f32 %v912_v7, 0.0 }
  0xfb   : > { %v4888_v41 = vpack.c.bf16 %v993_v13, %v991_v9 }
  0xfd   : > { %v849_v40 = vpop.f32.mrf.mxu0  ;;  %v938_v33 = vpop.f32.mrf.mxu1 }
  0xfe   : > { %3250 = vperm.xlu1 %4287, %v464_v46   ;;  %v939_v23 = vadd.f32 %v938_v33, %v4535_v54  ;;  %v850_v22 = vadd.f32 %v849_v40, %v4535_v54  ;;  %v934_v54 = vadd.f32 %v4822_v60, %v4617_v20  ;;  %v1011_v40 = vmax.f32 %v937_v18, 0.0 }
  0xff   : > { %3245 = vperm.xlu0 %4286, %v463_v47   ;;  %3255 = vperm.xlu2 %4288, %v465_v26   ;;  %v469_v47 = vld [vmem:[%s6091_s7 + $0x300] sm:$0xff]  ;;  %v471_v26 = vld [vmem:[%s6091_s7 + $0x310] sm:$0xff]  ;;  %v1010_v60 = vmax.f32 %v848_v24, 0.0 }
 0x100   : > { %v1013_v7 = vmax.f32 %v939_v23, 0.0  ;;  %v1009_v13 = vmax.f32 %v934_v54, 0.0  ;;  %v1004_v23 = vmax.f32 %v840_v61, 0.0 }
 0x102   : > { %v1063_v9 = vpack.c.bf16 %v1013_v7, %v1011_v40 }
 0x105   : > { %v852_v8 = vpop.f32.mrf.mxu0  ;;  %v941_v35 = vpop.f32.mrf.mxu1 }
 0x106   : > { %3265 = vperm.xlu1 %4287, %v467_v34   ;;  %v942_v30 = vadd.f32 %v941_v35, %v4561_v63  ;;  %v853_v46 = vadd.f32 %v852_v8, %v4561_v63  ;;  %v472_v8 = vld [vmem:[%s6091_s7 + $0x318] sm:$0xff]  ;;  %v1007_v35 = vmax.f32 %v932_v0, 0.0 }
 0x107   : > { %3260 = vperm.xlu0 %4286, %v466_v55   ;;  %3270 = vperm.xlu2 %4288, %v468_v2   ;;  %v845_v55 = vadd.f32 %v4820_v58, %v4617_v20  ;;  %v474_v20 = vld [vmem:[%s6091_s7 + $0x328] sm:$0xff]  ;;  %v929_v58 = vadd.f32 %v4791_v32, %v4635_v27  ;;  %v1006_v32 = vmax.f32 %v843_v14, 0.0  ;;  %v476_v27 = vld [vmem:[%s6091_s7 + $0x338] sm:$0xff] }
 0x108   : > { %3754 = vmatmul.msk.bf16.gmra.mxu0 %vm759_vm0, %v4160_v42  ;;  %3770 = vmatmul.msk.bf16.gmra.mxu1 %vm759_vm0, %v4160_v42  ;;  %v1015_v63 = vmax.f32 %v942_v30, 0.0  ;;  %v1014_v3 = vmax.f32 %v853_v46, 0.0  ;;  %v838_v46 = vadd.f32 %v4774_v16, %v4637_v28  ;;  %v1061_v18 = vpack.c.bf16 %v1009_v13, %v1007_v35 }
 0x109   : > { %v1008_v48 = vmax.f32 %v845_v55, 0.0 }
 0x10a   : > { %v1002_v31 = vmax.f32 %v838_v46, 0.0 }
 0x10d   : > { %v854_v36 = vpop.f32.mrf.mxu0  ;;  %v943_v25 = vpop.f32.mrf.mxu1 }
 0x10e   : > { %v855_v59 = vadd.f32 %v854_v36, %v4580_v6  ;;  %3280 = vperm.xlu1 %4287, %v470_v39   ;;  %v944_v57 = vadd.f32 %v943_v25, %v4580_v6  ;;  %v1012_v6 = vmax.f32 %v850_v22, 0.0  ;;  %v1060_v36 = vpack.c.bf16 %v1008_v48, %v1006_v32  ;;  %v475_v22 = vld [vmem:[%s6091_s7 + $0x330] sm:$0xff] }
 0x10f   : > { %3275 = vperm.xlu0 %4286, %v469_v47   ;;  %3285 = vperm.xlu2 %4288, %v471_v26   ;;  %v1003_v47 = vmax.f32 %v927_v49, 0.0  ;;  %v1005_v26 = vmax.f32 %v929_v58, 0.0  ;;  %v1058_v25 = vpack.c.bf16 %v1004_v23, %v1002_v31 }
 0x110   : > { %v1016_v33 = vmax.f32 %v855_v59, 0.0  ;;  %v1017_v34 = vmax.f32 %v944_v57, 0.0  ;;  %v1062_v39 = vpack.c.bf16 %v1012_v6, %v1010_v60 }
 0x111   : > { %v1059_v16 = vpack.c.bf16 %v1005_v26, %v1003_v47 }
 0x112   : > { %v1064_v2 = vpack.c.bf16 %v1016_v33, %v1014_v3  ;;  %v1065_v42 = vpack.c.bf16 %v1017_v34, %v1015_v63 }
 0x114   : > { %1274 = vmatpush.bf16.msra.mxu2 %v1064_v2  ;;  %1452 = vmatpush.bf16.msrb.mxu0 %v1065_v42 }
 0x115   : > { %v4925_v21 = vpop.f32.mrf.mxu0  ;;  %v4929_v30 = vpop.f32.mrf.mxu1 }
 0x116   : > { %3295 = vperm.xlu1 %4287, %v473_v50  }
 0x117   : > { %3290 = vperm.xlu0 %4286, %v472_v8   ;;  %3300 = vperm.xlu2 %4288, %v474_v20   ;;  %v3773_v8 = vld [vmem:[%s6086_s2] sm:$0xf]  ;;  %v4162_v20 = vld [vmem:[%s6086_s2 + $0x4] sm:$0xf0] }
 0x118   : > { %1275 = vmatpush.bf16.msra.mxu2 %v1062_v39  ;;  %1453 = vmatpush.bf16.msrb.mxu0 %v1063_v9  ;;  %v3774_v58 = vor.u32 %v4162_v20, %v3773_v8 }
 0x11c   : > { %1276 = vmatpush.bf16.msra.mxu2 %v1060_v36  ;;  %1454 = vmatpush.bf16.msrb.mxu0 %v1061_v18 }
 0x11d   : > { %v4939_v28 = vpop.f32.mrf.mxu0  ;;  %v4941_v59 = vpop.f32.mrf.mxu1 }
 0x11e   : > { %3310 = vperm.xlu1 %4287, %v476_v27  }
 0x11f   : > { %3305 = vperm.xlu0 %4286, %v475_v22  }
 0x120   : > { %1277 = vmatpush.bf16.msra.mxu2 %v1058_v25  ;;  %1455 = vmatpush.bf16.msrb.mxu0 %v1059_v16 }
 0x124   : > { %1278 = vmatpush.bf16.msra.mxu2 %v4760_v1  ;;  %1456 = vmatpush.bf16.msrb.mxu0 %v4869_v52 }
 0x125   : > { %v4945_v63 = vpop.f32.mrf.mxu0  ;;  %v4947_v57 = vpop.f32.mrf.mxu1 }
 0x128   : > { %1279 = vmatpush.bf16.msra.mxu2 %v4719_v15  ;;  %1457 = vmatpush.bf16.msrb.mxu0 %v4880_v29 }
 0x12c   : > { %1280 = vmatpush.bf16.msra.mxu2 %v4737_v38  ;;  %1458 = vmatpush.bf16.msrb.mxu0 %v4888_v41 }
 0x12d   : > { %v4953_v0 = vpop.f32.mrf.mxu0  ;;  %v4955_v24 = vpop.f32.mrf.mxu1 }
 0x130   : > { %1281 = vmatpush.bf16.msra.mxu2 %v4757_v17  ;;  %1459 = vmatpush.bf16.msrb.mxu0 %v4860_v51 }
 0x133   : > { %1282 = vmatmul.bf16.vlgmr.msra.gmra.mxu2 %v3774_v58  ;;  %1460 = vmatmul.bf16.vlgmr.msrb.gmra.mxu0 %v3774_v58 }
 0x135   : > { %v4959_v1 = vpop.f32.mrf.mxu0  ;;  %v4961_v52 = vpop.f32.mrf.mxu1 }
 0x13d   : > { %v4963_v3 = vpop.f32.mrf.mxu0  ;;  %v4965_v15 = vpop.f32.mrf.mxu1 }
 0x145   : > { %v4967_v29 = vpop.f32.mrf.mxu0  ;;  %v4969_v38 = vpop.f32.mrf.mxu1 }
 0x14d   : > { %v4971_v41 = vpop.f32.mrf.mxu0  ;;  %v4973_v33 = vpop.f32.mrf.mxu1 }
 0x155   : > { %v877_v54 = vpop.f32.mrf.mxu0  ;;  %v966_v17 = vpop.f32.mrf.mxu1 }
 0x15d   : > { %v879_v40 = vpop.f32.mrf.mxu0  ;;  %v968_v51 = vpop.f32.mrf.mxu1 }
 0x165   : > { %v882_v7 = vpop.f32.mrf.mxu0  ;;  %v971_v34 = vpop.f32.mrf.mxu1 }
 0x16d   : > { %v884_v55 = vpop.f32.mrf.mxu0  ;;  %v973_v6 = vpop.f32.mrf.mxu1 }
 0x16e   : > { %v974_v16 = vadd.f32 %v973_v6, %v4575_v4 }
 0x175   : > { %v887_v2 = vpop.f32.mrf.mxu0  ;;  %v976_v42 = vpop.f32.mrf.mxu1 }
 0x176   : > { %v888_v47 = vadd.f32 %v887_v2, %v4594_v11  ;;  %v977_v23 = vadd.f32 %v976_v42, %v4594_v11  ;;  %v3781_v11 = vld [vmem:[%s6086_s2 + $0x10] sm:$0xf] }
 0x178   : > { %v1043_v2 = vmax.f32 %v977_v23, 0.0 }
 0x17d   : > { %v889_v50 = vpop.f32.mrf.mxu0  ;;  %v978_v49 = vpop.f32.mrf.mxu1 }
 0x17e   : > { %v890_v61 = vadd.f32 %v889_v50, %v4592_v10  ;;  %v979_v46 = vadd.f32 %v978_v49, %v4592_v10  ;;  %v883_v10 = vadd.f32 %v882_v7, %v4614_v19  ;;  %v1042_v49 = vmax.f32 %v888_v47, 0.0 }
 0x17f   : > { %v967_v7 = vadd.f32 %v966_v17, %v4596_v12  ;;  %v607_v17 = vpop.permute.xlu0 %606 }
 0x180   : > { %v1044_v31 = vmax.f32 %v890_v61, 0.0  ;;  %v1045_v25 = vmax.f32 %v979_v46, 0.0  ;;  %v1038_v8 = vmax.f32 %v883_v10, 0.0  ;;  %v954_v23 = vadd.f32 %v4955_v24, %v607_v17 }
 0x182   : > { %v1078_v42 = vpack.c.bf16 %v1044_v31, %v1042_v49 }
 0x185   : > { %v892_v14 = vpop.f32.mrf.mxu0  ;;  %v981_v60 = vpop.f32.mrf.mxu1 }
 0x186   : > { %v893_v35 = vadd.f32 %v892_v14, %v4559_v62  ;;  %v982_v13 = vadd.f32 %v981_v60, %v4559_v62  ;;  %v885_v62 = vadd.f32 %v884_v55, %v4575_v4  ;;  %v4164_v55 = vld [vmem:[%s6086_s2 + $0x14] sm:$0xf0]  ;;  %v880_v4 = vadd.f32 %v879_v40, %v4658_v37 }
 0x187   : > { %v969_v14 = vadd.f32 %v968_v51, %v4658_v37  ;;  %v1041_v60 = vmax.f32 %v974_v16, 0.0  ;;  %v3782_v20 = vor.u32 %v4164_v55, %v3781_v11  ;;  %v875_v40 = vadd.f32 %v4971_v41, %v4674_v44 }
 0x188   : > { %v1046_v26 = vmax.f32 %v893_v35, 0.0  ;;  %v1047_v36 = vmax.f32 %v982_v13, 0.0  ;;  %v1040_v6 = vmax.f32 %v885_v62, 0.0  ;;  %v962_v35 = vadd.f32 %v4969_v38, %v4676_v45 }
 0x189   : > { %v1036_v13 = vmax.f32 %v880_v4, 0.0  ;;  %v964_v37 = vadd.f32 %v4973_v33, %v4674_v44  ;;  %v1035_v51 = vmax.f32 %v967_v7, 0.0  ;;  %v1037_v61 = vmax.f32 %v969_v14, 0.0  ;;  %1287 = vmatmul.bf16.gmra.mxu2 %v3782_v20  ;;  %1465 = vmatmul.bf16.gmra.mxu0 %v3782_v20  ;;  %v3797_v14 = vld [vmem:[%s6086_s2 + $0x30] sm:$0xf] }
 0x18a   : > { %v957_v38 = vadd.f32 %v4961_v52, %v4692_v53  ;;  %v870_v41 = vadd.f32 %v4963_v3, %v4672_v43  ;;  %v959_v44 = vadd.f32 %v4965_v15, %v4672_v43  ;;  %v1031_v33 = vmax.f32 %v962_v35, 0.0  ;;  %v4170_v35 = vld [vmem:[%s6086_s2 + $0x44] sm:$0xf0] }
 0x18b   : > { %v1075_v47 = vpack.c.bf16 %v1037_v61, %v1035_v51  ;;  %v952_v52 = vadd.f32 %v4947_v57, %v4698_v56  ;;  %v3789_v57 = vld [vmem:[%s6086_s2 + $0x20] sm:$0xf]  ;;  %v4172_v51 = vld [vmem:[%s6086_s2 + $0x54] sm:$0xf0] }
 0x18c   : > { %v1028_v3 = vmax.f32 %v870_v41, 0.0  ;;  %v1029_v43 = vmax.f32 %v959_v44, 0.0  ;;  %v4174_v41 = vld [vmem:[%s6086_s2 + $0x64] sm:$0xf0]  ;;  %v3807_v44 = vld [vmem:[%s6086_s2 + $0x48] sm:$0xf0] }
 0x18d   : > { %v894_v9 = vpop.f32.mrf.mxu0  ;;  %v983_v39 = vpop.f32.mrf.mxu1 }
 0x18e   : > { %v895_v48 = vadd.f32 %v894_v9, %v4577_v5  ;;  %v984_v32 = vadd.f32 %v983_v39, %v4577_v5  ;;  %v972_v5 = vadd.f32 %v971_v34, %v4614_v19  ;;  %v1079_v19 = vpack.c.bf16 %v1045_v25, %v1043_v2 }
 0x18f   : > { %v878_v34 = vadd.f32 %v877_v54, %v4596_v12  ;;  %v1076_v9 = vpack.c.bf16 %v1040_v6, %v1038_v8  ;;  %v873_v54 = vadd.f32 %v4967_v29, %v4676_v45  ;;  %v1032_v39 = vmax.f32 %v875_v40, 0.0  ;;  %v3783_v8 = vld [vmem:[%s6086_s2 + $0x18] sm:$0xf0] }
 0x190   : > { %v1048_v18 = vmax.f32 %v895_v48, 0.0  ;;  %v1049_v27 = vmax.f32 %v984_v32, 0.0  ;;  %v1039_v58 = vmax.f32 %v972_v5, 0.0  ;;  %v1033_v32 = vmax.f32 %v964_v37, 0.0  ;;  %v3813_v37 = vld [vmem:[%s6086_s2 + $0x50] sm:$0xf] }
 0x191   : > { %v1034_v48 = vmax.f32 %v878_v34, 0.0  ;;  %v868_v45 = vadd.f32 %v4959_v1, %v4692_v53  ;;  %v1030_v29 = vmax.f32 %v873_v54, 0.0  ;;  %v592_v53 = vpop.permute.xlu0 %591  ;;  %v597_v1 = vpop.permute.xlu1 %596  ;;  %v1025_v25 = vmax.f32 %v954_v23, 0.0  ;;  %v4163_v34 = vld [vmem:[%s6086_s2 + $0x14] sm:$0xf] }
 0x192   : > { %v1080_v22 = vpack.c.bf16 %v1048_v18, %v1046_v26  ;;  %v1081_v50 = vpack.c.bf16 %v1049_v27, %v1047_v36  ;;  %v1077_v12 = vpack.c.bf16 %v1041_v60, %v1039_v58  ;;  %v865_v26 = vadd.f32 %v4953_v0, %v607_v17  ;;  %v4166_v0 = vld [vmem:[%s6086_s2 + $0x24] sm:$0xf0]  ;;  %v4168_v60 = vld [vmem:[%s6086_s2 + $0x34] sm:$0xf0]  ;;  %v3805_v58 = vld [vmem:[%s6086_s2 + $0x40] sm:$0xf] }
 0x193   : > { %v1074_v46 = vpack.c.bf16 %v1036_v13, %v1034_v48  ;;  %v1072_v18 = vpack.c.bf16 %v1032_v39, %v1030_v29  ;;  %v1027_v36 = vmax.f32 %v957_v38, 0.0  ;;  %v1073_v15 = vpack.c.bf16 %v1033_v32, %v1031_v33  ;;  %v4165_v13 = vld [vmem:[%s6086_s2 + $0x24] sm:$0xf]  ;;  %v3799_v54 = vld [vmem:[%s6086_s2 + $0x38] sm:$0xf0] }
 0x194   : > { %1363 = vmatpush.bf16.msra.mxu3 %v1080_v22  ;;  %1541 = vmatpush.bf16.msrb.mxu1 %v1081_v50  ;;  %v863_v27 = vadd.f32 %v4945_v63, %v4698_v56  ;;  %v1026_v62 = vmax.f32 %v868_v45, 0.0  ;;  %v947_v24 = vadd.f32 %v4929_v30, %v592_v53  ;;  %v860_v31 = vadd.f32 %v4939_v28, %v597_v1  ;;  %v4161_v28 = vld [vmem:[%s6086_s2 + $0x4] sm:$0xf]  ;;  %v3821_v38 = vld [vmem:[%s6086_s2 + $0x60] sm:$0xf] }
 0x195   : > { %v1024_v22 = vmax.f32 %v865_v26, 0.0  ;;  %v949_v56 = vadd.f32 %v4941_v59, %v597_v1  ;;  %v1023_v63 = vmax.f32 %v952_v52, 0.0  ;;  %v1071_v50 = vpack.c.bf16 %v1029_v43, %v1027_v36  ;;  %v3775_v59 = vld [vmem:[%s6086_s2 + $0x8] sm:$0xf0]  ;;  %v3829_v32 = vld [vmem:[%s6086_s2 + $0x70] sm:$0xf] }
 0x196   : > { %v1070_v16 = vpack.c.bf16 %v1028_v3, %v1026_v62  ;;  %v858_v10 = vadd.f32 %v4925_v21, %v592_v53  ;;  %v1022_v49 = vmax.f32 %v863_v27, 0.0  ;;  %v3790_v5 = vor.u32 %v4166_v0, %v3789_v57  ;;  %v4171_v29 = vld [vmem:[%s6086_s2 + $0x54] sm:$0xf]  ;;  %v3815_v52 = vld [vmem:[%s6086_s2 + $0x58] sm:$0xf0]  ;;  %v5101_v3 = vpop.permute.xlu2 %1702 }
 0x197   : > { %v1020_v2 = vmax.f32 %v860_v31, 0.0  ;;  %v1019_v55 = vmax.f32 %v947_v24, 0.0  ;;  %v1021_v4 = vmax.f32 %v949_v56, 0.0  ;;  %v1069_v30 = vpack.c.bf16 %v1025_v25, %v1023_v63  ;;  %v3823_v23 = vld [vmem:[%s6086_s2 + $0x68] sm:$0xf0] }
 0x198   : > { %1364 = vmatpush.bf16.msra.mxu3 %v1078_v42  ;;  %1542 = vmatpush.bf16.msrb.mxu1 %v1079_v19  ;;  %v1068_v11 = vpack.c.bf16 %v1024_v22, %v1022_v49  ;;  %v1018_v6 = vmax.f32 %v858_v10, 0.0  ;;  %v3778_v7 = vor.u32 %v4161_v28, %v3775_v59  ;;  %v3798_v19 = vor.u32 %v4168_v60, %v3797_v14  ;;  %v4175_v57 = vld [vmem:[%s6086_s2 + $0x74] sm:$0xf]  ;;  %v3831_v0 = vld [vmem:[%s6086_s2 + $0x78] sm:$0xf0] }
 0x199   : > { %1292 = vmatmul.bf16.gmra.mxu2 %v3790_v5  ;;  %1470 = vmatmul.bf16.gmra.mxu0 %v3790_v5  ;;  %v1067_v42 = vpack.c.bf16 %v1021_v4, %v1019_v55  ;;  %v3786_v20 = vor.u32 %v4163_v34, %v3783_v8  ;;  %v3806_v40 = vor.u32 %v4170_v35, %v3805_v58  ;;  %v5123_v56 = vpop.permute.xlu0 %1707  ;;  %v3837_v49 = vld [vmem:[%s6086_s2 + $0x80] sm:$0xf]  ;;  %v4178_v5 = vld [vmem:[%s6086_s2 + $0x84] sm:$0xf0]  ;;  %v4177_v55 = vld [vmem:[%s6086_s2 + $0x84] sm:$0xf] }
 0x19a   : > { %v1066_v21 = vpack.c.bf16 %v1020_v2, %v1018_v6  ;;  %v3814_v61 = vor.u32 %v4172_v51, %v3813_v37  ;;  %v3822_v39 = vor.u32 %v4174_v41, %v3821_v38  ;;  %v3818_v26 = vor.u32 %v4171_v29, %v3815_v52  ;;  %v3839_v4 = vld [vmem:[%s6086_s2 + $0x88] sm:$0xf0]  ;;  %v4179_v37 = vld [vmem:[%s6086_s2 + $0x94] sm:$0xf]  ;;  %v3847_v51 = vld [vmem:[%s6086_s2 + $0x98] sm:$0xf0] }
 0x19b   : > { %v3834_v31 = vor.u32 %v4175_v57, %v3831_v0  ;;  %v3842_v6 = vor.u32 %v4177_v55, %v3839_v4 }
 0x19c   : > { %1365 = vmatpush.bf16.msra.mxu3 %v1076_v9  ;;  %1543 = vmatpush.bf16.msrb.mxu1 %v1077_v12  ;;  %v3791_v9 = vld [vmem:[%s6086_s2 + $0x28] sm:$0xf0]  ;;  %v4167_v12 = vld [vmem:[%s6086_s2 + $0x34] sm:$0xf] }
 0x19d   : > { %v3794_v17 = vor.u32 %v4165_v13, %v3791_v9  ;;  %v3802_v48 = vor.u32 %v4167_v12, %v3799_v54  ;;  %v3845_v13 = vld [vmem:[%s6086_s2 + $0x90] sm:$0xf]  ;;  %v4180_v9 = vld [vmem:[%s6086_s2 + $0x94] sm:$0xf0] }
 0x19e   : > { %v5111_v27 = vpop.permute.xlu2 %1697 }
 0x1a0   : > { %1366 = vmatpush.bf16.msra.mxu3 %v1074_v46  ;;  %1544 = vmatpush.bf16.msrb.mxu1 %v1075_v47  ;;  %v4169_v46 = vld [vmem:[%s6086_s2 + $0x44] sm:$0xf]  ;;  %v4176_v47 = vld [vmem:[%s6086_s2 + $0x74] sm:$0xf0] }
 0x1a1   : > { %v3810_v33 = vor.u32 %v4169_v46, %v3807_v44  ;;  %v3830_v45 = vor.u32 %v4176_v47, %v3829_v32  ;;  %v5135_v2 = vpop.permute.xlu0 %1682  ;;  %v3850_v46 = vor.u32 %v4179_v37, %v3847_v51  ;;  %v3861_v51 = vld [vmem:[%s6086_s2 + $0xb0] sm:$0xf] }
 0x1a4   : > { %1367 = vmatpush.bf16.msra.mxu3 %v1072_v18  ;;  %1545 = vmatpush.bf16.msrb.mxu1 %v1073_v15  ;;  %v4173_v18 = vld [vmem:[%s6086_s2 + $0x64] sm:$0xf]  ;;  %v5109_v15 = vpop.permute.xlu1 %1692 }
 0x1a5   : > { %v3826_v36 = vor.u32 %v4173_v18, %v3823_v23 }
 0x1a6   : > { %v5121_v24 = vpop.permute.xlu2 %1672 }
 0x1a8   : > { %1368 = vmatpush.bf16.msra.mxu3 %v1070_v16  ;;  %1546 = vmatpush.bf16.msrb.mxu1 %v1071_v50 }
 0x1a9   : > { %1297 = vmatmul.bf16.gmra.mxu2 %v3798_v19  ;;  %1475 = vmatmul.bf16.gmra.mxu0 %v3798_v19  ;;  %v5145_v60 = vpop.permute.xlu0 %1677 }
 0x1ac   : > { %1369 = vmatpush.bf16.msra.mxu3 %v1068_v11  ;;  %1547 = vmatpush.bf16.msrb.mxu1 %v1069_v30  ;;  %v5113_v1 = vpop.permute.xlu1 %1687  ;;  %v3838_v11 = vor.u32 %v4178_v5, %v3837_v49 }
 0x1ae   : > { %v5127_v25 = vpop.permute.xlu2 %1667 }
 0x1b0   : > { %1370 = vmatpush.bf16.msra.mxu3 %v1066_v21  ;;  %1548 = vmatpush.bf16.msrb.mxu1 %v1067_v42  ;;  %v1461_v43 = vpop.f32.mrf.mxu0 }
 0x1b3   : > { %1371 = vmatmul.bf16.vlgmr.msra.gmra.mxu3 %v3778_v7  ;;  %1549 = vmatmul.bf16.vlgmr.msrb.gmra.mxu1 %v3778_v7 }
 0x1b4   : > { %v5125_v63 = vpop.permute.xlu1 %1662 }
 0x1b6   : > { %v1283_v62 = vpop.f32.mrf.mxu2  ;;  %v1643_v28 = vpop.permute.xlu2 %1642 }
 0x1b8   : > { %v1463_v53 = vpop.f32.mrf.mxu0 }
 0x1b9   : > { %1302 = vmatmul.bf16.gmra.mxu2 %v3806_v40  ;;  %1480 = vmatmul.bf16.gmra.mxu0 %v3806_v40 }
 0x1bc   : > { %v5143_v30 = vpop.permute.xlu1 %1657 }
 0x1be   : > { %v1285_v22 = vpop.f32.mrf.mxu2  ;;  %v1638_v35 = vpop.permute.xlu2 %1637 }
 0x1c3   : > { %1376 = vmatmul.bf16.gmra.mxu3 %v3786_v20  ;;  %1554 = vmatmul.bf16.gmra.mxu1 %v3786_v20 }
 0x1c4   : > { %v1633_v34 = vpop.permute.xlu1 %1632 }
 0x1c9   : > { %1307 = vmatmul.bf16.gmra.mxu2 %v3814_v61  ;;  %1485 = vmatmul.bf16.gmra.mxu0 %v3814_v61 }
 0x1d3   : > { %1381 = vmatmul.bf16.gmra.mxu3 %v3794_v17  ;;  %1559 = vmatmul.bf16.gmra.mxu1 %v3794_v17  ;;  %v3846_v17 = vor.u32 %v4180_v9, %v3845_v13 }
 0x1d9   : > { %1312 = vmatmul.bf16.gmra.mxu2 %v3822_v39  ;;  %1490 = vmatmul.bf16.gmra.mxu0 %v3822_v39 }
 0x1e3   : > { %1386 = vmatmul.bf16.gmra.mxu3 %v3802_v48  ;;  %1564 = vmatmul.bf16.gmra.mxu1 %v3802_v48 }
 0x1e9   : > { %1317 = vmatmul.bf16.gmra.mxu2 %v3830_v45  ;;  %1495 = vmatmul.bf16.gmra.mxu0 %v3830_v45 }
 0x1f3   : > { %1391 = vmatmul.bf16.gmra.mxu3 %v3810_v33  ;;  %1569 = vmatmul.bf16.gmra.mxu1 %v3810_v33  ;;  %v1653_v33 = vpop.permute.xlu0 %1652 }
 0x1f9   : > { %1500 = vmatmul.bf16.gmra.mxu0 %v3838_v11  ;;  %1322 = vmatmul.bf16.gmra.mxu2 %v3838_v11 }
 0x1fb   : > { %v1648_v0 = vpop.permute.xlu0 %1647 }
 0x203   : > { %1396 = vmatmul.bf16.gmra.mxu3 %v3818_v26  ;;  %1574 = vmatmul.bf16.gmra.mxu1 %v3818_v26 }
 0x206   : > { %v1466_v16 = vpop.f32.mrf.mxu0 }
 0x209   : > { %1505 = vmatmul.bf16.gmra.mxu0 %v3846_v17  ;;  %1327 = vmatmul.bf16.gmra.mxu2 %v3846_v17 }
 0x20c   : > { %v1288_v50 = vpop.f32.mrf.mxu2 }
 0x20e   : > { %v1468_v10 = vpop.f32.mrf.mxu0 }
 0x213   : > { %1401 = vmatmul.bf16.gmra.mxu3 %v3826_v36  ;;  %1579 = vmatmul.bf16.gmra.mxu1 %v3826_v36 }
 0x214   : > { %v1290_v42 = vpop.f32.mrf.mxu2 }
 0x216   : > { %v1471_v14 = vpop.f32.mrf.mxu0 }
 0x21c   : > { %v1293_v41 = vpop.f32.mrf.mxu2 }
 0x21e   : > { %v1473_v39 = vpop.f32.mrf.mxu0 }
 0x223   : > { %1406 = vmatmul.bf16.gmra.mxu3 %v3834_v31  ;;  %1584 = vmatmul.bf16.gmra.mxu1 %v3834_v31 }
 0x226   : > { %v1476_v57 = vpop.f32.mrf.mxu0 }
 0x230   : > { %v1550_v59 = vpop.f32.mrf.mxu1 }
 0x231   : > { %v1551_v21 = vadd.f32 %v1550_v59, %v1461_v43  ;;  %v1295_v43 = vpop.f32.mrf.mxu2 }
 0x233   : > { %1411 = vmatmul.bf16.gmra.mxu3 %v3842_v6  ;;  %1589 = vmatmul.bf16.gmra.mxu1 %v3842_v6  ;;  %v1711_v20 = vadd.f32 %v1633_v34, %v1551_v21 }
 0x235   : > { %v1743_v61 = vmax.f32 %v1711_v20, 0.0 }
 0x236   : > { %v1372_v7 = vpop.f32.mrf.mxu3 }
 0x237   : > { %v1373_v19 = vadd.f32 %v1372_v7, %v1283_v62 }
 0x238   : > { %v1552_v8 = vpop.f32.mrf.mxu1 }
 0x239   : > { %v1553_v58 = vadd.f32 %v1552_v8, %v1463_v53  ;;  %v1710_v48 = vadd.f32 %v1633_v34, %v1373_v19 }
 0x23b   : > { %v1713_v40 = vadd.f32 %v1638_v35, %v1553_v58  ;;  %v1742_v29 = vmax.f32 %v1710_v48, 0.0  ;;  %v1298_v58 = vpop.f32.mrf.mxu2  ;;  %v3863_v48 = vld [vmem:[%s6086_s2 + $0xb8] sm:$0xf0] }
 0x23d   : > { %v1745_v12 = vmax.f32 %v1713_v40, 0.0 }
 0x23e   : > { %v1374_v54 = vpop.f32.mrf.mxu3 }
 0x23f   : > { %v1375_v38 = vadd.f32 %v1374_v54, %v1285_v22  ;;  %v5159_v44 = vpack.c.bf16 %v1745_v12, %v1743_v61  ;;  %v3853_v22 = vld [vmem:[%s6086_s2 + $0xa0] sm:$0xf]  ;;  %v4183_v54 = vld [vmem:[%s6086_s2 + $0xb4] sm:$0xf] }
 0x240   : > { %v1555_v47 = vpop.f32.mrf.mxu1 }
 0x241   : > { %v1712_v32 = vadd.f32 %v1638_v35, %v1375_v38  ;;  %v1556_v45 = vadd.f32 %v1555_v47, %v1466_v16  ;;  %v4182_v16 = vld [vmem:[%s6086_s2 + $0xa4] sm:$0xf0]  ;;  %v1478_v35 = vpop.f32.mrf.mxu0 }
 0x242   : > { %v3854_v49 = vor.u32 %v4182_v16, %v3853_v22 }
 0x243   : > { %v1744_v52 = vmax.f32 %v1712_v32, 0.0  ;;  %1416 = vmatmul.bf16.gmra.mxu3 %v3850_v46  ;;  %1594 = vmatmul.bf16.gmra.mxu1 %v3850_v46  ;;  %v1715_v62 = vadd.f32 %v1643_v28, %v1556_v45  ;;  %v1300_v61 = vpop.f32.mrf.mxu2  ;;  %v3866_v45 = vor.u32 %v4183_v54, %v3863_v48  ;;  %v4187_v54 = vld [vmem:[%s6086_s2 + $0xd4] sm:$0xf]  ;;  %v3879_v48 = vld [vmem:[%s6086_s2 + $0xd8] sm:$0xf0] }
 0x244   : > { %1510 = vmatmul.bf16.gmra.mxu0 %v3854_v49  ;;  %1332 = vmatmul.bf16.gmra.mxu2 %v3854_v49 }
 0x245   : > { %v5161_v26 = vpack.c.bf16 %v1744_v52, %v1742_v29  ;;  %v1747_v5 = vmax.f32 %v1715_v62, 0.0 }
 0x246   : > { %v1377_v18 = vpop.f32.mrf.mxu3 }
 0x247   : > { %v1378_v23 = vadd.f32 %v1377_v18, %v1288_v50  ;;  %v4181_v50 = vld [vmem:[%s6086_s2 + $0xa4] sm:$0xf] }
 0x248   : > { %v1557_v36 = vpop.f32.mrf.mxu1 }
 0x249   : > { %v1558_v53 = vadd.f32 %v1557_v36, %v1468_v10  ;;  %v3855_v10 = vld [vmem:[%s6086_s2 + $0xa8] sm:$0xf0]  ;;  %v1714_v4 = vadd.f32 %v1643_v28, %v1378_v23  ;;  %v1481_v46 = vpop.f32.mrf.mxu0 }
 0x24a   : > { %v3858_v59 = vor.u32 %v4181_v50, %v3855_v10 }
 0x24b   : > { %v1717_v31 = vadd.f32 %v1648_v0, %v1558_v53  ;;  %v1746_v8 = vmax.f32 %v1714_v4, 0.0  ;;  %v1303_v22 = vpop.f32.mrf.mxu2 }
 0x24d   : > { %v1749_v11 = vmax.f32 %v1717_v31, 0.0 }
 0x24e   : > { %v1379_v55 = vpop.f32.mrf.mxu3 }
 0x24f   : > { %v1380_v6 = vadd.f32 %v1379_v55, %v1290_v42  ;;  %v5175_v21 = vpack.c.bf16 %v1749_v11, %v1747_v5  ;;  %v4185_v5 = vld [vmem:[%s6086_s2 + $0xc4] sm:$0xf]  ;;  %v3871_v11 = vld [vmem:[%s6086_s2 + $0xc8] sm:$0xf0] }
 0x250   : > { %v1560_v19 = vpop.f32.mrf.mxu1 }
 0x251   : > { %v1716_v7 = vadd.f32 %v1648_v0, %v1380_v6  ;;  %v1561_v34 = vadd.f32 %v1560_v19, %v1471_v14  ;;  %v4184_v14 = vld [vmem:[%s6086_s2 + $0xb4] sm:$0xf0]  ;;  %v3874_v19 = vor.u32 %v4185_v5, %v3871_v11 }
 0x252   : > { %v3862_v12 = vor.u32 %v4184_v14, %v3861_v51  ;;  %v3877_v14 = vld [vmem:[%s6086_s2 + $0xd0] sm:$0xf]  ;;  %v4192_v5 = vld [vmem:[%s6086_s2 + $0xf4] sm:$0xf0] }
 0x253   : > { %v1748_v20 = vmax.f32 %v1716_v7, 0.0  ;;  %1421 = vmatmul.bf16.gmra.mxu3 %v3858_v59  ;;  %1599 = vmatmul.bf16.gmra.mxu1 %v3858_v59  ;;  %v1719_v42 = vadd.f32 %v1653_v33, %v1561_v34 }
 0x254   : > { %1515 = vmatmul.bf16.gmra.mxu0 %v3862_v12  ;;  %1337 = vmatmul.bf16.gmra.mxu2 %v3862_v12 }
 0x255   : > { %v5177_v40 = vpack.c.bf16 %v1748_v20, %v1746_v8  ;;  %v1751_v38 = vmax.f32 %v1719_v42, 0.0 }
 0x256   : > { %v1382_v13 = vpop.f32.mrf.mxu3 }
 0x257   : > { %v1383_v9 = vadd.f32 %v1382_v13, %v1293_v41 }
 0x258   : > { %v1562_v28 = vpop.f32.mrf.mxu1 }
 0x259   : > { %v1563_v17 = vadd.f32 %v1562_v28, %v1473_v39  ;;  %v1718_v32 = vadd.f32 %v1653_v33, %v1383_v9  ;;  %v5197_v33 = vpop.f32.mrf.mxu0 }
 0x25b   : > { %v1721_v37 = vadd.f32 %v5143_v30, %v1563_v17  ;;  %v1750_v36 = vmax.f32 %v1718_v32, 0.0 }
 0x25d   : > { %v1753_v41 = vmax.f32 %v1721_v37, 0.0 }
 0x25e   : > { %v1384_v39 = vpop.f32.mrf.mxu3 }
 0x25f   : > { %v1385_v47 = vadd.f32 %v1384_v39, %v1295_v43  ;;  %v5192_v29 = vpack.c.bf16 %v1753_v41, %v1751_v38  ;;  %v3882_v41 = vor.u32 %v4187_v54, %v3879_v48 }
 0x260   : > { %v1565_v18 = vpop.f32.mrf.mxu1 }
 0x261   : > { %v1720_v52 = vadd.f32 %v5143_v30, %v1385_v47  ;;  %v1566_v23 = vadd.f32 %v1565_v18, %v1476_v57  ;;  %v3869_v30 = vld [vmem:[%s6086_s2 + $0xc0] sm:$0xf]  ;;  %v4186_v57 = vld [vmem:[%s6086_s2 + $0xc4] sm:$0xf0]  ;;  %v5221_v13 = vpop.f32.mrf.mxu0 }
 0x262   : > { %v3870_v10 = vor.u32 %v4186_v57, %v3869_v30  ;;  %v4190_v18 = vld [vmem:[%s6086_s2 + $0xe4] sm:$0xf0] }
 0x263   : > { %v1752_v62 = vmax.f32 %v1720_v52, 0.0  ;;  %1426 = vmatmul.bf16.gmra.mxu3 %v3866_v45  ;;  %1604 = vmatmul.bf16.gmra.mxu1 %v3866_v45  ;;  %v1723_v16 = vadd.f32 %v5125_v63, %v1566_v23  ;;  %v3885_v52 = vld [vmem:[%s6086_s2 + $0xe0] sm:$0xf] }
 0x264   : > { %1520 = vmatmul.bf16.gmra.mxu0 %v3870_v10  ;;  %1342 = vmatmul.bf16.gmra.mxu2 %v3870_v10  ;;  %v3886_v23 = vor.u32 %v4190_v18, %v3885_v52  ;;  %v3893_v10 = vld [vmem:[%s6086_s2 + $0xf0] sm:$0xf] }
 0x265   : > { %v5195_v53 = vpack.c.bf16 %v1752_v62, %v1750_v36  ;;  %v1755_v55 = vmax.f32 %v1723_v16, 0.0  ;;  %v4189_v36 = vld [vmem:[%s6086_s2 + $0xe4] sm:$0xf]  ;;  %v3887_v62 = vld [vmem:[%s6086_s2 + $0xe8] sm:$0xf0]  ;;  %v3894_v11 = vor.u32 %v4192_v5, %v3893_v10 }
 0x266   : > { %v1387_v0 = vpop.f32.mrf.mxu3 }
 0x267   : > { %v1388_v31 = vadd.f32 %v1387_v0, %v1298_v58  ;;  %v5217_v58 = vpop.f32.mrf.mxu2 }
 0x268   : > { %v1567_v43 = vpop.f32.mrf.mxu1 }
 0x269   : > { %v1568_v49 = vadd.f32 %v1567_v43, %v1478_v35  ;;  %v1722_v59 = vadd.f32 %v5125_v63, %v1388_v31  ;;  %v3890_v43 = vor.u32 %v4189_v36, %v3887_v62 }
 0x26b   : > { %v1725_v50 = vadd.f32 %v5127_v25, %v1568_v49  ;;  %v1754_v9 = vmax.f32 %v1722_v59, 0.0 }
 0x26d   : > { %v1757_v4 = vmax.f32 %v1725_v50, 0.0 }
 0x26e   : > { %v1389_v6 = vpop.f32.mrf.mxu3 }
 0x26f   : > { %v1390_v7 = vadd.f32 %v1389_v6, %v1300_v61  ;;  %v5214_v34 = vpack.c.bf16 %v1757_v4, %v1755_v55  ;;  %v5229_v51 = vpop.f32.mrf.mxu2  ;;  %v4188_v61 = vld [vmem:[%s6086_s2 + $0xd4] sm:$0xf0]  ;;  %v4191_v55 = vld [vmem:[%s6086_s2 + $0xf4] sm:$0xf]  ;;  %v3895_v4 = vld [vmem:[%s6086_s2 + $0xf8] sm:$0xf0] }
 0x270   : > { %v1570_v20 = vpop.f32.mrf.mxu1  ;;  %v3878_v12 = vor.u32 %v4188_v61, %v3877_v14  ;;  %v3898_v59 = vor.u32 %v4191_v55, %v3895_v4 }
 0x271   : > { %v1724_v8 = vadd.f32 %v5127_v25, %v1390_v7  ;;  %v5219_v35 = vadd.f32 %v1570_v20, %v1481_v46  ;;  %v1488_v25 = vpop.f32.mrf.mxu0 }
 0x273   : > { %v1756_v28 = vmax.f32 %v1724_v8, 0.0  ;;  %1431 = vmatmul.bf16.gmra.mxu3 %v3874_v19  ;;  %1609 = vmatmul.bf16.gmra.mxu1 %v3874_v19 }
 0x274   : > { %1525 = vmatmul.bf16.gmra.mxu0 %v3878_v12  ;;  %1347 = vmatmul.bf16.gmra.mxu2 %v3878_v12 }
 0x275   : > { %v5223_v63 = vpack.c.bf16 %v1756_v28, %v1754_v9 }
 0x276   : > { %v1392_v42 = vpop.f32.mrf.mxu3 }
 0x277   : > { %v5225_v17 = vadd.f32 %v1392_v42, %v1303_v22  ;;  %v1310_v46 = vpop.f32.mrf.mxu2 }
 0x278   : > { %v5227_v37 = vpop.f32.mrf.mxu1 }
 0x279   : > { %v1491_v47 = vpop.f32.mrf.mxu0 }
 0x27e   : > { %v5243_v38 = vpop.f32.mrf.mxu3 }
 0x27f   : > { %v1313_v31 = vpop.f32.mrf.mxu2 }
 0x280   : > { %v1575_v39 = vpop.f32.mrf.mxu1 }
 0x281   : > { %v1493_v22 = vpop.f32.mrf.mxu0  ;;  %v1576_v36 = vadd.f32 %v1575_v39, %v5221_v13 }
 0x283   : > { %1436 = vmatmul.bf16.gmra.mxu3 %v3882_v41  ;;  %1614 = vmatmul.bf16.gmra.mxu1 %v3882_v41  ;;  %v1731_v4 = vadd.f32 %v5135_v2, %v1576_v36 }
 0x284   : > { %1530 = vmatmul.bf16.gmra.mxu0 %v3886_v23  ;;  %1352 = vmatmul.bf16.gmra.mxu2 %v3886_v23 }
 0x286   : > { %v5245_v32 = vpop.f32.mrf.mxu3 }
 0x287   : > { %v1315_v30 = vpop.f32.mrf.mxu2 }
 0x288   : > { %v1577_v45 = vpop.f32.mrf.mxu1 }
 0x289   : > { %v1496_v57 = vpop.f32.mrf.mxu0  ;;  %v1578_v48 = vadd.f32 %v1577_v45, %v1488_v25  ;;  %v1573_v25 = vadd.f32 %v5227_v37, %v5197_v33  ;;  %v1398_v33 = vadd.f32 %v5245_v32, %v5229_v51  ;;  %v1763_v51 = vmax.f32 %v1731_v4, 0.0 }
 0x28b   : > { %v1733_v45 = vadd.f32 %v5113_v1, %v1578_v48 }
 0x28e   : > { %v1399_v0 = vpop.f32.mrf.mxu3 }
 0x28f   : > { %v1318_v19 = vpop.f32.mrf.mxu2 }
 0x290   : > { %v1580_v16 = vpop.f32.mrf.mxu1 }
 0x291   : > { %v1498_v8 = vpop.f32.mrf.mxu0  ;;  %v1581_v14 = vadd.f32 %v1580_v16, %v1491_v47 }
 0x293   : > { %1441 = vmatmul.bf16.gmra.mxu3 %v3890_v43  ;;  %1619 = vmatmul.bf16.gmra.mxu1 %v3890_v43  ;;  %v1735_v62 = vadd.f32 %v5109_v15, %v1581_v14 }
 0x294   : > { %1535 = vmatmul.bf16.gmra.mxu0 %v3894_v11  ;;  %1357 = vmatmul.bf16.gmra.mxu2 %v3894_v11 }
 0x296   : > { %v1402_v49 = vpop.f32.mrf.mxu3 }
 0x297   : > { %v1403_v47 = vadd.f32 %v1402_v49, %v1313_v31  ;;  %v1767_v31 = vmax.f32 %v1735_v62, 0.0 }
 0x298   : > { %v1582_v50 = vpop.f32.mrf.mxu1 }
 0x299   : > { %v1583_v28 = vadd.f32 %v1582_v50, %v1493_v22  ;;  %v1501_v18 = vpop.f32.mrf.mxu0  ;;  %v1734_v37 = vadd.f32 %v5109_v15, %v1403_v47  ;;  %v1727_v15 = vadd.f32 %v5121_v24, %v5219_v35 }
 0x29b   : > { %v1737_v41 = vadd.f32 %v5111_v27, %v1583_v28 }
 0x29d   : > { %v1769_v5 = vmax.f32 %v1737_v41, 0.0 }
 0x29e   : > { %v1404_v6 = vpop.f32.mrf.mxu3 }
 0x29f   : > { %v1405_v23 = vadd.f32 %v1404_v6, %v1315_v30  ;;  %v1400_v30 = vadd.f32 %v1399_v0, %v1310_v46  ;;  %v5293_v49 = vpack.c.bf16 %v1769_v5, %v1767_v31 }
 0x2a0   : > { %v1585_v7 = vpop.f32.mrf.mxu1 }
 0x2a1   : > { %v1586_v20 = vadd.f32 %v1585_v7, %v1496_v57  ;;  %v1320_v57 = vpop.f32.mrf.mxu2  ;;  %v1736_v13 = vadd.f32 %v5111_v27, %v1405_v23  ;;  %v1729_v27 = vadd.f32 %v5145_v60, %v1573_v25  ;;  %v5295_v6 = vpop.f32.mrf.mxu0  ;;  %v1732_v7 = vadd.f32 %v5113_v1, %v1400_v30  ;;  %v4196_v25 = vld [vmem:[%s6087_s3 + $0x18] sm:$0xff] }
 0x2a2   : > { %6102 = vst [vmem:[#allocation4_spill] sm:$0xff] %v5295_v6 }
 0x2a3   : > { %1446 = vmatmul.bf16.gmra.mxu3 %v3898_v59  ;;  %1624 = vmatmul.bf16.gmra.mxu1 %v3898_v59  ;;  %v1739_v61 = vadd.f32 %v5101_v3, %v1586_v20  ;;  %v1395_v59 = vadd.f32 %v5243_v38, %v5217_v58  ;;  %v1730_v20 = vadd.f32 %v5135_v2, %v1398_v33  ;;  %v1761_v1 = vmax.f32 %v1729_v27, 0.0 }
 0x2a4   : > { %v1764_v35 = vmax.f32 %v1732_v7, 0.0  ;;  %v1726_v2 = vadd.f32 %v5121_v24, %v5225_v17 }
 0x2a5   : > { %v1771_v43 = vmax.f32 %v1739_v61, 0.0  ;;  %v1728_v28 = vadd.f32 %v5145_v60, %v1395_v59 }
 0x2a6   : > { %v1407_v9 = vpop.f32.mrf.mxu3  ;;  %v1758_v23 = vmax.f32 %v1726_v2, 0.0 }
 0x2a7   : > { %v1408_v54 = vadd.f32 %v1407_v9, %v1318_v19  ;;  %v1768_v19 = vmax.f32 %v1736_v13, 0.0  ;;  %v1766_v9 = vmax.f32 %v1734_v37, 0.0  ;;  %v1760_v41 = vmax.f32 %v1728_v28, 0.0  ;;  %v4194_v37 = vld [vmem:[%s6087_s3 + $0x8] sm:$0xff] }
 0x2a8   : > { %v1587_v42 = vpop.f32.mrf.mxu1 }
 0x2a9   : > { %v1588_v12 = vadd.f32 %v1587_v42, %v1498_v8  ;;  %v1738_v16 = vadd.f32 %v5101_v3, %v1408_v54  ;;  %v1323_v38 = vpop.f32.mrf.mxu2  ;;  %v5312_v42 = vpack.c.bf16 %v1768_v19, %v1766_v9  ;;  %v1762_v54 = vmax.f32 %v1730_v20, 0.0  ;;  %v1506_v48 = vpop.f32.mrf.mxu0 }
 0x2aa   : > { %v1782_v36 = vpack.c.bf16 %v1760_v41, %v1758_v23 }
 0x2ab   : > { %v1741_v52 = vadd.f32 %v5123_v56, %v1588_v12  ;;  %v1770_v46 = vmax.f32 %v1738_v16, 0.0  ;;  %v1759_v12 = vmax.f32 %v1727_v15, 0.0 }
 0x2ad   : > { %v1773_v22 = vmax.f32 %v1741_v52, 0.0  ;;  %v1783_v60 = vpack.c.bf16 %v1761_v1, %v1759_v12  ;;  %v1784_v52 = vpack.c.bf16 %v1764_v35, %v1762_v54 }
 0x2ae   : > { %v1409_v50 = vpop.f32.mrf.mxu3 }
 0x2af   : > { %v1410_v10 = vadd.f32 %v1409_v50, %v1320_v57  ;;  %v5280_v11 = vpack.c.bf16 %v1773_v22, %v1771_v43 }
 0x2b0   : > { %v1590_v55 = vpop.f32.mrf.mxu1 }
 0x2b1   : > { %v1740_v39 = vadd.f32 %v5123_v56, %v1410_v10  ;;  %1891 = vmatpush.bf16.msra.mxu1 %v5280_v11  ;;  %4253 = vmatpush.bf16.msrb.mxu3 %v5280_v11  ;;  %v5287_v3 = vadd.f32 %v1590_v55, %v1501_v18  ;;  %v1765_v56 = vmax.f32 %v1733_v45, 0.0  ;;  %v5326_v43 = vpop.f32.mrf.mxu2  ;;  %v5332_v17 = vpop.f32.mrf.mxu0  ;;  %v4193_v10 = vld [vmem:[%s6087_s3] sm:$0xff] }
 0x2b2   : > { %6106 = vst [vmem:[#allocation8_spill] sm:$0xff] %v5326_v43 }
 0x2b3   : > { %6101 = vst [vmem:[#allocation3_spill] sm:$0xff] %v5287_v3  ;;  %v1772_v0 = vmax.f32 %v1740_v39, 0.0  ;;  %v5309_v58 = vpack.c.bf16 %v1765_v56, %v1763_v51 }
 0x2b4   : > { %6108 = vst [vmem:[#allocation10_spill] sm:$0xff] %v5332_v17  ;;  %v4222_v17 = vld [vmem:[%s6089_s5 + $0x48] sm:$0xff] }
 0x2b5   : > { %v5300_v8 = vpack.c.bf16 %v1772_v0, %v1770_v46  ;;  %1892 = vmatpush.bf16.msra.mxu1 %v5293_v49  ;;  %4254 = vmatpush.bf16.msrb.mxu3 %v5293_v49 }
 0x2b6   : > { %v1412_v32 = vpop.f32.mrf.mxu3 }
 0x2b7   : > { %1862 = vmatpush.bf16.msra.mxu0 %v5300_v8  ;;  %4245 = vmatpush.bf16.msrb.mxu2 %v5300_v8  ;;  %v5316_v61 = vadd.f32 %v1412_v32, %v1323_v38 }
 0x2b8   : > { %v5314_v14 = vpop.f32.mrf.mxu1 }
 0x2b9   : > { %6103 = vst [vmem:[#allocation5_spill] sm:$0xff] %v5314_v14  ;;  %1893 = vmatpush.bf16.msra.mxu1 %v5309_v58  ;;  %4255 = vmatpush.bf16.msrb.mxu3 %v5309_v58  ;;  %v1328_v50 = vpop.f32.mrf.mxu2 }
 0x2ba   : > { %6104 = vst [vmem:[#allocation6_spill] sm:$0xff] %v5316_v61 }
 0x2bb   : > { %1863 = vmatpush.bf16.msra.mxu0 %v5312_v42  ;;  %4246 = vmatpush.bf16.msrb.mxu2 %v5312_v42 }
 0x2bd   : > { %1894 = vmatpush.bf16.msra.mxu1 %v1783_v60  ;;  %4256 = vmatpush.bf16.msrb.mxu3 %v1783_v60 }
 0x2be   : > { %v5324_v18 = vpop.f32.mrf.mxu3 }
 0x2bf   : > { %6105 = vst [vmem:[#allocation7_spill] sm:$0xff] %v5324_v18  ;;  %1864 = vmatpush.bf16.msra.mxu0 %v1784_v52  ;;  %4247 = vmatpush.bf16.msrb.mxu2 %v1784_v52 }
 0x2c0   : > { %v1595_v62 = vpop.f32.mrf.mxu1 }
 0x2c1   : > { %1895 = vmatpush.bf16.msra.mxu1 %v5214_v34  ;;  %4257 = vmatpush.bf16.msrb.mxu3 %v5214_v34  ;;  %v5330_v24 = vadd.f32 %v1595_v62, %v1506_v48  ;;  %v1511_v16 = vpop.f32.mrf.mxu0  ;;  %v5359_v30 = vpop.f32.mrf.mxu2 }
 0x2c2   : > { %6112 = vst [vmem:[#allocation14_spill] sm:$0xff] %v5359_v30 }
 0x2c3   : > { %6107 = vst [vmem:[#allocation9_spill] sm:$0xff] %v5330_v24  ;;  %1865 = vmatpush.bf16.msra.mxu0 %v1782_v36  ;;  %4248 = vmatpush.bf16.msrb.mxu2 %v1782_v36 }
 0x2c5   : > { %1896 = vmatpush.bf16.msra.mxu1 %v5192_v29  ;;  %4258 = vmatpush.bf16.msrb.mxu3 %v5192_v29 }
 0x2c6   : > { %v1417_v57 = vpop.f32.mrf.mxu3 }
 0x2c7   : > { %1866 = vmatpush.bf16.msra.mxu0 %v5223_v63  ;;  %4249 = vmatpush.bf16.msrb.mxu2 %v5223_v63  ;;  %v5342_v47 = vadd.f32 %v1417_v57, %v1328_v50 }
 0x2c8   : > { %v5338_v22 = vpop.f32.mrf.mxu1 }
 0x2c9   : > { %6109 = vst [vmem:[#allocation11_spill] sm:$0xff] %v5338_v22  ;;  %1897 = vmatpush.bf16.msra.mxu1 %v5175_v21  ;;  %4259 = vmatpush.bf16.msrb.mxu3 %v5175_v21  ;;  %v1333_v4 = vpop.f32.mrf.mxu2 }
 0x2ca   : > { %6110 = vst [vmem:[#allocation12_spill] sm:$0xff] %v5342_v47 }
 0x2cb   : > { %1867 = vmatpush.bf16.msra.mxu0 %v5195_v53  ;;  %4250 = vmatpush.bf16.msrb.mxu2 %v5195_v53 }
 0x2cd   : > { %1898 = vmatpush.bf16.msra.mxu1 %v5159_v44  ;;  %4260 = vmatpush.bf16.msrb.mxu3 %v5159_v44 }
 0x2ce   : > { %v5354_v45 = vpop.f32.mrf.mxu3 }
 0x2cf   : > { %6111 = vst [vmem:[#allocation13_spill] sm:$0xff] %v5354_v45  ;;  %1868 = vmatpush.bf16.msra.mxu0 %v5177_v40  ;;  %4251 = vmatpush.bf16.msrb.mxu2 %v5177_v40 }
 0x2d0   : > { %1899 = vmatmul.bf16.vlgmr.msra.gmra.mxu1 %v4193_v10  ;;  %1914 = vmatmul.bf16.vlgmr.msrb.gmra.mxu3 %v4196_v25  ;;  %v1600_v5 = vpop.f32.mrf.mxu1 }
 0x2d1   : > { %2500 = vmatpush.bf16.msrb.mxu1 %v5280_v11  ;;  %v5361_v13 = vadd.f32 %v1600_v5, %v1511_v16  ;;  %v5367_v11 = vpop.f32.mrf.mxu0  ;;  %v5381_v27 = vpop.f32.mrf.mxu2 }
 0x2d2   : > { %6114 = vst [vmem:[#allocation16_spill] sm:$0xff] %v5367_v11 }
 0x2d3   : > { %6113 = vst [vmem:[#allocation15_spill] sm:$0xff] %v5361_v13  ;;  %1869 = vmatpush.bf16.msra.mxu0 %v5161_v26  ;;  %4252 = vmatpush.bf16.msrb.mxu2 %v5161_v26 }
 0x2d4   : > { %6118 = vst [vmem:[#allocation20_spill] sm:$0xff] %v5381_v27 }
 0x2d5   : > { %2501 = vmatpush.bf16.msrb.mxu1 %v5293_v49 }
 0x2d6   : > { %1870 = vmatmul.bf16.vlgmr.msra.gmra.mxu0 %v4193_v10  ;;  %v1422_v39 = vpop.f32.mrf.mxu3  ;;  %1885 = vmatmul.bf16.vlgmr.msrb.gmra.mxu2 %v4196_v25 }
 0x2d7   : > { %2411 = vmatpush.bf16.msrb.mxu0 %v5300_v8  ;;  %v5373_v31 = vadd.f32 %v1422_v39, %v1333_v4 }
 0x2d8   : > { %v5371_v55 = vpop.f32.mrf.mxu1 }
 0x2d9   : > { %2502 = vmatpush.bf16.msrb.mxu1 %v5309_v58  ;;  %6115 = vst [vmem:[#allocation17_spill] sm:$0xff] %v5371_v55  ;;  %v1516_v33 = vpop.f32.mrf.mxu0  ;;  %v1338_v7 = vpop.f32.mrf.mxu2 }
 0x2da   : > { %6116 = vst [vmem:[#allocation18_spill] sm:$0xff] %v5373_v31 }
 0x2db   : > { %2412 = vmatpush.bf16.msrb.mxu0 %v5312_v42 }
 0x2dd   : > { %2503 = vmatpush.bf16.msrb.mxu1 %v1783_v60 }
 0x2de   : > { %v5378_v46 = vpop.f32.mrf.mxu3 }
 0x2df   : > { %2413 = vmatpush.bf16.msrb.mxu0 %v1784_v52  ;;  %6117 = vst [vmem:[#allocation19_spill] sm:$0xff] %v5378_v46 }
 0x2e0   : > { %1904 = vmatmul.bf16.gmra.mxu1 %v4194_v37  ;;  %v1605_v0 = vpop.f32.mrf.mxu1 }
 0x2e1   : > { %2504 = vmatpush.bf16.msrb.mxu1 %v5214_v34  ;;  %v5383_v56 = vadd.f32 %v1605_v0, %v1516_v33  ;;  %v5387_v49 = vpop.f32.mrf.mxu0 }
 0x2e2   : > { %6120 = vst [vmem:[#allocation22_spill] sm:$0xff] %v5387_v49 }
 0x2e3   : > { %2414 = vmatpush.bf16.msrb.mxu0 %v1782_v36  ;;  %6119 = vst [vmem:[#allocation21_spill] sm:$0xff] %v5383_v56 }
 0x2e5   : > { %2505 = vmatpush.bf16.msrb.mxu1 %v5192_v29 }
 0x2e6   : > { %1875 = vmatmul.bf16.gmra.mxu0 %v4194_v37  ;;  %v1427_v59 = vpop.f32.mrf.mxu3 }
 0x2e7   : > { %2415 = vmatpush.bf16.msrb.mxu0 %v5223_v63  ;;  %v5393_v19 = vadd.f32 %v1427_v59, %v1338_v7  ;;  %v4195_v63 = vld [vmem:[%s6087_s3 + $0x10] sm:$0xff] }
 0x2e8   : > { %v5391_v34 = vpop.f32.mrf.mxu1 }
 0x2e9   : > { %2506 = vmatpush.bf16.msrb.mxu1 %v5175_v21  ;;  %6121 = vst [vmem:[#allocation23_spill] sm:$0xff] %v5391_v34  ;;  %v1521_v29 = vpop.f32.mrf.mxu0 }
 0x2ea   : > { %6122 = vst [vmem:[#allocation24_spill] sm:$0xff] %v5393_v19 }
 0x2eb   : > { %2416 = vmatpush.bf16.msrb.mxu0 %v5195_v53  ;;  %v5403_v53 = vpop.f32.mrf.mxu2 }
 0x2ec   : > { %6124 = vst [vmem:[#allocation26_spill] sm:$0xff] %v5403_v53 }
 0x2ed   : > { %2507 = vmatpush.bf16.msrb.mxu1 %v5159_v44 }
 0x2ee   : > { %v5400_v8 = vpop.f32.mrf.mxu3 }
 0x2ef   : > { %2417 = vmatpush.bf16.msrb.mxu0 %v5177_v40  ;;  %6123 = vst [vmem:[#allocation25_spill] sm:$0xff] %v5400_v8 }
 0x2f0   : > { %1909 = vmatmul.bf16.gmra.mxu1 %v4195_v63  ;;  %v1610_v21 = vpop.f32.mrf.mxu1 }
 0x2f1   : > { %v5405_v15 = vadd.f32 %v1610_v21, %v1521_v29  ;;  %v5407_v51 = vpop.f32.mrf.mxu0 }
 0x2f2   : > { %6126 = vst [vmem:[#allocation28_spill] sm:$0xff] %v5407_v51 }
 0x2f3   : > { %2418 = vmatpush.bf16.msrb.mxu0 %v5161_v26  ;;  %6125 = vst [vmem:[#allocation27_spill] sm:$0xff] %v5405_v15  ;;  %v1343_v32 = vpop.f32.mrf.mxu2 }
 0x2f6   : > { %1880 = vmatmul.bf16.gmra.mxu0 %v4195_v63  ;;  %v1432_v44 = vpop.f32.mrf.mxu3 }
 0x2f7   : > { %v5411_v20 = vadd.f32 %v1432_v44, %v1343_v32 }
 0x2f8   : > { %v5409_v40 = vpop.f32.mrf.mxu1 }
 0x2f9   : > { %6127 = vst [vmem:[#allocation29_spill] sm:$0xff] %v5409_v40  ;;  %v1526_v9 = vpop.f32.mrf.mxu0 }
 0x2fa   : > { %6128 = vst [vmem:[#allocation30_spill] sm:$0xff] %v5411_v20  ;;  %v4228_v20 = vld [vmem:[%s6089_s5 + $0x78] sm:$0xff] }
 0x2fb   : > { %v5415_v26 = vpop.f32.mrf.mxu2 }
 0x2fc   : > { %6130 = vst [vmem:[#allocation32_spill] sm:$0xff] %v5415_v26 }
 0x2fe   : > { %v5413_v1 = vpop.f32.mrf.mxu3 }
 0x2ff   : > { %6129 = vst [vmem:[#allocation31_spill] sm:$0xff] %v5413_v1 }
 0x300   : > { %v1615_v58 = vpop.f32.mrf.mxu1 }
 0x301   : > { %v5417_v38 = vadd.f32 %v1615_v58, %v1526_v9  ;;  %v5419_v28 = vpop.f32.mrf.mxu0  ;;  %v1831_v9 = vpop.permute.xlu0 %1830 }
 0x302   : > { %6132 = vst [vmem:[#allocation34_spill] sm:$0xff] %v5419_v28 }
 0x303   : > { %6131 = vst [vmem:[#allocation33_spill] sm:$0xff] %v5417_v38  ;;  %v1348_v12 = vpop.f32.mrf.mxu2 }
 0x306   : > { %v1437_v35 = vpop.f32.mrf.mxu3 }
 0x307   : > { %v5423_v2 = vadd.f32 %v1437_v35, %v1348_v12 }
 0x308   : > { %v5421_v42 = vpop.f32.mrf.mxu1 }
 0x309   : > { %6133 = vst [vmem:[#allocation35_spill] sm:$0xff] %v5421_v42  ;;  %v1531_v54 = vpop.f32.mrf.mxu0 }
 0x30a   : > { %6134 = vst [vmem:[#allocation36_spill] sm:$0xff] %v5423_v2 }
 0x30b   : > { %v5427_v41 = vpop.f32.mrf.mxu2 }
 0x30c   : > { %6136 = vst [vmem:[#allocation38_spill] sm:$0xff] %v5427_v41 }
 0x30e   : > { %v5425_v60 = vpop.f32.mrf.mxu3 }
 0x30f   : > { %6135 = vst [vmem:[#allocation37_spill] sm:$0xff] %v5425_v60 }
 0x310   : > { %v1620_v48 = vpop.f32.mrf.mxu1 }
 0x311   : > { %v5429_v52 = vadd.f32 %v1620_v48, %v1531_v54  ;;  %v5431_v36 = vpop.f32.mrf.mxu0  ;;  %v1836_v54 = vpop.permute.xlu1 %1835 }
 0x312   : > { %6138 = vst [vmem:[#allocation40_spill] sm:$0xff] %v5431_v36 }
 0x313   : > { %6137 = vst [vmem:[#allocation39_spill] sm:$0xff] %v5429_v52  ;;  %v1353_v57 = vpop.f32.mrf.mxu2 }
 0x316   : > { %v1442_v23 = vpop.f32.mrf.mxu3 }
 0x317   : > { %v5435_v50 = vadd.f32 %v1442_v23, %v1353_v57 }
 0x318   : > { %v5433_v62 = vpop.f32.mrf.mxu1 }
 0x319   : > { %6139 = vst [vmem:[#allocation41_spill] sm:$0xff] %v5433_v62  ;;  %v1536_v10 = vpop.f32.mrf.mxu0 }
 0x31a   : > { %6140 = vst [vmem:[#allocation42_spill] sm:$0xff] %v5435_v50 }
 0x31b   : > { %v5439_v5 = vpop.f32.mrf.mxu2 }
 0x31c   : > { %6142 = vst [vmem:[#allocation44_spill] sm:$0xff] %v5439_v5 }
 0x31e   : > { %v5437_v16 = vpop.f32.mrf.mxu3 }
 0x31f   : > { %6141 = vst [vmem:[#allocation43_spill] sm:$0xff] %v5437_v16 }
 0x320   : > { %v1625_v25 = vpop.f32.mrf.mxu1 }
 0x321   : > { %v5441_v39 = vadd.f32 %v1625_v25, %v1536_v10  ;;  %v5449_v7 = vpop.f32.mrf.mxu0 }
 0x322   : > { %6147 = vst [vmem:[#allocation49_spill] sm:$0xff] %v5449_v7 }
 0x323   : > { %6143 = vst [vmem:[#allocation45_spill] sm:$0xff] %v5441_v39  ;;  %v1358_v33 = vpop.f32.mrf.mxu2 }
 0x326   : > { %v1447_v4 = vpop.f32.mrf.mxu3 }
 0x327   : > { %v5443_v37 = vadd.f32 %v1447_v4, %v1358_v33 }
 0x328   : > { %v5445_v0 = vpop.f32.mrf.mxu1 }
 0x329   : > { %6144 = vst [vmem:[#allocation46_spill] sm:$0xff] %v5443_v37 }
 0x32a   : > { %6145 = vst [vmem:[#allocation47_spill] sm:$0xff] %v5445_v0 }
 0x32b   : > { %v5451_v63 = vpop.f32.mrf.mxu2 }
 0x32c   : > { %6148 = vst [vmem:[#allocation50_spill] sm:$0xff] %v5451_v63 }
 0x32e   : > { %v5447_v59 = vpop.f32.mrf.mxu3 }
 0x32f   : > { %6146 = vst [vmem:[#allocation48_spill] sm:$0xff] %v5447_v59 }
 0x34d   : > { %v1900_v29 = vpop.f32.mrf.mxu1 }
 0x353   : > { %v5453_v21 = vpop.f32.mrf.mxu0  ;;  %v1915_v44 = vpop.f32.mrf.mxu3 }
 0x354   : > { %v1916_v35 = vadd.f32 %v1915_v44, %v1831_v9  ;;  %v4197_v44 = vld [vmem:[%s6088_s4] sm:$0xff] }
 0x355   : > { %v1902_v32 = vpop.f32.mrf.mxu1  ;;  %2419 = vmatmul.bf16.vlgmr.msrb.gmra.mxu0 %v4197_v44  ;;  %2508 = vmatmul.bf16.vlgmr.msrb.gmra.mxu1 %v4197_v44 }
 0x356   : > { %v1933_v10 = vmax.f32 %v1916_v35, 0.0 }
 0x359   : > { %v1886_v58 = vpop.f32.mrf.mxu2 }
 0x35a   : > { %v1887_v4 = vadd.f32 %v1886_v58, %v1831_v9  ;;  %v1811_v9 = vpop.permute.xlu1 %1810  ;;  %v1826_v58 = vpop.permute.xlu0 %1825 }
 0x35b   : > { %v1873_v12 = vpop.f32.mrf.mxu0  ;;  %v1917_v48 = vpop.f32.mrf.mxu3 }
 0x35c   : > { %v1918_v23 = vadd.f32 %v1917_v48, %v1836_v54  ;;  %v1932_v63 = vmax.f32 %v1887_v4, 0.0  ;;  %v1821_v48 = vpop.permute.xlu2 %1820 }
 0x35d   : > { %v1905_v57 = vpop.f32.mrf.mxu1 }
 0x35e   : > { %v1935_v25 = vmax.f32 %v1918_v23, 0.0 }
 0x360   : > { %v1975_v33 = vpack.c.bf16 %v1935_v25, %v1933_v10 }
 0x361   : > { %v1888_v0 = vpop.f32.mrf.mxu2 }
 0x362   : > { %v1889_v7 = vadd.f32 %v1888_v0, %v1836_v54  ;;  %2230 = vmatpush.bf16.msra.mxu3 %v1975_v33  ;;  %v1806_v33 = vpop.permute.xlu1 %1805  ;;  %v1801_v60 = vpop.permute.xlu0 %1800 }
 0x363   : > { %v1876_v59 = vpop.f32.mrf.mxu0  ;;  %v1903_v52 = vadd.f32 %v1902_v32, %v1806_v33 }
 0x364   : > { %v1934_v39 = vmax.f32 %v1889_v7, 0.0  ;;  %v1816_v54 = vpop.permute.xlu2 %1815  ;;  %v1877_v38 = vadd.f32 %v1876_v59, %v1811_v9 }
 0x365   : > { %v1907_v62 = vpop.f32.mrf.mxu1 }
 0x366   : > { %v1974_v36 = vpack.c.bf16 %v1934_v39, %v1932_v63  ;;  %v1908_v25 = vadd.f32 %v1907_v62, %v1816_v54  ;;  %v1906_v39 = vadd.f32 %v1905_v57, %v1811_v9  ;;  %v1901_v62 = vadd.f32 %v1900_v29, %v1801_v60  ;;  %v4202_v29 = vld [vmem:[%s6088_s4 + $0x28] sm:$0xff] }
 0x367   : > { %v1923_v57 = vmax.f32 %v1903_v52, 0.0 }
 0x368   : > { %2141 = vmatpush.bf16.msra.mxu2 %v1974_v36  ;;  %v4198_v36 = vld [vmem:[%s6088_s4 + $0x8] sm:$0xff]  ;;  %v1927_v44 = vmax.f32 %v1908_v25, 0.0  ;;  %v1921_v32 = vmax.f32 %v1901_v62, 0.0  ;;  %v1924_v25 = vmax.f32 %v1877_v38, 0.0  ;;  %v4200_v38 = vld [vmem:[%s6088_s4 + $0x18] sm:$0xff] }
 0x369   : > { %2424 = vmatmul.bf16.gmra.mxu0 %v4198_v36  ;;  %2513 = vmatmul.bf16.gmra.mxu1 %v4198_v36  ;;  %v4203_v36 = vld [vmem:[%s6088_s4 + $0x30] sm:$0xff]  ;;  %v4204_v62 = vld [vmem:[%s6088_s4 + $0x38] sm:$0xff] }
 0x36a   : > { %v5489_v59 = vpop.permute.xlu0 %2666 }
 0x36b   : > { %v1878_v16 = vpop.f32.mrf.mxu0 }
 0x36c   : > { %v1879_v41 = vadd.f32 %v1878_v16, %v1816_v54  ;;  %v4217_v54 = vld [vmem:[%s6089_s5 + $0x20] sm:$0xff] }
 0x36d   : > { %v1910_v35 = vpop.f32.mrf.mxu1 }
 0x36e   : > { %v1911_v0 = vadd.f32 %v1910_v35, %v1821_v48  ;;  %v1926_v1 = vmax.f32 %v1879_v41, 0.0  ;;  %v4201_v41 = vld [vmem:[%s6088_s4 + $0x20] sm:$0xff] }
 0x370   : > { %v1929_v63 = vmax.f32 %v1911_v0, 0.0 }
 0x373   : > { %v1881_v23 = vpop.f32.mrf.mxu0 }
 0x374   : > { %v1882_v5 = vadd.f32 %v1881_v23, %v1821_v48  ;;  %v1872_v23 = vadd.f32 %v5453_v21, %v1801_v60  ;;  %v4215_v60 = vld [vmem:[%s6089_s5 + $0x10] sm:$0xff]  ;;  %v5495_v21 = vpop.permute.xlu1 %2741 }
 0x375   : > { %v1912_v10 = vpop.f32.mrf.mxu1  ;;  %6149 = vst [vmem:[#allocation51_spill] sm:$0xff] %v5495_v21 }
 0x376   : > { %v1913_v7 = vadd.f32 %v1912_v10, %v1826_v58  ;;  %v1925_v10 = vmax.f32 %v1906_v39, 0.0  ;;  %v1928_v40 = vmax.f32 %v1882_v5, 0.0  ;;  %v1920_v52 = vmax.f32 %v1872_v23, 0.0  ;;  %v4216_v5 = vld [vmem:[%s6089_s5 + $0x18] sm:$0xff] }
 0x378   : > { %v1931_v4 = vmax.f32 %v1913_v7, 0.0  ;;  %v1971_v0 = vpack.c.bf16 %v1927_v44, %v1925_v10  ;;  %v1874_v7 = vadd.f32 %v1873_v12, %v1806_v33  ;;  %v5498_v12 = vpop.permute.xlu0 %2651  ;;  %v4218_v33 = vld [vmem:[%s6089_s5 + $0x28] sm:$0xff] }
 0x37a   : > { %v1973_v28 = vpack.c.bf16 %v1931_v4, %v1929_v63  ;;  %v1922_v16 = vmax.f32 %v1874_v7, 0.0  ;;  %v5514_v4 = vpop.permute.xlu2 %2661  ;;  %v4219_v7 = vld [vmem:[%s6089_s5 + $0x30] sm:$0xff] }
 0x37b   : > { %v1883_v42 = vpop.f32.mrf.mxu0 }
 0x37c   : > { %v1884_v35 = vadd.f32 %v1883_v42, %v1826_v58  ;;  %2231 = vmatpush.bf16.msra.mxu3 %v1973_v28  ;;  %v1969_v42 = vpack.c.bf16 %v1923_v57, %v1921_v32  ;;  %v1970_v58 = vpack.c.bf16 %v1926_v1, %v1924_v25  ;;  %v4213_v28 = vld [vmem:[%s6089_s5] sm:$0xff]  ;;  %v4214_v1 = vld [vmem:[%s6089_s5 + $0x8] sm:$0xff]  ;;  %v5500_v9 = vpop.permute.xlu1 %2656 }
 0x37d   : > { %v4205_v25 = vld [vmem:[%s6088_s4 + $0x40] sm:$0xff] }
 0x37e   : > { %v1930_v51 = vmax.f32 %v1884_v35, 0.0 }
 0x380   : > { %v1972_v48 = vpack.c.bf16 %v1930_v51, %v1928_v40  ;;  %2232 = vmatpush.bf16.msra.mxu3 %v1971_v0  ;;  %v1968_v51 = vpack.c.bf16 %v1922_v16, %v1920_v52  ;;  %v4199_v40 = vld [vmem:[%s6088_s4 + $0x10] sm:$0xff]  ;;  %v5509_v39 = vpop.permute.xlu0 %2736 }
 0x381   : > { %2429 = vmatmul.bf16.gmra.mxu0 %v4199_v40  ;;  %2518 = vmatmul.bf16.gmra.mxu1 %v4199_v40  ;;  %6150 = vst [vmem:[#allocation52_spill] sm:$0xff] %v5509_v39  ;;  %v4220_v40 = vld [vmem:[%s6089_s5 + $0x38] sm:$0xff] }
 0x382   : > { %2142 = vmatpush.bf16.msra.mxu2 %v1972_v48  ;;  %v5527_v10 = vpop.permute.xlu2 %2746 }
 0x383   : > { %6153 = vst [vmem:[#allocation55_spill] sm:$0xff] %v5527_v10 }
 0x384   : > { %2233 = vmatpush.bf16.msra.mxu3 %v1969_v42  ;;  %v5512_v63 = vpop.permute.xlu1 %2641 }
 0x386   : > { %2143 = vmatpush.bf16.msra.mxu2 %v1970_v58 }
 0x387   : > { %3995 = vmatmul.msk.bf16.vlgmr.msra.gmra.mxu3 %vm2088_vm1, %v4213_v28 }
 0x388   : > { %v5519_v44 = vpop.permute.xlu0 %2721 }
 0x389   : > { %6151 = vst [vmem:[#allocation53_spill] sm:$0xff] %v5519_v44 }
 0x38a   : > { %2144 = vmatpush.bf16.msra.mxu2 %v1968_v51  ;;  %v5537_v48 = vpop.permute.xlu2 %2731 }
 0x38b   : > { %6155 = vst [vmem:[#allocation57_spill] sm:$0xff] %v5537_v48 }
 0x38c   : > { %v5521_v35 = vpop.permute.xlu1 %2726 }
 0x38d   : > { %3979 = vmatmul.msk.bf16.vlgmr.msra.gmra.mxu2 %vm2088_vm1, %v4213_v28  ;;  %6152 = vst [vmem:[#allocation54_spill] sm:$0xff] %v5521_v35 }
 0x390   : > { %v5530_v57 = vpop.permute.xlu0 %2636 }
 0x391   : > { %2434 = vmatmul.bf16.gmra.mxu0 %v4200_v38  ;;  %2523 = vmatmul.bf16.gmra.mxu1 %v4200_v38 }
 0x392   : > { %v5548_v58 = vpop.permute.xlu2 %2646 }
 0x394   : > { %v5532_v0 = vpop.permute.xlu1 %2711 }
 0x395   : > { %6154 = vst [vmem:[#allocation56_spill] sm:$0xff] %v5532_v0 }
 0x397   : > { %3996 = vmatmul.msk.bf16.gmra.mxu3 %vm2088_vm1, %v4214_v1 }
 0x398   : > { %v5540_v23 = vpop.permute.xlu0 %2621 }
 0x39c   : > { %v5545_v16 = vpop.permute.xlu1 %2626 }
 0x39d   : > { %3980 = vmatmul.msk.bf16.gmra.mxu2 %vm2088_vm1, %v4214_v1 }
 0x3a0   : > { %v5550_v51 = vpop.permute.xlu0 %2706 }
 0x3a1   : > { %2439 = vmatmul.bf16.gmra.mxu0 %v4201_v41  ;;  %2528 = vmatmul.bf16.gmra.mxu1 %v4201_v41  ;;  %v4206_v41 = vld [vmem:[%s6088_s4 + $0x48] sm:$0xff] }
 0x3a4   : > { %v5555_v1 = vpop.permute.xlu1 %2611 }
 0x3a7   : > { %3997 = vmatmul.msk.bf16.gmra.mxu3 %vm2088_vm1, %v4215_v60 }
 0x3ad   : > { %3981 = vmatmul.msk.bf16.gmra.mxu2 %vm2088_vm1, %v4215_v60  ;;  %v5558_v60 = vpop.permute.xlu2 %2631 }
 0x3b1   : > { %2444 = vmatmul.bf16.gmra.mxu0 %v4202_v29  ;;  %2533 = vmatmul.bf16.gmra.mxu1 %v4202_v29  ;;  %v5564_v29 = vpop.permute.xlu0 %2691 }
 0x3b7   : > { %3998 = vmatmul.msk.bf16.gmra.mxu3 %vm2088_vm1, %v4216_v5 }
 0x3bd   : > { %3982 = vmatmul.msk.bf16.gmra.mxu2 %vm2088_vm1, %v4216_v5 }
 0x3c1   : > { %2449 = vmatmul.bf16.gmra.mxu0 %v4203_v36  ;;  %2538 = vmatmul.bf16.gmra.mxu1 %v4203_v36 }
 0x3c7   : > { %3999 = vmatmul.msk.bf16.gmra.mxu3 %vm2088_vm1, %v4217_v54 }
 0x3cd   : > { %3983 = vmatmul.msk.bf16.gmra.mxu2 %vm2088_vm1, %v4217_v54  ;;  %v5566_v54 = vpop.permute.xlu1 %2696 }
 0x3d1   : > { %2454 = vmatmul.bf16.gmra.mxu0 %v4204_v62  ;;  %2543 = vmatmul.bf16.gmra.mxu1 %v4204_v62  ;;  %v5568_v62 = vpop.permute.xlu2 %2716 }
 0x3d2   : > { %v2420_v32 = vpop.f32.mrf.mxu0  ;;  %v2509_v42 = vpop.f32.mrf.mxu1  ;;  %6156 = vst [vmem:[#allocation58_spill] sm:$0xff] %v5568_v62 }
 0x3d7   : > { %4000 = vmatmul.msk.bf16.gmra.mxu3 %vm2088_vm1, %v4218_v33 }
 0x3d9   : > { %v5582_v8 = vpop.permute.xlu2 %2701 }
 0x3da   : > { %v2422_v28 = vpop.f32.mrf.mxu0  ;;  %v2511_v52 = vpop.f32.mrf.mxu1 }
 0x3dd   : > { %3984 = vmatmul.msk.bf16.gmra.mxu2 %vm2088_vm1, %v4218_v33 }
 0x3e1   : > { %2459 = vmatmul.bf16.gmra.mxu0 %v4205_v25  ;;  %2548 = vmatmul.bf16.gmra.mxu1 %v4205_v25  ;;  %v2607_v25 = vpop.permute.xlu0 %2606 }
 0x3e6   : > { %v2425_v38 = vpop.f32.mrf.mxu0  ;;  %v2514_v5 = vpop.f32.mrf.mxu1 }
 0x3e7   : > { %4001 = vmatmul.msk.bf16.gmra.mxu3 %vm2088_vm1, %v4219_v7 }
 0x3e9   : > { %v2592_v11 = vpop.permute.xlu0 %2591 }
 0x3ed   : > { %3985 = vmatmul.msk.bf16.gmra.mxu2 %vm2088_vm1, %v4219_v7  ;;  %v4221_v7 = vld [vmem:[%s6089_s5 + $0x40] sm:$0xff] }
 0x3ee   : > { %v2427_v36 = vpop.f32.mrf.mxu0  ;;  %v2516_v33 = vpop.f32.mrf.mxu1 }
 0x3f1   : > { %2464 = vmatmul.bf16.gmra.mxu0 %v4206_v41  ;;  %2553 = vmatmul.bf16.gmra.mxu1 %v4206_v41  ;;  %v5576_v41 = vpop.permute.xlu1 %2681 }
 0x3f7   : > { %4002 = vmatmul.msk.bf16.gmra.mxu3 %vm2088_vm1, %v4220_v40 }
 0x3fd   : > { %3986 = vmatmul.msk.bf16.gmra.mxu2 %vm2088_vm1, %v4220_v40  ;;  %v4207_v40 = vld [vmem:[%s6088_s4 + $0x50] sm:$0xff] }
 0x3fe   : > { %v5574_v26 = vpop.f32.mrf.mxu0  ;;  %v2519_v34 = vpop.f32.mrf.mxu1 }
 0x401   : > { %2469 = vmatmul.bf16.gmra.mxu0 %v4207_v40  ;;  %2558 = vmatmul.bf16.gmra.mxu1 %v4207_v40  ;;  %v5589_v40 = vpop.permute.xlu2 %2616 }
 0x406   : > { %v5584_v55 = vpop.f32.mrf.mxu0  ;;  %v2521_v27 = vpop.f32.mrf.mxu1 }
 0x407   : > { %4003 = vmatmul.msk.bf16.gmra.mxu3 %vm2088_vm1, %v4221_v7 }
 0x409   : > { %v2602_v18 = vpop.permute.xlu2 %2601 }
 0x40a   : > { %v2235_v15 = vpop.f32.mrf.mxu3 }
 0x40b   : > { %v2510_v49 = vadd.f32 %v2509_v42, %v2235_v15  ;;  %v2597_v15 = vpop.permute.xlu1 %2596 }
 0x40d   : > { %3987 = vmatmul.msk.bf16.gmra.mxu2 %vm2088_vm1, %v4221_v7  ;;  %v2750_v13 = vadd.f32 %v2592_v11, %v2510_v49 }
 0x40e   : > { %v5592_v24 = vpop.f32.mrf.mxu0 }
 0x40f   : > { %v2814_v7 = vmax.f32 %v2750_v13, 0.0 }
 0x410   : > { %v2146_v53 = vpop.f32.mrf.mxu2 }
 0x411   : > { %v2421_v56 = vadd.f32 %v2420_v32, %v2146_v53 }
 0x412   : > { %v2237_v46 = vpop.f32.mrf.mxu3 }
 0x413   : > { %v2512_v22 = vadd.f32 %v2511_v52, %v2237_v46  ;;  %v2749_v32 = vadd.f32 %v2592_v11, %v2421_v56  ;;  %v4208_v46 = vld [vmem:[%s6088_s4 + $0x58] sm:$0xff] }
 0x414   : > { %2474 = vmatmul.bf16.gmra.mxu0 %v4208_v46  ;;  %2563 = vmatmul.bf16.gmra.mxu1 %v4208_v46 }
 0x415   : > { %v2752_v42 = vadd.f32 %v2597_v15, %v2512_v22  ;;  %v2524_v22 = vpop.f32.mrf.mxu1  ;;  %v2813_v13 = vmax.f32 %v2749_v32, 0.0 }
 0x417   : > { %v2816_v45 = vmax.f32 %v2752_v42, 0.0  ;;  %4004 = vmatmul.msk.bf16.gmra.mxu3 %vm2088_vm1, %v4222_v17 }
 0x418   : > { %v2148_v53 = vpop.f32.mrf.mxu2 }
 0x419   : > { %v2423_v30 = vadd.f32 %v2422_v28, %v2148_v53  ;;  %v5597_v49 = vpack.c.bf16 %v2816_v45, %v2814_v7  ;;  %v5602_v53 = vpop.f32.mrf.mxu0 }
 0x41a   : > { %v2240_v14 = vpop.f32.mrf.mxu3 }
 0x41b   : > { %6157 = vst [vmem:[#allocation59_spill] sm:$0xff] %v5597_v49  ;;  %v2751_v52 = vadd.f32 %v2597_v15, %v2423_v30  ;;  %v2515_v6 = vadd.f32 %v2514_v5, %v2240_v14  ;;  %v4223_v14 = vld [vmem:[%s6089_s5 + $0x50] sm:$0xff] }
 0x41d   : > { %v2815_v42 = vmax.f32 %v2751_v52, 0.0  ;;  %3988 = vmatmul.msk.bf16.gmra.mxu2 %vm2088_vm1, %v4222_v17  ;;  %v2526_v45 = vpop.f32.mrf.mxu1  ;;  %v2754_v7 = vadd.f32 %v2602_v18, %v2515_v6 }
 0x41f   : > { %v5600_v11 = vpack.c.bf16 %v2815_v42, %v2813_v13  ;;  %v2818_v15 = vmax.f32 %v2754_v7, 0.0  ;;  %v4209_v13 = vld [vmem:[%s6088_s4 + $0x60] sm:$0xff] }
 0x420   : > { %v2151_v56 = vpop.f32.mrf.mxu2 }
 0x421   : > { %v2426_v28 = vadd.f32 %v2425_v38, %v2151_v56  ;;  %v5608_v38 = vpop.f32.mrf.mxu0 }
 0x422   : > { %v2242_v43 = vpop.f32.mrf.mxu3 }
 0x423   : > { %v2517_v30 = vadd.f32 %v2516_v33, %v2242_v43  ;;  %v2753_v46 = vadd.f32 %v2602_v18, %v2426_v28 }
 0x424   : > { %2479 = vmatmul.bf16.gmra.mxu0 %v4209_v13  ;;  %2568 = vmatmul.bf16.gmra.mxu1 %v4209_v13 }
 0x425   : > { %v2756_v5 = vadd.f32 %v2607_v25, %v2517_v30  ;;  %v2529_v42 = vpop.f32.mrf.mxu1  ;;  %v2817_v7 = vmax.f32 %v2753_v46, 0.0 }
 0x427   : > { %v2820_v32 = vmax.f32 %v2756_v5, 0.0  ;;  %4005 = vmatmul.msk.bf16.gmra.mxu3 %vm2088_vm1, %v4223_v14 }
 0x428   : > { %v2153_v17 = vpop.f32.mrf.mxu2 }
 0x429   : > { %v2428_v52 = vadd.f32 %v2427_v36, %v2153_v17  ;;  %v5613_v6 = vpack.c.bf16 %v2820_v32, %v2818_v15  ;;  %v5619_v5 = vpop.f32.mrf.mxu0 }
 0x42a   : > { %v2245_v33 = vpop.f32.mrf.mxu3 }
 0x42b   : > { %v2755_v43 = vadd.f32 %v2607_v25, %v2428_v52  ;;  %v2520_v56 = vadd.f32 %v2519_v34, %v2245_v33  ;;  %v4224_v34 = vld [vmem:[%s6089_s5 + $0x58] sm:$0xff] }
 0x42d   : > { %v2819_v30 = vmax.f32 %v2755_v43, 0.0  ;;  %3989 = vmatmul.msk.bf16.gmra.mxu2 %vm2088_vm1, %v4223_v14  ;;  %v5621_v15 = vpop.f32.mrf.mxu1  ;;  %v2758_v25 = vadd.f32 %v5555_v1, %v2520_v56 }
 0x42f   : > { %v5616_v18 = vpack.c.bf16 %v2819_v30, %v2817_v7  ;;  %v2822_v14 = vmax.f32 %v2758_v25, 0.0 }
 0x430   : > { %v2156_v36 = vpop.f32.mrf.mxu2 }
 0x431   : > { %v2431_v28 = vadd.f32 %v5574_v26, %v2156_v36  ;;  %v5631_v33 = vpop.f32.mrf.mxu0 }
 0x432   : > { %v2247_v17 = vpop.f32.mrf.mxu3 }
 0x433   : > { %v2522_v32 = vadd.f32 %v2521_v27, %v2247_v17  ;;  %v2757_v26 = vadd.f32 %v5555_v1, %v2431_v28  ;;  %v4210_v27 = vld [vmem:[%s6088_s4 + $0x68] sm:$0xff] }
 0x434   : > { %2484 = vmatmul.bf16.gmra.mxu0 %v4210_v27  ;;  %2573 = vmatmul.bf16.gmra.mxu1 %v4210_v27 }
 0x435   : > { %v2760_v46 = vadd.f32 %v5589_v40, %v2522_v32  ;;  %v2821_v17 = vmax.f32 %v2757_v26, 0.0  ;;  %v5640_v1 = vpop.f32.mrf.mxu1 }
 0x437   : > { %v2824_v52 = vmax.f32 %v2760_v46, 0.0  ;;  %4006 = vmatmul.msk.bf16.gmra.mxu3 %vm2088_vm1, %v4224_v34 }
 0x438   : > { %v2158_v13 = vpop.f32.mrf.mxu2 }
 0x439   : > { %v2433_v43 = vadd.f32 %v5584_v55, %v2158_v13  ;;  %v5636_v56 = vpack.c.bf16 %v2824_v52, %v2822_v14  ;;  %v5645_v46 = vpop.f32.mrf.mxu0 }
 0x43a   : > { %v2250_v30 = vpop.f32.mrf.mxu3 }
 0x43b   : > { %v2759_v7 = vadd.f32 %v5589_v40, %v2433_v43  ;;  %v2525_v36 = vadd.f32 %v2524_v22, %v2250_v30  ;;  %v4225_v22 = vld [vmem:[%s6089_s5 + $0x60] sm:$0xff] }
 0x43d   : > { %v2823_v25 = vmax.f32 %v2759_v7, 0.0  ;;  %3990 = vmatmul.msk.bf16.gmra.mxu2 %vm2088_vm1, %v4224_v34  ;;  %v2762_v40 = vadd.f32 %v5540_v23, %v2525_v36  ;;  %v5652_v34 = vpop.f32.mrf.mxu1 }
 0x43f   : > { %v5642_v55 = vpack.c.bf16 %v2823_v25, %v2821_v17  ;;  %v2826_v26 = vmax.f32 %v2762_v40, 0.0 }
 0x440   : > { %v2161_v28 = vpop.f32.mrf.mxu2 }
 0x441   : > { %v2436_v32 = vadd.f32 %v5592_v24, %v2161_v28  ;;  %v2450_v30 = vpop.f32.mrf.mxu0 }
 0x442   : > { %v2252_v14 = vpop.f32.mrf.mxu3 }
 0x443   : > { %v2527_v52 = vadd.f32 %v2526_v45, %v2252_v14  ;;  %v2761_v24 = vadd.f32 %v5540_v23, %v2436_v32  ;;  %v4211_v45 = vld [vmem:[%s6088_s4 + $0x70] sm:$0xff] }
 0x444   : > { %2489 = vmatmul.bf16.gmra.mxu0 %v4211_v45  ;;  %2578 = vmatmul.bf16.gmra.mxu1 %v4211_v45  ;;  %v4227_v45 = vld [vmem:[%s6089_s5 + $0x70] sm:$0xff] }
 0x445   : > { %v2764_v13 = vadd.f32 %v5545_v16, %v2527_v52  ;;  %v2825_v14 = vmax.f32 %v2761_v24, 0.0  ;;  %v2539_v52 = vpop.f32.mrf.mxu1 }
 0x447   : > { %v2828_v43 = vmax.f32 %v2764_v13, 0.0  ;;  %4007 = vmatmul.msk.bf16.gmra.mxu3 %vm2088_vm1, %v4225_v22 }
 0x448   : > { %v2163_v27 = vpop.f32.mrf.mxu2 }
 0x449   : > { %v2438_v7 = vadd.f32 %v5602_v53, %v2163_v27  ;;  %v5660_v36 = vpack.c.bf16 %v2828_v43, %v2826_v26 }
 0x44a   : > { %v2255_v25 = vpop.f32.mrf.mxu3 }
 0x44b   : > { %v2763_v17 = vadd.f32 %v5545_v16, %v2438_v7  ;;  %v5663_v28 = vadd.f32 %v2529_v42, %v2255_v25  ;;  %v4226_v16 = vld [vmem:[%s6089_s5 + $0x68] sm:$0xff]  ;;  %v2452_v42 = vpop.f32.mrf.mxu0 }
 0x44d   : > { %v2827_v40 = vmax.f32 %v2763_v17, 0.0  ;;  %3991 = vmatmul.msk.bf16.gmra.mxu2 %vm2088_vm1, %v4225_v22  ;;  %v4212_v22 = vld [vmem:[%s6088_s4 + $0x78] sm:$0xff]  ;;  %v2541_v27 = vpop.f32.mrf.mxu1 }
 0x44f   : > { %v5666_v23 = vpack.c.bf16 %v2827_v40, %v2825_v14 }
 0x450   : > { %v2166_v53 = vpop.f32.mrf.mxu2 }
 0x451   : > { %v5669_v32 = vadd.f32 %v5608_v38, %v2166_v53 }
 0x452   : > { %v5671_v13 = vpop.f32.mrf.mxu3 }
 0x453   : > { %v2455_v38 = vpop.f32.mrf.mxu0 }
 0x454   : > { %2494 = vmatmul.bf16.gmra.mxu0 %v4212_v22  ;;  %2583 = vmatmul.bf16.gmra.mxu1 %v4212_v22 }
 0x455   : > { %v5688_v17 = vpop.f32.mrf.mxu1 }
 0x457   : > { %4008 = vmatmul.msk.bf16.gmra.mxu3 %vm2088_vm1, %v4226_v16 }
 0x458   : > { %v2168_v26 = vpop.f32.mrf.mxu2 }
 0x45a   : > { %v5680_v43 = vpop.f32.mrf.mxu3 }
 0x45b   : > { %v2457_v14 = vpop.f32.mrf.mxu0 }
 0x45d   : > { %3992 = vmatmul.msk.bf16.gmra.mxu2 %vm2088_vm1, %v4226_v16  ;;  %v5692_v53 = vpop.f32.mrf.mxu1 }
 0x460   : > { %v2171_v24 = vpop.f32.mrf.mxu2 }
 0x461   : > { %v2446_v49 = vadd.f32 %v5631_v33, %v2171_v24 }
 0x462   : > { %v5683_v7 = vpop.f32.mrf.mxu3 }
 0x463   : > { %v2460_v3 = vpop.f32.mrf.mxu0 }
 0x465   : > { %v2549_v61 = vpop.f32.mrf.mxu1 }
 0x467   : > { %4009 = vmatmul.msk.bf16.gmra.mxu3 %vm2088_vm1, %v4227_v45 }
 0x468   : > { %v2173_v25 = vpop.f32.mrf.mxu2 }
 0x46a   : > { %v2265_v40 = vpop.f32.mrf.mxu3 }
 0x46b   : > { %v2540_v16 = vadd.f32 %v2539_v52, %v2265_v40  ;;  %v2462_v40 = vpop.f32.mrf.mxu0 }
 0x46d   : > { %3993 = vmatmul.msk.bf16.gmra.mxu2 %vm2088_vm1, %v4227_v45  ;;  %v2774_v50 = vadd.f32 %v5498_v12, %v2540_v16  ;;  %v2551_v16 = vpop.f32.mrf.mxu1 }
 0x46f   : > { %v2838_v31 = vmax.f32 %v2774_v50, 0.0  ;;  %v5705_v50 = vpop.permute.xlu2 %2686 }
 0x470   : > { %v2176_v22 = vpop.f32.mrf.mxu2 }
 0x472   : > { %v2267_v37 = vpop.f32.mrf.mxu3 }
 0x473   : > { %v2542_v2 = vadd.f32 %v2541_v27, %v2267_v37  ;;  %v2465_v44 = vpop.f32.mrf.mxu0 }
 0x475   : > { %v2776_v19 = vadd.f32 %v5500_v9, %v2542_v2 }
 0x477   : > { %v2840_v47 = vmax.f32 %v2776_v19, 0.0  ;;  %4010 = vmatmul.msk.bf16.gmra.mxu3 %vm2088_vm1, %v4228_v20  ;;  %v2451_v19 = vadd.f32 %v2450_v30, %v2176_v22  ;;  %v2443_v30 = vadd.f32 %v5619_v5, %v2168_v26  ;;  %v2677_v5 = vpop.permute.xlu0 %2676  ;;  %v2765_v26 = vadd.f32 %v5558_v60, %v5669_v32 }
 0x478   : > { %v2178_v45 = vpop.f32.mrf.mxu2 }
 0x479   : > { %v5700_v0 = vpack.c.bf16 %v2840_v47, %v2838_v31  ;;  %v2453_v35 = vadd.f32 %v2452_v42, %v2178_v45  ;;  %v2448_v47 = vadd.f32 %v5645_v46, %v2173_v25  ;;  %v2767_v33 = vadd.f32 %v5530_v57, %v2443_v30 }
 0x47a   : > { %v5702_v52 = vpop.f32.mrf.mxu3 }
 0x47b   : > { %v2775_v31 = vadd.f32 %v5500_v9, %v2453_v35  ;;  %v2467_v25 = vpop.f32.mrf.mxu0  ;;  %v2769_v9 = vadd.f32 %v5512_v63, %v2446_v49 }
 0x47d   : > { %3994 = vmatmul.msk.bf16.gmra.mxu2 %vm2088_vm1, %v4228_v20 }
 0x480   : > { %v2181_v37 = vpop.f32.mrf.mxu2 }
 0x481   : > { %v2456_v62 = vadd.f32 %v2455_v38, %v2181_v37  ;;  %v2773_v38 = vadd.f32 %v5498_v12, %v2451_v19  ;;  %v2554_v37 = vpop.f32.mrf.mxu1  ;;  %v2833_v19 = vmax.f32 %v2769_v9, 0.0 }
 0x482   : > { %v2272_v27 = vpop.f32.mrf.mxu3 }
 0x483   : > { %v2777_v48 = vadd.f32 %v5514_v4, %v2456_v62  ;;  %v2771_v62 = vadd.f32 %v5548_v58, %v2448_v47  ;;  %v2837_v35 = vmax.f32 %v2773_v38, 0.0 }
 0x485   : > { %v2841_v42 = vmax.f32 %v2777_v48, 0.0  ;;  %v2835_v12 = vmax.f32 %v2771_v62, 0.0 }
 0x487   : > { %v2887_v49 = vpack.c.bf16 %v2835_v12, %v2833_v19  ;;  %v2547_v12 = vadd.f32 %v5692_v53, %v2272_v27 }
 0x488   : > { %v2183_v2 = vpop.f32.mrf.mxu2 }
 0x489   : > { %v2458_v10 = vadd.f32 %v2457_v14, %v2183_v2  ;;  %v2839_v14 = vmax.f32 %v2775_v31, 0.0  ;;  %v2831_v31 = vmax.f32 %v2767_v33, 0.0 }
 0x48a   : > { %v2275_v20 = vpop.f32.mrf.mxu3 }
 0x48b   : > { %v2779_v39 = vadd.f32 %v5489_v59, %v2458_v10  ;;  %v2550_v21 = vadd.f32 %v2549_v61, %v2275_v20  ;;  %v2672_v61 = vpop.permute.xlu2 %2671  ;;  %v2556_v20 = vpop.f32.mrf.mxu1 }
 0x48d   : > { %v2843_v45 = vmax.f32 %v2779_v39, 0.0  ;;  %v2889_v39 = vpack.c.bf16 %v2839_v14, %v2837_v35  ;;  %v2782_v24 = vadd.f32 %v2672_v61, %v2550_v21  ;;  %v2470_v14 = vpop.f32.mrf.mxu0 }
 0x48f   : > { %v2891_v22 = vpack.c.bf16 %v2843_v45, %v2841_v42  ;;  %v2829_v45 = vmax.f32 %v2765_v26, 0.0 }
 0x490   : > { %v2186_v46 = vpop.f32.mrf.mxu2 }
 0x491   : > { %v2461_v10 = vadd.f32 %v2460_v3, %v2186_v46  ;;  %3005 = vmatpush.bf16.msrb.mxu2 %v2891_v22  ;;  %v2846_v3 = vmax.f32 %v2782_v24, 0.0  ;;  %v2885_v46 = vpack.c.bf16 %v2831_v31, %v2829_v45  ;;  %v2780_v24 = vadd.f32 %v5489_v59, %v2547_v12 }
 0x492   : > { %v2277_v48 = vpop.f32.mrf.mxu3 }
 0x493   : > { %v2552_v2 = vadd.f32 %v2551_v16, %v2277_v48  ;;  %v2781_v30 = vadd.f32 %v2672_v61, %v2461_v10  ;;  %v2545_v10 = vadd.f32 %v5688_v17, %v5702_v52 }
 0x495   : > { %3006 = vmatpush.bf16.msrb.mxu2 %v2889_v39  ;;  %v2784_v47 = vadd.f32 %v2677_v5, %v2552_v2  ;;  %v2845_v9 = vmax.f32 %v2781_v30, 0.0  ;;  %v2778_v26 = vadd.f32 %v5514_v4, %v2545_v10 }
 0x497   : > { %v2848_v38 = vmax.f32 %v2784_v47, 0.0  ;;  %v2535_v47 = vadd.f32 %v5640_v1, %v5680_v43 }
 0x498   : > { %v2188_v42 = vpop.f32.mrf.mxu2 }
 0x499   : > { %v2463_v62 = vadd.f32 %v2462_v40, %v2188_v42  ;;  %3007 = vmatpush.bf16.msrb.mxu2 %v2887_v49  ;;  %v5719_v21 = vpack.c.bf16 %v2848_v38, %v2846_v3  ;;  %v2559_v40 = vpop.f32.mrf.mxu1 }
 0x49a   : > { %v2280_v22 = vpop.f32.mrf.mxu3 }
 0x49b   : > { %v2783_v16 = vadd.f32 %v2677_v5, %v2463_v62  ;;  %v2555_v32 = vadd.f32 %v2554_v37, %v2280_v22  ;;  %v2472_v5 = vpop.f32.mrf.mxu0 }
 0x49d   : > { %v2847_v35 = vmax.f32 %v2783_v16, 0.0  ;;  %3008 = vmatpush.bf16.msrb.mxu2 %v2885_v46  ;;  %v2786_v37 = vadd.f32 %v5576_v41, %v2555_v32 }
 0x49f   : > { %v5721_v33 = vpack.c.bf16 %v2847_v35, %v2845_v9  ;;  %v2850_v27 = vmax.f32 %v2786_v37, 0.0 }
 0x4a0   : > { %v2191_v48 = vpop.f32.mrf.mxu2 }
 0x4a1   : > { %v2466_v39 = vadd.f32 %v2465_v44, %v2191_v48  ;;  %3009 = vmatpush.bf16.msrb.mxu2 %v5666_v23  ;;  %v2537_v44 = vadd.f32 %v5652_v34, %v5683_v7  ;;  %v2844_v23 = vmax.f32 %v2780_v24, 0.0  ;;  %v2532_v34 = vadd.f32 %v5621_v15, %v5671_v13 }
 0x4a2   : > { %v2282_v61 = vpop.f32.mrf.mxu3 }
 0x4a3   : > { %v2557_v2 = vadd.f32 %v2556_v20, %v2282_v61  ;;  %v2785_v52 = vadd.f32 %v5576_v41, %v2466_v39  ;;  %v2561_v20 = vpop.f32.mrf.mxu1  ;;  %v2772_v7 = vadd.f32 %v5548_v58, %v2537_v44  ;;  %v2475_v1 = vpop.f32.mrf.mxu0  ;;  %v2766_v58 = vadd.f32 %v5558_v60, %v5663_v28 }
 0x4a5   : > { %3010 = vmatpush.bf16.msrb.mxu2 %v5642_v55  ;;  %v2788_v53 = vadd.f32 %v5705_v50, %v2557_v2  ;;  %v2842_v55 = vmax.f32 %v2778_v26, 0.0  ;;  %v2836_v42 = vmax.f32 %v2772_v7, 0.0  ;;  %v2830_v46 = vmax.f32 %v2766_v58, 0.0 }
 0x4a7   : > { %v2852_v19 = vmax.f32 %v2788_v53, 0.0  ;;  %v2892_v3 = vpack.c.bf16 %v2844_v23, %v2842_v55 }
 0x4a8   : > { %v2193_v17 = vpop.f32.mrf.mxu2 }
 0x4a9   : > { %v2468_v59 = vadd.f32 %v2467_v25, %v2193_v17  ;;  %3011 = vmatpush.bf16.msrb.mxu2 %v5616_v18  ;;  %v5738_v31 = vpack.c.bf16 %v2852_v19, %v2850_v27  ;;  %v2849_v25 = vmax.f32 %v2785_v52, 0.0  ;;  %v2770_v18 = vadd.f32 %v5512_v63, %v2535_v47 }
 0x4aa   : > { %v2285_v49 = vpop.f32.mrf.mxu3 }
 0x4ab   : > { %v2787_v4 = vadd.f32 %v5705_v50, %v2468_v59  ;;  %v2560_v41 = vadd.f32 %v2559_v40, %v2285_v49  ;;  %v2768_v50 = vadd.f32 %v5530_v57, %v2532_v34  ;;  %v2834_v15 = vmax.f32 %v2770_v18, 0.0  ;;  %v2564_v22 = vpop.f32.mrf.mxu1  ;;  %v2477_v12 = vpop.f32.mrf.mxu0  ;;  %v6158_v59 = vld [vmem:[#allocation59_spill] sm:$0xff] }
 0x4ad   : > { %v2851_v38 = vmax.f32 %v2787_v4, 0.0  ;;  %3012 = vmatpush.bf16.msrb.mxu2 %v5600_v11  ;;  %v2832_v62 = vmax.f32 %v2768_v50, 0.0  ;;  %v2790_v11 = vadd.f32 %v5564_v29, %v2560_v41  ;;  %v2888_v16 = vpack.c.bf16 %v2836_v42, %v2834_v15 }
 0x4af   : > { %v5746_v43 = vpack.c.bf16 %v2851_v38, %v2849_v25  ;;  %v2854_v57 = vmax.f32 %v2790_v11, 0.0  ;;  %v2886_v35 = vpack.c.bf16 %v2832_v62, %v2830_v46 }
 0x4b0   : > { %v2196_v45 = vpop.f32.mrf.mxu2 }
 0x4b1   : > { %3103 = vmatpush.bf16.msra.mxu2 %v2892_v3  ;;  %v2471_v30 = vadd.f32 %v2470_v14, %v2196_v45 }
 0x4b2   : > { %v2287_v13 = vpop.f32.mrf.mxu3 }
 0x4b3   : > { %v2562_v63 = vadd.f32 %v2561_v20, %v2287_v13  ;;  %v2789_v60 = vadd.f32 %v5564_v29, %v2471_v30  ;;  %v2566_v24 = vpop.f32.mrf.mxu1  ;;  %v2480_v29 = vpop.f32.mrf.mxu0 }
 0x4b5   : > { %3104 = vmatpush.bf16.msra.mxu2 %v5700_v0  ;;  %v2792_v32 = vadd.f32 %v5566_v54, %v2562_v63  ;;  %v2853_v10 = vmax.f32 %v2789_v60, 0.0 }
 0x4b7   : > { %v2856_v9 = vmax.f32 %v2792_v32, 0.0  ;;  %v4077_v32 = vld [vmem:[%s6090_s6] sm:$0xf] }
 0x4b8   : > { %v2198_v14 = vpop.f32.mrf.mxu2 }
 0x4b9   : > { %3105 = vmatpush.bf16.msra.mxu2 %v2888_v16  ;;  %v2473_v28 = vadd.f32 %v2472_v5, %v2198_v14  ;;  %v5755_v0 = vpack.c.bf16 %v2856_v9, %v2854_v57  ;;  %v4230_v57 = vld [vmem:[%s6090_s6 + $0x4] sm:$0xf0] }
 0x4ba   : > { %v2290_v39 = vpop.f32.mrf.mxu3  ;;  %v5792_v14 = vor.u32 %v4230_v57, %v4077_v32 }
 0x4bb   : > { %v2791_v48 = vadd.f32 %v5566_v54, %v2473_v28  ;;  %v2565_v40 = vadd.f32 %v2564_v22, %v2290_v39  ;;  %v2569_v52 = vpop.f32.mrf.mxu1  ;;  %v2482_v49 = vpop.f32.mrf.mxu0  ;;  %v6159_v39 = vld [vmem:[#allocation51_spill] sm:$0xff] }
 0x4bc   : > { %3013 = vmatmul.bf16.vlgmr.msrb.gmra.mxu2 %v5792_v14 }
 0x4bd   : > { %3106 = vmatpush.bf16.msra.mxu2 %v2886_v35  ;;  %v2855_v61 = vmax.f32 %v2791_v48, 0.0  ;;  %v2794_v53 = vadd.f32 %v5582_v8, %v2565_v40 }
 0x4bf   : > { %v5759_v37 = vpack.c.bf16 %v2855_v61, %v2853_v10  ;;  %v2858_v23 = vmax.f32 %v2794_v53, 0.0  ;;  %v6162_v53 = vld [vmem:[#allocation57_spill] sm:$0xff] }
 0x4c0   : > { %v2201_v2 = vpop.f32.mrf.mxu2 }
 0x4c1   : > { %3107 = vmatpush.bf16.msra.mxu2 %v5660_v36  ;;  %v2476_v26 = vadd.f32 %v2475_v1, %v2201_v2 }
 0x4c2   : > { %v2292_v5 = vpop.f32.mrf.mxu3 }
 0x4c3   : > { %v2567_v44 = vadd.f32 %v2566_v24, %v2292_v5  ;;  %v2793_v36 = vadd.f32 %v5582_v8, %v2476_v26  ;;  %v2485_v41 = vpop.f32.mrf.mxu0  ;;  %v5776_v1 = vpop.f32.mrf.mxu1  ;;  %v6160_v24 = vld [vmem:[#allocation52_spill] sm:$0xff]  ;;  %v6161_v26 = vld [vmem:[#allocation55_spill] sm:$0xff] }
 0x4c5   : > { %3108 = vmatpush.bf16.msra.mxu2 %v5636_v56  ;;  %v2796_v54 = vadd.f32 %v5550_v51, %v2567_v44  ;;  %v2857_v20 = vmax.f32 %v2793_v36, 0.0 }
 0x4c7   : > { %v2860_v27 = vmax.f32 %v2796_v54, 0.0 }
 0x4c8   : > { %v2203_v19 = vpop.f32.mrf.mxu2 }
 0x4c9   : > { %3109 = vmatpush.bf16.msra.mxu2 %v5613_v6  ;;  %v2478_v17 = vadd.f32 %v2477_v12, %v2203_v19  ;;  %v5767_v47 = vpack.c.bf16 %v2860_v27, %v2858_v23  ;;  %v6163_v19 = vld [vmem:[#allocation54_spill] sm:$0xff] }
 0x4ca   : > { %v2295_v55 = vpop.f32.mrf.mxu3 }
 0x4cb   : > { %v2795_v56 = vadd.f32 %v5550_v51, %v2478_v17  ;;  %v5770_v4 = vadd.f32 %v2569_v52, %v2295_v55  ;;  %v2487_v38 = vpop.f32.mrf.mxu0  ;;  %v5780_v45 = vpop.f32.mrf.mxu1 }
 0x4cd   : > { %3110 = vmatpush.bf16.msra.mxu2 %v6158_v59  ;;  %v2859_v34 = vmax.f32 %v2795_v56, 0.0  ;;  %v6164_v59 = vld [vmem:[#allocation53_spill] sm:$0xff] }
 0x4cf   : > { %v5772_v6 = vpack.c.bf16 %v2859_v34, %v2857_v20  ;;  %v6165_v20 = vld [vmem:[#allocation58_spill] sm:$0xff] }
 0x4d0   : > { %v2206_v7 = vpop.f32.mrf.mxu2 }
 0x4d1   : > { %v2481_v3 = vadd.f32 %v2480_v29, %v2206_v7 }
 0x4d2   : > { %v5774_v18 = vpop.f32.mrf.mxu3 }
 0x4d3   : > { %v2490_v51 = vpop.f32.mrf.mxu0  ;;  %v5784_v13 = vpop.f32.mrf.mxu1 }
 0x4d8   : > { %v2208_v8 = vpop.f32.mrf.mxu2 }
 0x4d9   : > { %v2483_v27 = vadd.f32 %v2482_v49, %v2208_v8  ;;  %v4085_v49 = vld [vmem:[%s6090_s6 + $0x10] sm:$0xf]  ;;  %v4232_v8 = vld [vmem:[%s6090_s6 + $0x14] sm:$0xf0] }
 0x4da   : > { %v5778_v42 = vpop.f32.mrf.mxu3 }
 0x4db   : > { %v2492_v58 = vpop.f32.mrf.mxu0  ;;  %v2579_v16 = vpop.f32.mrf.mxu1  ;;  %v2799_v34 = vadd.f32 %v6165_v20, %v2483_v27 }
 0x4e0   : > { %v2211_v25 = vpop.f32.mrf.mxu2 }
 0x4e1   : > { %v2486_v5 = vadd.f32 %v2485_v41, %v2211_v25  ;;  %v6166_v41 = vld [vmem:[#allocation56_spill] sm:$0xff] }
 0x4e2   : > { %v5782_v15 = vpop.f32.mrf.mxu3  ;;  %v2797_v25 = vadd.f32 %v6166_v41, %v2481_v3 }
 0x4e3   : > { %v2495_v11 = vpop.f32.mrf.mxu0  ;;  %v2581_v48 = vpop.f32.mrf.mxu1  ;;  %v2801_v56 = vadd.f32 %v6164_v59, %v2486_v5 }
 0x4e8   : > { %v2213_v50 = vpop.f32.mrf.mxu2 }
 0x4e9   : > { %v2488_v61 = vadd.f32 %v2487_v38, %v2213_v50 }
 0x4ea   : > { %v2305_v63 = vpop.f32.mrf.mxu3 }
 0x4eb   : > { %v2497_v35 = vpop.f32.mrf.mxu0  ;;  %v2803_v36 = vadd.f32 %v6163_v19, %v2488_v61  ;;  %v2584_v50 = vpop.f32.mrf.mxu1  ;;  %v4234_v61 = vld [vmem:[%s6090_s6 + $0x24] sm:$0xf0] }
 0x4ed   : > { %v2867_v7 = vmax.f32 %v2803_v36, 0.0 }
 0x4f0   : > { %v2216_v30 = vpop.f32.mrf.mxu2 }
 0x4f1   : > { %v2491_v60 = vadd.f32 %v2490_v51, %v2216_v30  ;;  %v2865_v30 = vmax.f32 %v2801_v56, 0.0  ;;  %v4109_v56 = vld [vmem:[%s6090_s6 + $0x40] sm:$0xf] }
 0x4f2   : > { %v2307_v28 = vpop.f32.mrf.mxu3 }
 0x4f3   : > { %v2805_v44 = vadd.f32 %v6162_v53, %v2491_v60  ;;  %v2586_v32 = vpop.f32.mrf.mxu1  ;;  %v2580_v60 = vadd.f32 %v2579_v16, %v2305_v63  ;;  %v4079_v63 = vld [vmem:[%s6090_s6 + $0x8] sm:$0xf0]  ;;  %v2575_v16 = vadd.f32 %v5780_v45, %v5778_v42 }
 0x4f5   : > { %v2869_v55 = vmax.f32 %v2805_v44, 0.0  ;;  %v2802_v5 = vadd.f32 %v6164_v59, %v2575_v16 }
 0x4f8   : > { %v2218_v62 = vpop.f32.mrf.mxu2 }
 0x4f9   : > { %v2493_v9 = vadd.f32 %v2492_v58, %v2218_v62  ;;  %v2863_v58 = vmax.f32 %v2799_v34, 0.0  ;;  %v2903_v62 = vpack.c.bf16 %v2867_v7, %v2865_v30  ;;  %v4233_v34 = vld [vmem:[%s6090_s6 + $0x24] sm:$0xf]  ;;  %v4117_v7 = vld [vmem:[%s6090_s6 + $0x50] sm:$0xf] }
 0x4fa   : > { %v2310_v38 = vpop.f32.mrf.mxu3 }
 0x4fb   : > { %v2807_v2 = vadd.f32 %v6160_v24, %v2493_v9  ;;  %v2585_v9 = vadd.f32 %v2584_v50, %v2310_v38  ;;  %v4235_v50 = vld [vmem:[%s6090_s6 + $0x34] sm:$0xf] }
 0x4fd   : > { %v2871_v17 = vmax.f32 %v2807_v2, 0.0 }
 0x4ff   : > { %v2905_v51 = vpack.c.bf16 %v2871_v17, %v2869_v55  ;;  %v4238_v55 = vld [vmem:[%s6090_s6 + $0x44] sm:$0xf0] }
 0x500   : > { %v2221_v22 = vpop.f32.mrf.mxu2 }
 0x501   : > { %v2496_v46 = vadd.f32 %v2495_v11, %v2221_v22  ;;  %v5809_v11 = vor.u32 %v4232_v8, %v4085_v49  ;;  %v2861_v22 = vmax.f32 %v2797_v25, 0.0  ;;  %v4242_v25 = vld [vmem:[%s6090_s6 + $0x64] sm:$0xf0]  ;;  %v4237_v49 = vld [vmem:[%s6090_s6 + $0x44] sm:$0xf] }
 0x502   : > { %v2312_v3 = vpop.f32.mrf.mxu3  ;;  %v4111_v8 = vld [vmem:[%s6090_s6 + $0x48] sm:$0xf0] }
 0x503   : > { %v2809_v40 = vadd.f32 %v6159_v39, %v2496_v46  ;;  %3018 = vmatmul.bf16.gmra.mxu2 %v5809_v11  ;;  %v2901_v46 = vpack.c.bf16 %v2863_v58, %v2861_v22  ;;  %v2587_v57 = vadd.f32 %v2586_v32, %v2312_v3  ;;  %v4114_v58 = vor.u32 %v4237_v49, %v4111_v8  ;;  %v4244_v22 = vld [vmem:[%s6090_s6 + $0x74] sm:$0xf0]  ;;  %v4239_v3 = vld [vmem:[%s6090_s6 + $0x54] sm:$0xf]  ;;  %v4119_v32 = vld [vmem:[%s6090_s6 + $0x58] sm:$0xf0] }
 0x505   : > { %v2873_v54 = vmax.f32 %v2809_v40, 0.0  ;;  %v2810_v40 = vadd.f32 %v6159_v39, %v2585_v9  ;;  %v2572_v39 = vadd.f32 %v5776_v1, %v5774_v18  ;;  %v2798_v18 = vadd.f32 %v6166_v41, %v5770_v4  ;;  %v4231_v4 = vld [vmem:[%s6090_s6 + $0x14] sm:$0xf]  ;;  %v4125_v41 = vld [vmem:[%s6090_s6 + $0x60] sm:$0xf] }
 0x506   : > { %v2866_v1 = vmax.f32 %v2802_v5, 0.0  ;;  %v4126_v30 = vor.u32 %v4242_v25, %v4125_v41  ;;  %v4241_v9 = vld [vmem:[%s6090_s6 + $0x64] sm:$0xf]  ;;  %v6172_v25 = vld [vmem:[#allocation36_spill] sm:$0xff] }
 0x507   : > { %v2800_v42 = vadd.f32 %v6165_v20, %v2572_v39  ;;  %v2862_v36 = vmax.f32 %v2798_v18, 0.0  ;;  %v4110_v20 = vor.u32 %v4238_v55, %v4109_v56 }
 0x508   : > { %v2223_v12 = vpop.f32.mrf.mxu2 }
 0x509   : > { %v2498_v10 = vadd.f32 %v2497_v35, %v2223_v12  ;;  %v2582_v35 = vadd.f32 %v2581_v48, %v2307_v28  ;;  %v2812_v12 = vadd.f32 %v6161_v26, %v2587_v57  ;;  %v4122_v57 = vor.u32 %v4239_v3, %v4119_v32 }
 0x50b   : > { %v2811_v29 = vadd.f32 %v6161_v26, %v2498_v10  ;;  %v4093_v10 = vld [vmem:[%s6090_s6 + $0x20] sm:$0xf]  ;;  %v2808_v28 = vadd.f32 %v6160_v24, %v2582_v35  ;;  %v2876_v48 = vmax.f32 %v2812_v12, 0.0  ;;  %v4127_v35 = vld [vmem:[%s6090_s6 + $0x68] sm:$0xf0] }
 0x50c   : > { %v5822_v2 = vor.u32 %v4234_v61, %v4093_v10  ;;  %v5923_v12 = vor.u32 %v4241_v9, %v4127_v35  ;;  %v4243_v10 = vld [vmem:[%s6090_s6 + $0x74] sm:$0xf]  ;;  %v4135_v61 = vld [vmem:[%s6090_s6 + $0x78] sm:$0xf0] }
 0x50d   : > { %v2875_v23 = vmax.f32 %v2811_v29, 0.0  ;;  %v2872_v24 = vmax.f32 %v2808_v28, 0.0 }
 0x50f   : > { %v2907_v52 = vpack.c.bf16 %v2875_v23, %v2873_v54  ;;  %v4101_v54 = vld [vmem:[%s6090_s6 + $0x30] sm:$0xf]  ;;  %v2864_v23 = vmax.f32 %v2800_v42, 0.0 }
 0x511   : > { %3054 = vmatpush.bf16.msrb.mxu3 %v2907_v52  ;;  %v2902_v17 = vpack.c.bf16 %v2864_v23, %v2862_v36  ;;  %v4087_v52 = vld [vmem:[%s6090_s6 + $0x18] sm:$0xf0] }
 0x512   : > { %v4090_v59 = vor.u32 %v4231_v4, %v4087_v52  ;;  %v6170_v52 = vld [vmem:[#allocation24_spill] sm:$0xff] }
 0x513   : > { %3023 = vmatmul.bf16.gmra.mxu2 %v5822_v2 }
 0x515   : > { %3055 = vmatpush.bf16.msrb.mxu3 %v2905_v51  ;;  %v4103_v51 = vld [vmem:[%s6090_s6 + $0x38] sm:$0xf0] }
 0x519   : > { %3056 = vmatpush.bf16.msrb.mxu3 %v2903_v62  ;;  %v4133_v62 = vld [vmem:[%s6090_s6 + $0x70] sm:$0xf] }
 0x51d   : > { %3057 = vmatpush.bf16.msrb.mxu3 %v2901_v46  ;;  %v4134_v46 = vor.u32 %v4244_v22, %v4133_v62 }
 0x521   : > { %3058 = vmatpush.bf16.msrb.mxu3 %v5772_v6  ;;  %v2577_v6 = vadd.f32 %v5784_v13, %v5782_v15  ;;  %v2806_v15 = vadd.f32 %v6162_v53, %v2580_v60  ;;  %v2874_v13 = vmax.f32 %v2810_v40, 0.0 }
 0x523   : > { %v2908_v26 = vpack.c.bf16 %v2876_v48, %v2874_v13  ;;  %v2870_v44 = vmax.f32 %v2806_v15, 0.0  ;;  %v6167_v15 = vld [vmem:[#allocation6_spill] sm:$0xff] }
 0x525   : > { %3059 = vmatpush.bf16.msrb.mxu3 %v5759_v37  ;;  %v4229_v37 = vld [vmem:[%s6090_s6 + $0x4] sm:$0xf]  ;;  %v2906_v53 = vpack.c.bf16 %v2872_v24, %v2870_v44 }
 0x526   : > { %v5841_v29 = vor.u32 %v4229_v37, %v4079_v63 }
 0x529   : > { %3060 = vmatpush.bf16.msrb.mxu3 %v5746_v43  ;;  %v2804_v43 = vadd.f32 %v6163_v19, %v2577_v6  ;;  %v5933_v6 = vor.u32 %v4243_v10, %v4135_v61  ;;  %v6174_v10 = vld [vmem:[#allocation46_spill] sm:$0xff] }
 0x52b   : > { %v2868_v45 = vmax.f32 %v2804_v43, 0.0 }
 0x52d   : > { %3061 = vmatpush.bf16.msrb.mxu3 %v5721_v33  ;;  %v4236_v33 = vld [vmem:[%s6090_s6 + $0x34] sm:$0xf0]  ;;  %v2904_v27 = vpack.c.bf16 %v2868_v45, %v2866_v1 }
 0x52e   : > { %v5855_v19 = vor.u32 %v4236_v33, %v4101_v54  ;;  %v6169_v54 = vld [vmem:[#allocation18_spill] sm:$0xff] }
 0x530   : > { %3062 = vmatmul.bf16.vlgmr.msrb.gmra.mxu3 %v5841_v29  ;;  %3028 = vmatmul.bf16.gmra.mxu2 %v5855_v19 }
 0x531   : > { %3152 = vmatpush.bf16.msra.mxu3 %v2908_v26 }
 0x535   : > { %3153 = vmatpush.bf16.msra.mxu3 %v2906_v53 }
 0x539   : > { %3154 = vmatpush.bf16.msra.mxu3 %v2904_v27 }
 0x53d   : > { %3155 = vmatpush.bf16.msra.mxu3 %v2902_v17 }
 0x53f   : > { %v3014_v60 = vpop.f32.mrf.mxu2 }
 0x540   : > { %3067 = vmatmul.bf16.gmra.mxu3 %v4090_v59  ;;  %3033 = vmatmul.bf16.gmra.mxu2 %v4110_v20 }
 0x541   : > { %3156 = vmatpush.bf16.msra.mxu3 %v5767_v47  ;;  %v4095_v47 = vld [vmem:[%s6090_s6 + $0x28] sm:$0xf0] }
 0x545   : > { %3157 = vmatpush.bf16.msra.mxu3 %v5755_v0  ;;  %v4098_v0 = vor.u32 %v4233_v34, %v4095_v47 }
 0x547   : > { %v3016_v40 = vpop.f32.mrf.mxu2 }
 0x549   : > { %3158 = vmatpush.bf16.msra.mxu3 %v5738_v31  ;;  %v4240_v31 = vld [vmem:[%s6090_s6 + $0x54] sm:$0xf0] }
 0x54a   : > { %v4118_v38 = vor.u32 %v4240_v31, %v4117_v7 }
 0x54d   : > { %3159 = vmatpush.bf16.msra.mxu3 %v5719_v21  ;;  %v4106_v21 = vor.u32 %v4235_v50, %v4103_v51 }
 0x550   : > { %3072 = vmatmul.bf16.gmra.mxu3 %v4098_v0  ;;  %3038 = vmatmul.bf16.gmra.mxu2 %v4118_v38 }
 0x560   : > { %3077 = vmatmul.bf16.gmra.mxu3 %v4106_v21  ;;  %3043 = vmatmul.bf16.gmra.mxu2 %v4126_v30 }
 0x570   : > { %3082 = vmatmul.bf16.gmra.mxu3 %v4114_v58  ;;  %3048 = vmatmul.bf16.gmra.mxu2 %v4134_v46 }
 0x580   : > { %3087 = vmatmul.bf16.gmra.mxu3 %v4122_v57  ;;  %3111 = vmatmul.bf16.vlgmr.msra.gmra.mxu2 %v5792_v14 }
 0x586   : > { %v3019_v28 = vpop.f32.mrf.mxu2 }
 0x58e   : > { %v3021_v14 = vpop.f32.mrf.mxu2 }
 0x590   : > { %3092 = vmatmul.bf16.gmra.mxu3 %v5923_v12  ;;  %3116 = vmatmul.bf16.gmra.mxu2 %v5809_v11 }
 0x596   : > { %v3024_v48 = vpop.f32.mrf.mxu2 }
 0x59e   : > { %v3026_v16 = vpop.f32.mrf.mxu2 }
 0x5a0   : > { %3097 = vmatmul.bf16.gmra.mxu3 %v5933_v6  ;;  %3121 = vmatmul.bf16.gmra.mxu2 %v5822_v2  ;;  %v6168_v2 = vld [vmem:[#allocation12_spill] sm:$0xff] }
 0x5b0   : > { %3160 = vmatmul.bf16.vlgmr.msra.gmra.mxu3 %v5841_v29  ;;  %3126 = vmatmul.bf16.gmra.mxu2 %v5855_v19 }
 0x5b3   : > { %v3063_v37 = vpop.f32.mrf.mxu3  ;;  %v3029_v43 = vpop.f32.mrf.mxu2 }
 0x5b4   : > { %v3064_v63 = vadd.f32 %v3063_v37, %v3014_v60 }
 0x5b6   : > { %v5939_v13 = vadd.f32 %v3064_v63, %v6167_v15  ;;  %v6175_v15 = vld [vmem:[#allocation3_spill] sm:$0xff] }
 0x5bb   : > { %v3065_v11 = vpop.f32.mrf.mxu3  ;;  %v3031_v5 = vpop.f32.mrf.mxu2 }
 0x5bc   : > { %v5942_v39 = vadd.f32 %v3065_v11, %v3016_v40 }
 0x5c0   : > { %3165 = vmatmul.bf16.gmra.mxu3 %v4090_v59  ;;  %3131 = vmatmul.bf16.gmra.mxu2 %v4110_v20 }
 0x5c3   : > { %v3068_v24 = vpop.f32.mrf.mxu3  ;;  %v3034_v45 = vpop.f32.mrf.mxu2 }
 0x5c4   : > { %v3069_v26 = vadd.f32 %v3068_v24, %v3019_v28  ;;  %v6176_v24 = vld [vmem:[#allocation8_spill] sm:$0xff] }
 0x5c6   : > { %v5945_v44 = vadd.f32 %v3069_v26, %v6168_v2  ;;  %v6177_v26 = vld [vmem:[#allocation7_spill] sm:$0xff] }
 0x5cb   : > { %v3070_v29 = vpop.f32.mrf.mxu3  ;;  %v3036_v1 = vpop.f32.mrf.mxu2 }
 0x5cc   : > { %v5947_v42 = vadd.f32 %v3070_v29, %v3021_v14 }
 0x5d0   : > { %3170 = vmatmul.bf16.gmra.mxu3 %v4098_v0  ;;  %3136 = vmatmul.bf16.gmra.mxu2 %v4118_v38  ;;  %v6171_v0 = vld [vmem:[#allocation30_spill] sm:$0xff] }
 0x5d3   : > { %v3073_v53 = vpop.f32.mrf.mxu3  ;;  %v3039_v19 = vpop.f32.mrf.mxu2 }
 0x5d4   : > { %v3074_v18 = vadd.f32 %v3073_v53, %v3024_v48 }
 0x5d6   : > { %v5950_v33 = vadd.f32 %v3074_v18, %v6169_v54  ;;  %v6178_v18 = vld [vmem:[#allocation4_spill] sm:$0xff] }
 0x5db   : > { %v3075_v23 = vpop.f32.mrf.mxu3  ;;  %v3041_v4 = vpop.f32.mrf.mxu2 }
 0x5dc   : > { %v5952_v27 = vadd.f32 %v3075_v23, %v3026_v16  ;;  %v3236_v16 = vpop.permute.xlu1 %3235 }
 0x5e0   : > { %3175 = vmatmul.bf16.gmra.mxu3 %v4106_v21  ;;  %3141 = vmatmul.bf16.gmra.mxu2 %v4126_v30 }
 0x5e3   : > { %v3078_v36 = vpop.f32.mrf.mxu3  ;;  %v3044_v20 = vpop.f32.mrf.mxu2 }
 0x5e4   : > { %v3079_v17 = vadd.f32 %v3078_v36, %v3029_v43  ;;  %v3313_v43 = vadd.f32 %v3236_v16, %v5939_v13  ;;  %v3241_v36 = vpop.permute.xlu2 %3240 }
 0x5e6   : > { %v5955_v59 = vadd.f32 %v3079_v17, %v6170_v52  ;;  %v3345_v29 = vmax.f32 %v3313_v43, 0.0 }
 0x5eb   : > { %v3080_v56 = vpop.f32.mrf.mxu3  ;;  %v3046_v31 = vpop.f32.mrf.mxu2 }
 0x5ec   : > { %v5957_v55 = vadd.f32 %v3080_v56, %v3031_v5 }
 0x5f0   : > { %3180 = vmatmul.bf16.gmra.mxu3 %v4114_v58  ;;  %3146 = vmatmul.bf16.gmra.mxu2 %v4134_v46  ;;  %v6173_v46 = vld [vmem:[#allocation42_spill] sm:$0xff] }
 0x5f3   : > { %v3083_v34 = vpop.f32.mrf.mxu3  ;;  %v3049_v51 = vpop.f32.mrf.mxu2 }
 0x5f4   : > { %v3084_v47 = vadd.f32 %v3083_v34, %v3034_v45 }
 0x5f6   : > { %v5960_v7 = vadd.f32 %v3084_v47, %v6171_v0 }
 0x5fb   : > { %v3085_v38 = vpop.f32.mrf.mxu3  ;;  %v3051_v8 = vpop.f32.mrf.mxu2 }
 0x5fc   : > { %v5962_v50 = vadd.f32 %v3085_v38, %v3036_v1  ;;  %v6179_v1 = vld [vmem:[#allocation5_spill] sm:$0xff] }
 0x5fd   : > { %v1593_v54 = vadd.f32 %v6179_v1, %v6178_v18 }
 0x600   : > { %3185 = vmatmul.bf16.gmra.mxu3 %v4122_v57 }
 0x603   : > { %v3088_v21 = vpop.f32.mrf.mxu3  ;;  %v3112_v3 = vpop.f32.mrf.mxu2 }
 0x604   : > { %v3089_v41 = vadd.f32 %v3088_v21, %v3039_v19 }
 0x606   : > { %v5965_v30 = vadd.f32 %v3089_v41, %v6172_v25  ;;  %v6181_v41 = vld [vmem:[#allocation14_spill] sm:$0xff]  ;;  %v6182_v25 = vld [vmem:[#allocation13_spill] sm:$0xff] }
 0x60b   : > { %v3090_v49 = vpop.f32.mrf.mxu3  ;;  %v3114_v35 = vpop.f32.mrf.mxu2 }
 0x60c   : > { %v5967_v58 = vadd.f32 %v3090_v49, %v3041_v4  ;;  %v1420_v49 = vadd.f32 %v6182_v25, %v6181_v41 }
 0x610   : > { %3190 = vmatmul.bf16.gmra.mxu3 %v5923_v12 }
 0x613   : > { %v3093_v62 = vpop.f32.mrf.mxu3  ;;  %v3117_v28 = vpop.f32.mrf.mxu2 }
 0x614   : > { %v3094_v22 = vadd.f32 %v3093_v62, %v3044_v20  ;;  %v3207_v62 = vadd.f32 %v5947_v42, %v1420_v49  ;;  %v3256_v42 = vpop.permute.xlu2 %3255  ;;  %v6191_v49 = vld [vmem:[#allocation26_spill] sm:$0xff] }
 0x616   : > { %v5971_v32 = vadd.f32 %v3094_v22, %v6173_v46 }
 0x61b   : > { %v3095_v9 = vpop.f32.mrf.mxu3  ;;  %v3119_v37 = vpop.f32.mrf.mxu2 }
 0x61c   : > { %v5973_v57 = vadd.f32 %v3095_v9, %v3046_v31  ;;  %v6180_v31 = vld [vmem:[#allocation9_spill] sm:$0xff]  ;;  %v6183_v9 = vld [vmem:[#allocation10_spill] sm:$0xff] }
 0x620   : > { %3195 = vmatmul.bf16.gmra.mxu3 %v5933_v6  ;;  %v1415_v6 = vadd.f32 %v6177_v26, %v6176_v24  ;;  %v6185_v26 = vld [vmem:[#allocation15_spill] sm:$0xff] }
 0x622   : > { %v3203_v2 = vadd.f32 %v5942_v39, %v1415_v6  ;;  %v3246_v39 = vpop.permute.xlu0 %3245 }
 0x623   : > { %v3098_v60 = vpop.f32.mrf.mxu3  ;;  %v3122_v17 = vpop.f32.mrf.mxu2 }
 0x624   : > { %v3099_v40 = vadd.f32 %v3098_v60, %v3049_v51  ;;  %v3315_v52 = vadd.f32 %v3241_v36, %v3203_v2  ;;  %v3317_v51 = vadd.f32 %v3246_v39, %v5945_v44  ;;  %v6186_v2 = vld [vmem:[#allocation20_spill] sm:$0xff] }
 0x626   : > { %v5977_v61 = vadd.f32 %v3099_v40, %v6174_v10  ;;  %v3347_v56 = vmax.f32 %v3315_v52, 0.0  ;;  %v3349_v22 = vmax.f32 %v3317_v51, 0.0  ;;  %v6190_v51 = vld [vmem:[#allocation21_spill] sm:$0xff] }
 0x62b   : > { %v3100_v14 = vpop.f32.mrf.mxu3  ;;  %v3124_v21 = vpop.f32.mrf.mxu2 }
 0x62c   : > { %v5979_v12 = vadd.f32 %v3100_v14, %v3051_v8 }
 0x633   : > { %v3161_v48 = vpop.f32.mrf.mxu3 }
 0x634   : > { %v3162_v63 = vadd.f32 %v3161_v48, %v3112_v3 }
 0x636   : > { %v3202_v11 = vadd.f32 %v3162_v63, %v6175_v15  ;;  %v3127_v63 = vpop.f32.mrf.mxu2 }
 0x638   : > { %v3314_v5 = vadd.f32 %v3236_v16, %v3202_v11 }
 0x63a   : > { %v3346_v45 = vmax.f32 %v3314_v5, 0.0  ;;  %v3321_v5 = vadd.f32 %v3256_v42, %v5950_v33 }
 0x63b   : > { %v3163_v53 = vpop.f32.mrf.mxu3 }
 0x63c   : > { %v3164_v23 = vadd.f32 %v3163_v53, %v3114_v35  ;;  %v3508_v19 = vadd.f32 %v3346_v45, %v3345_v29  ;;  %v6184_v35 = vld [vmem:[#allocation11_spill] sm:$0xff]  ;;  %v3353_v18 = vmax.f32 %v3321_v5, 0.0  ;;  %v6196_v5 = vld [vmem:[#allocation32_spill] sm:$0xff] }
 0x63d   : > { %v1598_v60 = vadd.f32 %v6184_v35, %v6183_v9  ;;  %v6193_v35 = vld [vmem:[#allocation22_spill] sm:$0xff] }
 0x63e   : > { %v3204_v4 = vadd.f32 %v3164_v23, %v1593_v54  ;;  %3509 = vadd.xlane.f32.xlu2 %v3508_v19  ;;  %v3129_v23 = vpop.f32.mrf.mxu2  ;;  %v6188_v19 = vld [vmem:[#allocation16_spill] sm:$0xff] }
 0x640   : > { %v3316_v13 = vadd.f32 %v3241_v36, %v3204_v4  ;;  %v6189_v36 = vld [vmem:[#allocation17_spill] sm:$0xff] }
 0x642   : > { %v3348_v20 = vmax.f32 %v3316_v13, 0.0  ;;  %v3261_v13 = vpop.permute.xlu0 %3260 }
 0x643   : > { %v3166_v34 = vpop.f32.mrf.mxu3 }
 0x644   : > { %v3167_v47 = vadd.f32 %v3166_v34, %v3117_v28  ;;  %v3511_v0 = vadd.f32 %v3348_v20, %v3347_v56  ;;  %v3251_v28 = vpop.permute.xlu1 %3250 }
 0x645   : > { %v3319_v48 = vadd.f32 %v3251_v28, %v3207_v62 }
 0x646   : > { %v3206_v38 = vadd.f32 %v3167_v47, %v6180_v31  ;;  %3512 = vadd.xlane.f32.xlu0 %v3511_v0 }
 0x647   : > { %v3351_v16 = vmax.f32 %v3319_v48, 0.0 }
 0x648   : > { %v3318_v8 = vadd.f32 %v3246_v39, %v3206_v38  ;;  %v3132_v38 = vpop.f32.mrf.mxu2 }
 0x64a   : > { %v3350_v3 = vmax.f32 %v3318_v8, 0.0 }
 0x64b   : > { %v3168_v46 = vpop.f32.mrf.mxu3 }
 0x64c   : > { %v3169_v40 = vadd.f32 %v3168_v46, %v3119_v37  ;;  %v3514_v10 = vadd.f32 %v3350_v3, %v3349_v22  ;;  %v6187_v37 = vld [vmem:[#allocation19_spill] sm:$0xff] }
 0x64d   : > { %v1425_v29 = vadd.f32 %v6187_v37, %v6186_v2  ;;  %v6197_v2 = vld [vmem:[#allocation31_spill] sm:$0xff] }
 0x64e   : > { %v3208_v14 = vadd.f32 %v3169_v40, %v1598_v60  ;;  %3515 = vadd.xlane.f32.xlu1 %v3514_v10  ;;  %v6194_v60 = vld [vmem:[#allocation23_spill] sm:$0xff]  ;;  %v1435_v37 = vadd.f32 %v6197_v2, %v6196_v5 }
 0x64f   : > { %v3211_v53 = vadd.f32 %v5952_v27, %v1425_v29  ;;  %v3266_v27 = vpop.permute.xlu1 %3265  ;;  %v1608_v40 = vadd.f32 %v6194_v60, %v6193_v35 }
 0x650   : > { %v3320_v44 = vadd.f32 %v3251_v28, %v3208_v14  ;;  %v3325_v25 = vadd.f32 %v3266_v27, %v5955_v59  ;;  %v3271_v14 = vpop.permute.xlu2 %3270 }
 0x651   : > { %v3323_v20 = vadd.f32 %v3261_v13, %v3211_v53  ;;  %v3219_v53 = vadd.f32 %v5962_v50, %v1435_v37 }
 0x652   : > { %v3352_v15 = vmax.f32 %v3320_v44, 0.0  ;;  %v3357_v3 = vmax.f32 %v3325_v25, 0.0 }
 0x653   : > { %v3171_v11 = vpop.f32.mrf.mxu3  ;;  %v3355_v34 = vmax.f32 %v3323_v20, 0.0 }
 0x654   : > { %v3172_v43 = vadd.f32 %v3171_v11, %v3122_v17  ;;  %v3517_v24 = vadd.f32 %v3352_v15, %v3351_v16  ;;  %v1603_v17 = vadd.f32 %v6189_v36, %v6188_v19  ;;  %v6199_v19 = vld [vmem:[#allocation29_spill] sm:$0xff] }
 0x656   : > { %v3210_v6 = vadd.f32 %v3172_v43, %v6185_v26  ;;  %3518 = vadd.xlane.f32.xlu2 %v3517_v24 }
 0x658   : > { %v3322_v45 = vadd.f32 %v3256_v42, %v3210_v6  ;;  %v6195_v42 = vld [vmem:[#allocation27_spill] sm:$0xff]  ;;  %v3286_v50 = vpop.permute.xlu2 %3285 }
 0x65a   : > { %v3354_v1 = vmax.f32 %v3322_v45, 0.0 }
 0x65b   : > { %v3173_v54 = vpop.f32.mrf.mxu3 }
 0x65c   : > { %v3174_v4 = vadd.f32 %v3173_v54, %v3124_v21  ;;  %v3520_v52 = vadd.f32 %v3354_v1, %v3353_v18  ;;  %v6192_v21 = vld [vmem:[#allocation25_spill] sm:$0xff] }
 0x65d   : > { %v1430_v8 = vadd.f32 %v6192_v21, %v6191_v49 }
 0x65e   : > { %v3212_v56 = vadd.f32 %v3174_v4, %v1603_v17  ;;  %3521 = vadd.xlane.f32.xlu2 %v3520_v52  ;;  %v3281_v52 = vpop.permute.xlu1 %3280 }
 0x65f   : > { %v3215_v22 = vadd.f32 %v5957_v55, %v1430_v8  ;;  %v3276_v55 = vpop.permute.xlu0 %3275 }
 0x660   : > { %v3324_v33 = vadd.f32 %v3261_v13, %v3212_v56  ;;  %v3329_v6 = vadd.f32 %v3276_v55, %v5960_v7  ;;  %v3331_v56 = vadd.f32 %v3281_v52, %v3219_v53  ;;  %v6209_v53 = vld [vmem:[#allocation41_spill] sm:$0xff] }
 0x661   : > { %v3327_v44 = vadd.f32 %v3271_v14, %v3215_v22 }
 0x662   : > { %v3356_v47 = vmax.f32 %v3324_v33, 0.0  ;;  %v3361_v18 = vmax.f32 %v3329_v6, 0.0  ;;  %v3363_v20 = vmax.f32 %v3331_v56, 0.0 }
 0x663   : > { %v3176_v0 = vpop.f32.mrf.mxu3  ;;  %v3359_v16 = vmax.f32 %v3327_v44, 0.0 }
 0x664   : > { %v3177_v39 = vadd.f32 %v3176_v0, %v3127_v63  ;;  %v3523_v31 = vadd.f32 %v3356_v47, %v3355_v34  ;;  %v3134_v63 = vpop.f32.mrf.mxu2 }
 0x666   : > { %v3214_v41 = vadd.f32 %v3177_v39, %v6190_v51  ;;  %3524 = vadd.xlane.f32.xlu0 %v3523_v31  ;;  %v6200_v31 = vld [vmem:[#allocation33_spill] sm:$0xff]  ;;  %v6201_v51 = vld [vmem:[#allocation38_spill] sm:$0xff] }
 0x668   : > { %v3326_v62 = vadd.f32 %v3266_v27, %v3214_v41  ;;  %v6202_v41 = vld [vmem:[#allocation37_spill] sm:$0xff] }
 0x669   : > { %v1440_v25 = vadd.f32 %v6202_v41, %v6201_v51 }
 0x66a   : > { %v3358_v46 = vmax.f32 %v3326_v62, 0.0 }
 0x66b   : > { %v3178_v9 = vpop.f32.mrf.mxu3  ;;  %v3223_v21 = vadd.f32 %v5967_v58, %v1440_v25  ;;  %v3296_v58 = vpop.permute.xlu1 %3295  ;;  %v6213_v25 = vld [vmem:[#allocation49_spill] sm:$0xff] }
 0x66c   : > { %v3179_v10 = vadd.f32 %v3178_v9, %v3129_v23  ;;  %v3526_v28 = vadd.f32 %v3358_v46, %v3357_v3  ;;  %v3137_v45 = vpop.f32.mrf.mxu2  ;;  %v6198_v23 = vld [vmem:[#allocation28_spill] sm:$0xff]  ;;  %v6203_v3 = vld [vmem:[#allocation34_spill] sm:$0xff]  ;;  %v6204_v46 = vld [vmem:[#allocation35_spill] sm:$0xff] }
 0x66d   : > { %v1613_v36 = vadd.f32 %v6199_v19, %v6198_v23  ;;  %v1618_v9 = vadd.f32 %v6204_v46, %v6203_v3  ;;  %v3301_v23 = vpop.permute.xlu2 %3300 }
 0x66e   : > { %v3216_v48 = vadd.f32 %v3179_v10, %v1608_v40  ;;  %3527 = vadd.xlane.f32.xlu1 %v3526_v28  ;;  %v3291_v40 = vpop.permute.xlu0 %3290 }
 0x670   : > { %v3328_v59 = vadd.f32 %v3271_v14, %v3216_v48  ;;  %v3335_v14 = vadd.f32 %v3291_v40, %v3223_v21 }
 0x672   : > { %v3360_v15 = vmax.f32 %v3328_v59, 0.0  ;;  %v3367_v48 = vmax.f32 %v3335_v14, 0.0 }
 0x673   : > { %v3181_v11 = vpop.f32.mrf.mxu3 }
 0x674   : > { %v3182_v43 = vadd.f32 %v3181_v11, %v3132_v38  ;;  %v3529_v24 = vadd.f32 %v3360_v15, %v3359_v16  ;;  %v3139_v47 = vpop.f32.mrf.mxu2  ;;  %v3333_v38 = vadd.f32 %v3286_v50, %v5965_v30  ;;  %v6205_v15 = vld [vmem:[#allocation39_spill] sm:$0xff] }
 0x676   : > { %v3218_v26 = vadd.f32 %v3182_v43, %v6195_v42  ;;  %3530 = vadd.xlane.f32.xlu2 %v3529_v24  ;;  %v3365_v8 = vmax.f32 %v3333_v38, 0.0  ;;  %v3337_v43 = vadd.f32 %v3296_v58, %v5971_v32  ;;  %v6207_v42 = vld [vmem:[#allocation43_spill] sm:$0xff] }
 0x678   : > { %v3330_v29 = vadd.f32 %v3276_v55, %v3218_v26  ;;  %v6206_v55 = vld [vmem:[#allocation44_spill] sm:$0xff]  ;;  %v3369_v2 = vmax.f32 %v3337_v43, 0.0 }
 0x679   : > { %v1445_v26 = vadd.f32 %v6207_v42, %v6206_v55 }
 0x67a   : > { %v3362_v1 = vmax.f32 %v3330_v29, 0.0 }
 0x67b   : > { %v3183_v54 = vpop.f32.mrf.mxu3  ;;  %v3227_v5 = vadd.f32 %v5973_v57, %v1445_v26  ;;  %v3306_v57 = vpop.permute.xlu0 %3305 }
 0x67c   : > { %v3184_v17 = vadd.f32 %v3183_v54, %v3134_v63  ;;  %v3532_v4 = vadd.f32 %v3362_v1, %v3361_v18  ;;  %v3142_v10 = vpop.f32.mrf.mxu2 }
 0x67e   : > { %v3220_v13 = vadd.f32 %v3184_v17, %v1613_v36  ;;  %3533 = vadd.xlane.f32.xlu0 %v3532_v4  ;;  %v3339_v36 = vadd.f32 %v3301_v23, %v3227_v5 }
 0x680   : > { %v3332_v7 = vadd.f32 %v3281_v52, %v3220_v13  ;;  %v3371_v4 = vmax.f32 %v3339_v36, 0.0 }
 0x682   : > { %v3364_v33 = vmax.f32 %v3332_v7, 0.0 }
 0x683   : > { %v3186_v34 = vpop.f32.mrf.mxu3 }
 0x684   : > { %v3187_v0 = vadd.f32 %v3186_v34, %v3137_v45  ;;  %v3535_v39 = vadd.f32 %v3364_v33, %v3363_v20  ;;  %v3144_v24 = vpop.f32.mrf.mxu2  ;;  %v6208_v45 = vld [vmem:[#allocation40_spill] sm:$0xff]  ;;  %v6210_v20 = vld [vmem:[#allocation45_spill] sm:$0xff]  ;;  %v3341_v34 = vadd.f32 %v3306_v57, %v5977_v61 }
 0x685   : > { %v1623_v18 = vadd.f32 %v6209_v53, %v6208_v45 }
 0x686   : > { %v3222_v27 = vadd.f32 %v3187_v0, %v6200_v31  ;;  %3536 = vadd.xlane.f32.xlu1 %v3535_v39  ;;  %v6212_v0 = vld [vmem:[#allocation48_spill] sm:$0xff] }
 0x688   : > { %v3334_v49 = vadd.f32 %v3286_v50, %v3222_v27  ;;  %v3373_v27 = vmax.f32 %v3341_v34, 0.0 }
 0x68a   : > { %v3366_v62 = vmax.f32 %v3334_v49, 0.0  ;;  %v6214_v49 = vld [vmem:[#allocation47_spill] sm:$0xff] }
 0x68b   : > { %v3188_v22 = vpop.f32.mrf.mxu3  ;;  %v1628_v21 = vadd.f32 %v6214_v49, %v6213_v25 }
 0x68c   : > { %v3189_v35 = vadd.f32 %v3188_v22, %v3139_v47  ;;  %v3538_v60 = vadd.f32 %v3366_v62, %v3365_v8  ;;  %v3147_v17 = vpop.f32.mrf.mxu2  ;;  %v6211_v47 = vld [vmem:[#allocation50_spill] sm:$0xff]  ;;  %v3311_v22 = vpop.permute.xlu1 %3310 }
 0x68d   : > { %v1450_v39 = vadd.f32 %v6212_v0, %v6211_v47 }
 0x68e   : > { %v3224_v28 = vadd.f32 %v3189_v35, %v1618_v9  ;;  %3539 = vadd.xlane.f32.xlu2 %v3538_v60 }
 0x68f   : > { %v3231_v31 = vadd.f32 %v5979_v12, %v1450_v39 }
 0x690   : > { %v3336_v30 = vadd.f32 %v3291_v40, %v3224_v28 }
 0x691   : > { %v3343_v61 = vadd.f32 %v3311_v22, %v3231_v31 }
 0x692   : > { %v3368_v44 = vmax.f32 %v3336_v30, 0.0 }
 0x693   : > { %v3191_v63 = vpop.f32.mrf.mxu3  ;;  %v3375_v35 = vmax.f32 %v3343_v61, 0.0 }
 0x694   : > { %v3192_v59 = vadd.f32 %v3191_v63, %v3142_v10  ;;  %v3541_v16 = vadd.f32 %v3368_v44, %v3367_v48  ;;  %v3149_v51 = vpop.f32.mrf.mxu2 }
 0x696   : > { %v3226_v11 = vadd.f32 %v3192_v59, %v6205_v15  ;;  %3542 = vadd.xlane.f32.xlu0 %v3541_v16 }
 0x698   : > { %v3338_v6 = vadd.f32 %v3296_v58, %v3226_v11 }
 0x69a   : > { %v3370_v37 = vmax.f32 %v3338_v6, 0.0 }
 0x69b   : > { %v3193_v29 = vpop.f32.mrf.mxu3 }
 0x69c   : > { %v3194_v1 = vadd.f32 %v3193_v29, %v3144_v24  ;;  %v3544_v54 = vadd.f32 %v3370_v37, %v3369_v2 }
 0x69e   : > { %v3228_v19 = vadd.f32 %v3194_v1, %v1623_v18  ;;  %3545 = vadd.xlane.f32.xlu1 %v3544_v54 }
 0x6a0   : > { %v3340_v32 = vadd.f32 %v3301_v23, %v3228_v19 }
 0x6a2   : > { %v3372_v52 = vmax.f32 %v3340_v32, 0.0 }
 0x6a3   : > { %v3196_v13 = vpop.f32.mrf.mxu3 }
 0x6a4   : > { %v3197_v56 = vadd.f32 %v3196_v13, %v3147_v17  ;;  %v3547_v7 = vadd.f32 %v3372_v52, %v3371_v4 }
 0x6a6   : > { %v3230_v33 = vadd.f32 %v3197_v56, %v6210_v20  ;;  %3548 = vadd.xlane.f32.xlu2 %v3547_v7 }
 0x6a8   : > { %v3342_v50 = vadd.f32 %v3306_v57, %v3230_v33 }
 0x6aa   : > { %v3374_v38 = vmax.f32 %v3342_v50, 0.0 }
 0x6ab   : > { %v3198_v41 = vpop.f32.mrf.mxu3 }
 0x6ac   : > { %v3199_v8 = vadd.f32 %v3198_v41, %v3149_v51  ;;  %v3550_v62 = vadd.f32 %v3374_v38, %v3373_v27 }
 0x6ae   : > { %v3232_v3 = vadd.f32 %v3199_v8, %v1628_v21  ;;  %3551 = vadd.xlane.f32.xlu0 %v3550_v62 }
 0x6b0   : > { %v3344_v46 = vadd.f32 %v3311_v22, %v3232_v3 }
 0x6b1   : > { %v3510_v12 = vpop.xlane.xlu2 %3509 }
 0x6b2   : > { %v3556_v9 = vmul.f32 0.00390625, %v3510_v12  ;;  %v3376_v60 = vmax.f32 %v3344_v46, 0.0 }
 0x6b4   : > { %3573 = vst.msk [vmem:[%s6041_s16] sm:$0xff] %vm3572_vm2, %v3556_v9  ;;  %v3553_v40 = vadd.f32 %v3376_v60, %v3375_v35 }
 0x6b6   : > { %3554 = vadd.xlane.f32.xlu1 %v3553_v40 }
 0x6b9   : > { %v3513_v10 = vpop.xlane.xlu0 %3512 }
 0x6ba   : > { %v3557_v28 = vmul.f32 0.00390625, %v3513_v10 }
 0x6bc   : > { %3574 = vst.msk [vmem:[%s6041_s16 + $0x8] sm:$0xff] %vm3572_vm2, %v3557_v28 }
 0x6c1   : > { %v3516_v14 = vpop.xlane.xlu1 %3515 }
 0x6c2   : > { %v3558_v30 = vmul.f32 0.00390625, %v3516_v14 }
 0x6c4   : > { %3575 = vst.msk [vmem:[%s6041_s16 + $0x10] sm:$0xff] %vm3572_vm2, %v3558_v30 }
 0x6c9   : > { %v3519_v48 = vpop.xlane.xlu2 %3518 }
 0x6ca   : > { %v3559_v44 = vmul.f32 0.00390625, %v3519_v48 }
 0x6cc   : > { %3576 = vst.msk [vmem:[%s6041_s16 + $0x18] sm:$0xff] %vm3572_vm2, %v3559_v44 }
 0x6d1   : > { %v3522_v63 = vpop.xlane.xlu2 %3521 }
 0x6d2   : > { %v3560_v59 = vmul.f32 0.00390625, %v3522_v63 }
 0x6d4   : > { %3577 = vst.msk [vmem:[%s6041_s16 + $0x20] sm:$0xff] %vm3572_vm2, %v3560_v59 }
 0x6d9   : > { %v3525_v16 = vpop.xlane.xlu0 %3524 }
 0x6da   : > { %v3561_v58 = vmul.f32 0.00390625, %v3525_v16 }
 0x6dc   : > { %3578 = vst.msk [vmem:[%s6041_s16 + $0x28] sm:$0xff] %vm3572_vm2, %v3561_v58 }
 0x6e1   : > { %v3528_v15 = vpop.xlane.xlu1 %3527 }
 0x6e2   : > { %v3562_v11 = vmul.f32 0.00390625, %v3528_v15 }
 0x6e4   : > { %3579 = vst.msk [vmem:[%s6041_s16 + $0x30] sm:$0xff] %vm3572_vm2, %v3562_v11 }
 0x6e9   : > { %v3531_v43 = vpop.xlane.xlu2 %3530 }
 0x6ea   : > { %v3563_v24 = vmul.f32 0.00390625, %v3531_v43 }
 0x6ec   : > { %3580 = vst.msk [vmem:[%s6041_s16 + $0x38] sm:$0xff] %vm3572_vm2, %v3563_v24 }
 0x6f1   : > { %v3534_v55 = vpop.xlane.xlu0 %3533 }
 0x6f2   : > { %v3564_v42 = vmul.f32 0.00390625, %v3534_v55 }
 0x6f4   : > { %3581 = vst.msk [vmem:[%s6041_s16 + $0x40] sm:$0xff] %vm3572_vm2, %v3564_v42 }
 0x6f9   : > { %v3537_v26 = vpop.xlane.xlu1 %3536 }
 0x6fa   : > { %v3565_v6 = vmul.f32 0.00390625, %v3537_v26 }
 0x6fc   : > { %3582 = vst.msk [vmem:[%s6041_s16 + $0x48] sm:$0xff] %vm3572_vm2, %v3565_v6 }
 0x701   : > { %v3540_v5 = vpop.xlane.xlu2 %3539 }
 0x702   : > { %v3566_v2 = vmul.f32 0.00390625, %v3540_v5 }
 0x704   : > { %3583 = vst.msk [vmem:[%s6041_s16 + $0x50] sm:$0xff] %vm3572_vm2, %v3566_v2 }
 0x709   : > { %v3543_v37 = vpop.xlane.xlu0 %3542 }
 0x70a   : > { %v3567_v29 = vmul.f32 0.00390625, %v3543_v37 }
 0x70c   : > { %3584 = vst.msk [vmem:[%s6041_s16 + $0x58] sm:$0xff] %vm3572_vm2, %v3567_v29 }
 0x711   : > { %v3546_v45 = vpop.xlane.xlu1 %3545 }
 0x712   : > { %v3568_v53 = vmul.f32 0.00390625, %v3546_v45 }
 0x714   : > { %3585 = vst.msk [vmem:[%s6041_s16 + $0x60] sm:$0xff] %vm3572_vm2, %v3568_v53 }
 0x719   : > { %v3549_v18 = vpop.xlane.xlu2 %3548 }
 0x71a   : > { %v3569_v1 = vmul.f32 0.00390625, %v3549_v18 }
 0x71c   : > { %3586 = vst.msk [vmem:[%s6041_s16 + $0x68] sm:$0xff] %vm3572_vm2, %v3569_v1 }
 0x721   : > { %v3552_v54 = vpop.xlane.xlu0 %3551 }
 0x722   : > { %v3570_v23 = vmul.f32 0.00390625, %v3552_v54 }
 0x724   : > { %3587 = vst.msk [vmem:[%s6041_s16 + $0x70] sm:$0xff] %vm3572_vm2, %v3570_v23 }
 0x729   : > { %v3555_v19 = vpop.xlane.xlu1 %3554 }
 0x72a   : > { %v3571_v36 = vmul.f32 0.00390625, %v3555_v19 }
 0x72c   : > { %3588 = vst.msk [vmem:[%s6041_s16 + $0x78] sm:$0xff] %vm3572_vm2, %v3571_v36 }
 0x72d PF: > { %s18_s29 = sadd.s32 1, %s4311_s29   ;;  %s6215_s27 = smov %s4307_s28 }
 0x72e   : > { %p15_p5 = scmp.ge.s32.totalorder %s18_s29, 4   ;;  %s6216_s28 = smov %s6218_s30 }
 0x730   :  { %17 = sbr.rel (!%p15_p5) target bundleno = 2 (0x2), region = 90 }

</bundles_post_ra>
